<compile_context>
chip_gen: v7x
topology: tpu7x:2x2x1
jax: 0.10.0
libtpu: 0.0.40
codegen_flags: <defaults>
</compile_context>

<pallas_src>
import functools

import jax
import jax.numpy as jnp
from jax.experimental import pallas as pl
from jax.experimental.pallas import tpu as pltpu


# ----------------------------------------------------------------------------
# Kernel: two-layer LSTM recurrence + deferred linear head, single invocation.
# ----------------------------------------------------------------------------
def _lstm_critic_kernel(
    x_ref,      # (T*Bp, D)      bf16, whole sequence, time-major rows (t*Bp + b)
    wih1_ref,   # (D, 4*H1)      bf16
    whh1_ref,   # (H1, 4*H1)     bf16
    b1_ref,     # (1, 4*H1)      f32, b_ih + b_hh of layer 1
    wih2_ref,   # (H1, 4*H2)     bf16
    whh2_ref,   # (H2, 4*H2)     bf16
    b2_ref,     # (1, 4*H2)      f32, b_ih + b_hh of layer 2
    wout_ref,   # (1, H2)        f32
    bout_ref,   # (1, 1)         f32
    out_ref,    # (T*Bp, 1)      f32
    xw1_ref,    # VMEM scratch (T*Bp, 4*H1) f32: hoisted layer-1 input projection
    h2all_ref,  # VMEM scratch (T*Bp, H2)   f32: parked layer-2 hidden states
    *, seq_len, batch_p, hidden1, hidden2,
):
    f32 = jnp.float32
    bf16 = jnp.bfloat16

    # Hoisted input projection for layer 1: one big-M bf16 matmul, bias folded.
    xw1_ref[...] = (
        jnp.dot(x_ref[...], wih1_ref[...], preferred_element_type=f32)
        + b1_ref[...]
    )

    # Hoist the small broadcasts out of the unrolled loop.
    b2 = jnp.broadcast_to(b2_ref[...], (batch_p, 4 * hidden2)).astype(f32)

    def gates(g, hidden):
        i = jax.nn.sigmoid(g[:, 0 * hidden:1 * hidden])
        f = jax.nn.sigmoid(g[:, 1 * hidden:2 * hidden])
        gg = jnp.tanh(g[:, 2 * hidden:3 * hidden])
        o = jax.nn.sigmoid(g[:, 3 * hidden:4 * hidden])
        return i, f, gg, o

    def layer1_step(t, h1_bf, c1):
        row = t * batch_p                                     # multiple of 8
        g1 = xw1_ref[row:row + batch_p, :] + jnp.dot(
            h1_bf, whh1_ref[...], preferred_element_type=f32)
        i1, f1, gg1, o1 = gates(g1, hidden1)
        c1n = f1 * c1 + i1 * gg1
        return o1 * jnp.tanh(c1n), c1n

    # init_hidden_state(): zeros at the start of the sequence (state in f32).
    c2 = jnp.zeros((batch_p, hidden2), f32)

    # Prologue: layer-1 step 0 with h1(-1) = c1(-1) = 0 (recurrent term drops).
    g1 = xw1_ref[0:batch_p, :]
    i1, f1, gg1, o1 = gates(g1, hidden1)
    c1 = i1 * gg1
    h1 = o1 * jnp.tanh(c1)

    # h2(-1) = 0, so the precomputed h2 @ W_hh2 term starts at zero.
    h2w = jnp.zeros((batch_p, 4 * hidden2), f32)

    # Skewed, statically unrolled recurrence (T small and static): iteration t
    # issues layer-2 of step t and layer-1 of step t+1 together — both depend
    # only on h1(t) — so their MXU/EUP work can overlap.
    for t in range(seq_len):
        h1_bf = h1.astype(bf16)

        # Layer 2, step t: only h1 @ W_ih2 is on the critical path
        # (h2(t-1) @ W_hh2 was precomputed right after h2(t-1) appeared).
        g2 = jnp.dot(h1_bf, wih2_ref[...], preferred_element_type=f32) + h2w + b2

        # Layer 1, step t+1 (independent of the layer-2 work above).
        if t + 1 < seq_len:
            h1, c1 = layer1_step(t + 1, h1_bf, c1)

        i2, f2, gg2, o2 = gates(g2, hidden2)
        c2 = f2 * c2 + i2 * gg2
        h2 = o2 * jnp.tanh(c2)

        # Precompute h2(t) @ W_hh2 for step t+1 (off the critical path).
        if t + 1 < seq_len:
            h2w = jnp.dot(h2.astype(bf16), whh2_ref[...],
                          preferred_element_type=f32)

        # Park h2(t); the critic head is applied once after the loop.
        h2all_ref[t * batch_p:(t + 1) * batch_p, :] = h2

    # Deferred head: Linear(H2 -> 1) as one batched VPU multiply + lane
    # reduction over all (T*Bp) rows and a single store.
    vals = (jnp.sum(h2all_ref[...] * wout_ref[...], axis=-1, keepdims=True)
            + bout_ref[...])
    out_ref[...] = vals.astype(out_ref.dtype)


# ----------------------------------------------------------------------------
# Wrapper
# ----------------------------------------------------------------------------
def lstm_critic_forward(state, params):
    """state: (T, B, D) or (B, D) float32.  Returns (T, B, 1) or (B, 1)."""
    squeeze_time = False
    if state.ndim == 2:
        # PyTorch 2-D branch: re-inits hidden state and runs one step.
        state = state[None]
        squeeze_time = True
    # TODO(synk): the PyTorch 1-D branch carries hidden/cell state across
    # forward() calls (module-level mutable state); that stateful path is not
    # reproduced here — every call zero-initializes h/c like the 2-D/3-D branch.
    T, B, D = state.shape

    wih1, whh1, b1, wih2, whh2, b2, wout, bout = params
    H1 = whh1.shape[0]
    H2 = whh2.shape[0]

    bf16 = jnp.bfloat16

    # Pad the batch to the f32 sublane count so every per-step slice inside
    # the kernel is a full, aligned (8, 128) tile.
    Bp = max(8, ((B + 7) // 8) * 8)
    x_pad = jnp.zeros((T, Bp, D), jnp.float32)
    x_pad = x_pad.at[:, :B, :].set(state.astype(jnp.float32))
    x2d = x_pad.reshape(T * Bp, D).astype(bf16)

    vmem = pl.BlockSpec(memory_space=pltpu.MemorySpace.VMEM)
    out2d = pl.pallas_call(
        functools.partial(
            _lstm_critic_kernel, seq_len=T, batch_p=Bp, hidden1=H1, hidden2=H2),
        out_shape=jax.ShapeDtypeStruct((T * Bp, 1), jnp.float32),
        in_specs=[vmem] * 9,
        out_specs=vmem,
        scratch_shapes=[
            pltpu.VMEM((T * Bp, 4 * H1), jnp.float32),   # hoisted x @ W_ih1 + b1
            pltpu.VMEM((T * Bp, H2), jnp.float32),       # parked h2 per step
        ],
    )(x2d,
      wih1.astype(bf16), whh1.astype(bf16), b1,
      wih2.astype(bf16), whh2.astype(bf16), b2,
      wout, bout)

    out = out2d.reshape(T, Bp, 1)[:, :B, :]
    if squeeze_time:
        out = out[0]
    return out


# ----------------------------------------------------------------------------
# Deterministic parameter construction (mirrors nn.LSTMCell default init and
# normc_fn applied to the Linear head).
# ----------------------------------------------------------------------------
def make_params(key, input_dim, layers=(128, 128)):
    H1, H2 = layers
    ks = jax.random.split(key, 9)

    def uni(k, shape, hidden):
        bound = 1.0 / jnp.sqrt(jnp.float32(hidden))
        return jax.random.uniform(k, shape, jnp.float32, -bound, bound)

    # Layer 1 (LSTMCell(input_dim, H1)); weights stored transposed: (in, 4H)
    wih1 = uni(ks[0], (input_dim, 4 * H1), H1)
    whh1 = uni(ks[1], (H1, 4 * H1), H1)
    b1 = uni(ks[2], (1, 4 * H1), H1) + uni(ks[3], (1, 4 * H1), H1)  # b_ih + b_hh

    # Layer 2 (LSTMCell(H1, H2))
    wih2 = uni(ks[4], (H1, 4 * H2), H2)
    whh2 = uni(ks[5], (H2, 4 * H2), H2)
    b2 = uni(ks[6], (1, 4 * H2), H2) + uni(ks[7], (1, 4 * H2), H2)

    # network_out Linear(H2, 1) with normc_init: normal(0,1) row-normalized, bias 0.
    w = jax.random.normal(ks[8], (1, H2), jnp.float32)
    w = w / jnp.sqrt(jnp.sum(w * w, axis=1, keepdims=True))
    wout = w                        # stored as the (1, H2) weight row
    bout = jnp.zeros((1, 1), jnp.float32)

    return (wih1, whh1, b1, wih2, whh2, b2, wout, bout)


# ----------------------------------------------------------------------------
# Pure-JAX reference (exact PyTorch LSTMCell semantics, full f32).
# ----------------------------------------------------------------------------
def reference_forward(state, params):
    wih1, whh1, b1, wih2, whh2, b2, wout, bout = params
    T, B, _ = state.shape
    H1, H2 = whh1.shape[0], whh2.shape[0]
    h1 = jnp.zeros((B, H1)); c1 = jnp.zeros((B, H1))
    h2 = jnp.zeros((B, H2)); c2 = jnp.zeros((B, H2))

    def cell(x, h, c, wih, whh, b):
        H = h.shape[-1]
        g = x @ wih + h @ whh + b
        i = jax.nn.sigmoid(g[:, 0:H]); f = jax.nn.sigmoid(g[:, H:2 * H])
        gg = jnp.tanh(g[:, 2 * H:3 * H]); o = jax.nn.sigmoid(g[:, 3 * H:4 * H])
        c_new = f * c + i * gg
        return o * jnp.tanh(c_new), c_new

    vals = []
    for t in range(T):
        x = state[t]
        h1, c1 = cell(x, h1, c1, wih1, whh1, b1)
        h2, c2 = cell(h1, h2, c2, wih2, whh2, b2)
        vals.append(h2 @ wout.T + bout)
    return jnp.stack(vals)


if __name__ == "__main__":
    key = jax.random.PRNGKey(0)
    k_param, k_state = jax.random.split(key)

    T, B, D = 8, 2, 16          # seq=8, batch=2, input_dim=16
    layers = (128, 128)         # module default hidden sizes

    params = make_params(k_param, D, layers)
    state = jax.random.normal(k_state, (T, B, D), jnp.float32)

    # 3-D (sequence) branch.  bf16 matmul operands -> looser tolerance vs the
    # full-f32 reference.
    out = jax.block_until_ready(lstm_critic_forward(state, params))
    ref = reference_forward(state, params)
    assert out.shape == (T, B, 1)
    assert jnp.allclose(out, ref, rtol=3e-2, atol=3e-2), "3-D mismatch vs reference"

    # 2-D (single-step) branch.
    out2 = jax.block_until_ready(lstm_critic_forward(state[0], params))
    ref2 = reference_forward(state[:1], params)[0]
    assert out2.shape == (B, 1)
    assert jnp.allclose(out2, ref2, rtol=3e-2, atol=3e-2), "2-D mismatch vs reference"

    print("KERNEL_OK")
</pallas_src>

<mosaic_0001>
module attributes {stable_mosaic.version = 11 : i64} {
  func.func @_lstm_critic_kernel(%arg0: memref<64x16xbf16, #tpu.memory_space<vmem>>, %arg1: memref<16x512xbf16, #tpu.memory_space<vmem>>, %arg2: memref<128x512xbf16, #tpu.memory_space<vmem>>, %arg3: memref<1x512xf32, #tpu.memory_space<vmem>>, %arg4: memref<128x512xbf16, #tpu.memory_space<vmem>>, %arg5: memref<128x512xbf16, #tpu.memory_space<vmem>>, %arg6: memref<1x512xf32, #tpu.memory_space<vmem>>, %arg7: memref<1x128xf32, #tpu.memory_space<vmem>>, %arg8: memref<1x1xf32, #tpu.memory_space<vmem>>, %arg9: memref<64x1xf32, #tpu.memory_space<vmem>>, %arg10: memref<64x512xf32, #tpu.memory_space<vmem>>, %arg11: memref<64x128xf32, #tpu.memory_space<vmem>>) attributes {dimension_semantics = [], scalar_prefetch = 0 : i64, scratch_operands = 2 : i64, tpu.core_type = #tpu.core_type<tc>} {
    %c0 = arith.constant 0 : index
    %c0_0 = arith.constant 0 : index
    %0 = vector.load %arg0[%c0, %c0_0] : memref<64x16xbf16, #tpu.memory_space<vmem>>, vector<64x16xbf16>
    %c0_1 = arith.constant 0 : index
    %c0_2 = arith.constant 0 : index
    %1 = vector.load %arg1[%c0_1, %c0_2] : memref<16x512xbf16, #tpu.memory_space<vmem>>, vector<16x512xbf16>
    %cst = arith.constant dense<0.000000e+00> : vector<64x512xf32>
    %2 = tpu.matmul %0, %1, %cst {dimension_numbers = #tpu.dot_dimension_numbers<[1], [0], [0], [1], [0, 0, 1, 1], [], []>} : vector<64x16xbf16>, vector<16x512xbf16>, vector<64x512xf32> -> vector<64x512xf32>
    %c0_3 = arith.constant 0 : index
    %c0_4 = arith.constant 0 : index
    %3 = vector.load %arg3[%c0_3, %c0_4] : memref<1x512xf32, #tpu.memory_space<vmem>>, vector<1x512xf32>
    %4 = vector.broadcast %3 : vector<1x512xf32> to vector<64x512xf32>
    %5 = arith.addf %2, %4 : vector<64x512xf32>
    %c0_5 = arith.constant 0 : index
    %c0_6 = arith.constant 0 : index
    %6 = vector.load %arg10[%c0_5, %c0_6] : memref<64x512xf32, #tpu.memory_space<vmem>>, vector<64x512xf32>
    tpu.vector_store %arg10[%c0_5, %c0_6], %5 {strides = array<i32>} : memref<64x512xf32, #tpu.memory_space<vmem>>, vector<64x512xf32>,
    %c0_7 = arith.constant 0 : index
    %c0_8 = arith.constant 0 : index
    %7 = vector.load %arg6[%c0_7, %c0_8] : memref<1x512xf32, #tpu.memory_space<vmem>>, vector<1x512xf32>
    %8 = vector.shape_cast %7 : vector<1x512xf32> to vector<1x512xf32>
    %9 = vector.broadcast %8 : vector<1x512xf32> to vector<8x512xf32>
    %cst_9 = arith.constant 0.000000e+00 : f32
    %10 = vector.broadcast %cst_9 : f32 to vector<8x128xf32>
    %c0_10 = arith.constant 0 : index
    %c0_11 = arith.constant 0 : index
    %11 = vector.load %arg10[%c0_10, %c0_11] : memref<64x512xf32, #tpu.memory_space<vmem>>, vector<8x512xf32>
    %12 = vector.extract_strided_slice %11 {offsets = [0, 0], sizes = [8, 128], strides = [1, 1]} : vector<8x512xf32> to vector<8x128xf32>
    %13 = arith.negf %12 : vector<8x128xf32>
    %14 = math.exp %13 : vector<8x128xf32>
    %cst_12 = arith.constant 1.000000e+00 : f32
    %15 = vector.broadcast %cst_12 : f32 to vector<8x128xf32>
    %16 = arith.addf %15, %14 : vector<8x128xf32>
    %17 = arith.divf %15, %16 : vector<8x128xf32>
    %18 = vector.extract_strided_slice %11 {offsets = [0, 256], sizes = [8, 128], strides = [1, 1]} : vector<8x512xf32> to vector<8x128xf32>
    %19 = math.tanh %18 : vector<8x128xf32>
    %20 = vector.extract_strided_slice %11 {offsets = [0, 384], sizes = [8, 128], strides = [1, 1]} : vector<8x512xf32> to vector<8x128xf32>
    %21 = arith.negf %20 : vector<8x128xf32>
    %22 = math.exp %21 : vector<8x128xf32>
    %cst_13 = arith.constant 1.000000e+00 : f32
    %23 = vector.broadcast %cst_13 : f32 to vector<8x128xf32>
    %24 = arith.addf %23, %22 : vector<8x128xf32>
    %25 = arith.divf %23, %24 : vector<8x128xf32>
    %26 = arith.mulf %17, %19 : vector<8x128xf32>
    %27 = math.tanh %26 : vector<8x128xf32>
    %28 = arith.mulf %25, %27 : vector<8x128xf32>
    %cst_14 = arith.constant 0.000000e+00 : f32
    %29 = vector.broadcast %cst_14 : f32 to vector<8x512xf32>
    %30 = arith.truncf %28 : vector<8x128xf32> to vector<8x128xbf16>
    %c0_15 = arith.constant 0 : index
    %c0_16 = arith.constant 0 : index
    %31 = vector.load %arg4[%c0_15, %c0_16] : memref<128x512xbf16, #tpu.memory_space<vmem>>, vector<128x512xbf16>
    %cst_17 = arith.constant dense<0.000000e+00> : vector<8x512xf32>
    %32 = tpu.matmul %30, %31, %cst_17 {dimension_numbers = #tpu.dot_dimension_numbers<[1], [0], [0], [1], [0, 0, 1, 1], [], []>} : vector<8x128xbf16>, vector<128x512xbf16>, vector<8x512xf32> -> vector<8x512xf32>
    %33 = arith.addf %32, %29 : vector<8x512xf32>
    %34 = arith.addf %33, %9 : vector<8x512xf32>
    %c8 = arith.constant 8 : index
    %c0_18 = arith.constant 0 : index
    %35 = vector.load %arg10[%c8, %c0_18] : memref<64x512xf32, #tpu.memory_space<vmem>>, vector<8x512xf32>
    %c0_19 = arith.constant 0 : index
    %c0_20 = arith.constant 0 : index
    %36 = vector.load %arg2[%c0_19, %c0_20] : memref<128x512xbf16, #tpu.memory_space<vmem>>, vector<128x512xbf16>
    %cst_21 = arith.constant dense<0.000000e+00> : vector<8x512xf32>
    %37 = tpu.matmul %30, %36, %cst_21 {dimension_numbers = #tpu.dot_dimension_numbers<[1], [0], [0], [1], [0, 0, 1, 1], [], []>} : vector<8x128xbf16>, vector<128x512xbf16>, vector<8x512xf32> -> vector<8x512xf32>
    %38 = arith.addf %35, %37 : vector<8x512xf32>
    %39 = vector.extract_strided_slice %38 {offsets = [0, 0], sizes = [8, 128], strides = [1, 1]} : vector<8x512xf32> to vector<8x128xf32>
    %40 = arith.negf %39 : vector<8x128xf32>
    %41 = math.exp %40 : vector<8x128xf32>
    %cst_22 = arith.constant 1.000000e+00 : f32
    %42 = vector.broadcast %cst_22 : f32 to vector<8x128xf32>
    %43 = arith.addf %42, %41 : vector<8x128xf32>
    %44 = arith.divf %42, %43 : vector<8x128xf32>
    %45 = vector.extract_strided_slice %38 {offsets = [0, 128], sizes = [8, 128], strides = [1, 1]} : vector<8x512xf32> to vector<8x128xf32>
    %46 = arith.negf %45 : vector<8x128xf32>
    %47 = math.exp %46 : vector<8x128xf32>
    %cst_23 = arith.constant 1.000000e+00 : f32
    %48 = vector.broadcast %cst_23 : f32 to vector<8x128xf32>
    %49 = arith.addf %48, %47 : vector<8x128xf32>
    %50 = arith.divf %48, %49 : vector<8x128xf32>
    %51 = vector.extract_strided_slice %38 {offsets = [0, 256], sizes = [8, 128], strides = [1, 1]} : vector<8x512xf32> to vector<8x128xf32>
    %52 = math.tanh %51 : vector<8x128xf32>
    %53 = vector.extract_strided_slice %38 {offsets = [0, 384], sizes = [8, 128], strides = [1, 1]} : vector<8x512xf32> to vector<8x128xf32>
    %54 = arith.negf %53 : vector<8x128xf32>
    %55 = math.exp %54 : vector<8x128xf32>
    %cst_24 = arith.constant 1.000000e+00 : f32
    %56 = vector.broadcast %cst_24 : f32 to vector<8x128xf32>
    %57 = arith.addf %56, %55 : vector<8x128xf32>
    %58 = arith.divf %56, %57 : vector<8x128xf32>
    %59 = arith.mulf %50, %26 : vector<8x128xf32>
    %60 = arith.mulf %44, %52 : vector<8x128xf32>
    %61 = arith.addf %59, %60 : vector<8x128xf32>
    %62 = math.tanh %61 : vector<8x128xf32>
    %63 = arith.mulf %58, %62 : vector<8x128xf32>
    %64 = vector.extract_strided_slice %34 {offsets = [0, 0], sizes = [8, 128], strides = [1, 1]} : vector<8x512xf32> to vector<8x128xf32>
    %65 = arith.negf %64 : vector<8x128xf32>
    %66 = math.exp %65 : vector<8x128xf32>
    %cst_25 = arith.constant 1.000000e+00 : f32
    %67 = vector.broadcast %cst_25 : f32 to vector<8x128xf32>
    %68 = arith.addf %67, %66 : vector<8x128xf32>
    %69 = arith.divf %67, %68 : vector<8x128xf32>
    %70 = vector.extract_strided_slice %34 {offsets = [0, 128], sizes = [8, 128], strides = [1, 1]} : vector<8x512xf32> to vector<8x128xf32>
    %71 = arith.negf %70 : vector<8x128xf32>
    %72 = math.exp %71 : vector<8x128xf32>
    %cst_26 = arith.constant 1.000000e+00 : f32
    %73 = vector.broadcast %cst_26 : f32 to vector<8x128xf32>
    %74 = arith.addf %73, %72 : vector<8x128xf32>
    %75 = arith.divf %73, %74 : vector<8x128xf32>
    %76 = vector.extract_strided_slice %34 {offsets = [0, 256], sizes = [8, 128], strides = [1, 1]} : vector<8x512xf32> to vector<8x128xf32>
    %77 = math.tanh %76 : vector<8x128xf32>
    %78 = vector.extract_strided_slice %34 {offsets = [0, 384], sizes = [8, 128], strides = [1, 1]} : vector<8x512xf32> to vector<8x128xf32>
    %79 = arith.negf %78 : vector<8x128xf32>
    %80 = math.exp %79 : vector<8x128xf32>
    %cst_27 = arith.constant 1.000000e+00 : f32
    %81 = vector.broadcast %cst_27 : f32 to vector<8x128xf32>
    %82 = arith.addf %81, %80 : vector<8x128xf32>
    %83 = arith.divf %81, %82 : vector<8x128xf32>
    %84 = arith.mulf %75, %10 : vector<8x128xf32>
    %85 = arith.mulf %69, %77 : vector<8x128xf32>
    %86 = arith.addf %84, %85 : vector<8x128xf32>
    %87 = math.tanh %86 : vector<8x128xf32>
    %88 = arith.mulf %83, %87 : vector<8x128xf32>
    %89 = arith.truncf %88 : vector<8x128xf32> to vector<8x128xbf16>
    %c0_28 = arith.constant 0 : index
    %c0_29 = arith.constant 0 : index
    %90 = vector.load %arg5[%c0_28, %c0_29] : memref<128x512xbf16, #tpu.memory_space<vmem>>, vector<128x512xbf16>
    %cst_30 = arith.constant dense<0.000000e+00> : vector<8x512xf32>
    %91 = tpu.matmul %89, %90, %cst_30 {dimension_numbers = #tpu.dot_dimension_numbers<[1], [0], [0], [1], [0, 0, 1, 1], [], []>} : vector<8x128xbf16>, vector<128x512xbf16>, vector<8x512xf32> -> vector<8x512xf32>
    %c0_31 = arith.constant 0 : index
    %c0_32 = arith.constant 0 : index
    %92 = vector.load %arg11[%c0_31, %c0_32] : memref<64x128xf32, #tpu.memory_space<vmem>>, vector<8x128xf32>
    tpu.vector_store %arg11[%c0_31, %c0_32], %88 {strides = array<i32>} : memref<64x128xf32, #tpu.memory_space<vmem>>, vector<8x128xf32>,
    %93 = arith.truncf %63 : vector<8x128xf32> to vector<8x128xbf16>
    %c0_33 = arith.constant 0 : index
    %c0_34 = arith.constant 0 : index
    %94 = vector.load %arg4[%c0_33, %c0_34] : memref<128x512xbf16, #tpu.memory_space<vmem>>, vector<128x512xbf16>
    %cst_35 = arith.constant dense<0.000000e+00> : vector<8x512xf32>
    %95 = tpu.matmul %93, %94, %cst_35 {dimension_numbers = #tpu.dot_dimension_numbers<[1], [0], [0], [1], [0, 0, 1, 1], [], []>} : vector<8x128xbf16>, vector<128x512xbf16>, vector<8x512xf32> -> vector<8x512xf32>
    %96 = arith.addf %95, %91 : vector<8x512xf32>
    %97 = arith.addf %96, %9 : vector<8x512xf32>
    %c16 = arith.constant 16 : index
    %c0_36 = arith.constant 0 : index
    %98 = vector.load %arg10[%c16, %c0_36] : memref<64x512xf32, #tpu.memory_space<vmem>>, vector<8x512xf32>
    %c0_37 = arith.constant 0 : index
    %c0_38 = arith.constant 0 : index
    %99 = vector.load %arg2[%c0_37, %c0_38] : memref<128x512xbf16, #tpu.memory_space<vmem>>, vector<128x512xbf16>
    %cst_39 = arith.constant dense<0.000000e+00> : vector<8x512xf32>
    %100 = tpu.matmul %93, %99, %cst_39 {dimension_numbers = #tpu.dot_dimension_numbers<[1], [0], [0], [1], [0, 0, 1, 1], [], []>} : vector<8x128xbf16>, vector<128x512xbf16>, vector<8x512xf32> -> vector<8x512xf32>
    %101 = arith.addf %98, %100 : vector<8x512xf32>
    %102 = vector.extract_strided_slice %101 {offsets = [0, 0], sizes = [8, 128], strides = [1, 1]} : vector<8x512xf32> to vector<8x128xf32>
    %103 = arith.negf %102 : vector<8x128xf32>
    %104 = math.exp %103 : vector<8x128xf32>
    %cst_40 = arith.constant 1.000000e+00 : f32
    %105 = vector.broadcast %cst_40 : f32 to vector<8x128xf32>
    %106 = arith.addf %105, %104 : vector<8x128xf32>
    %107 = arith.divf %105, %106 : vector<8x128xf32>
    %108 = vector.extract_strided_slice %101 {offsets = [0, 128], sizes = [8, 128], strides = [1, 1]} : vector<8x512xf32> to vector<8x128xf32>
    %109 = arith.negf %108 : vector<8x128xf32>
    %110 = math.exp %109 : vector<8x128xf32>
    %cst_41 = arith.constant 1.000000e+00 : f32
    %111 = vector.broadcast %cst_41 : f32 to vector<8x128xf32>
    %112 = arith.addf %111, %110 : vector<8x128xf32>
    %113 = arith.divf %111, %112 : vector<8x128xf32>
    %114 = vector.extract_strided_slice %101 {offsets = [0, 256], sizes = [8, 128], strides = [1, 1]} : vector<8x512xf32> to vector<8x128xf32>
    %115 = math.tanh %114 : vector<8x128xf32>
    %116 = vector.extract_strided_slice %101 {offsets = [0, 384], sizes = [8, 128], strides = [1, 1]} : vector<8x512xf32> to vector<8x128xf32>
    %117 = arith.negf %116 : vector<8x128xf32>
    %118 = math.exp %117 : vector<8x128xf32>
    %cst_42 = arith.constant 1.000000e+00 : f32
    %119 = vector.broadcast %cst_42 : f32 to vector<8x128xf32>
    %120 = arith.addf %119, %118 : vector<8x128xf32>
    %121 = arith.divf %119, %120 : vector<8x128xf32>
    %122 = arith.mulf %113, %61 : vector<8x128xf32>
    %123 = arith.mulf %107, %115 : vector<8x128xf32>
    %124 = arith.addf %122, %123 : vector<8x128xf32>
    %125 = math.tanh %124 : vector<8x128xf32>
    %126 = arith.mulf %121, %125 : vector<8x128xf32>
    %127 = vector.extract_strided_slice %97 {offsets = [0, 0], sizes = [8, 128], strides = [1, 1]} : vector<8x512xf32> to vector<8x128xf32>
    %128 = arith.negf %127 : vector<8x128xf32>
    %129 = math.exp %128 : vector<8x128xf32>
    %cst_43 = arith.constant 1.000000e+00 : f32
    %130 = vector.broadcast %cst_43 : f32 to vector<8x128xf32>
    %131 = arith.addf %130, %129 : vector<8x128xf32>
    %132 = arith.divf %130, %131 : vector<8x128xf32>
    %133 = vector.extract_strided_slice %97 {offsets = [0, 128], sizes = [8, 128], strides = [1, 1]} : vector<8x512xf32> to vector<8x128xf32>
    %134 = arith.negf %133 : vector<8x128xf32>
    %135 = math.exp %134 : vector<8x128xf32>
    %cst_44 = arith.constant 1.000000e+00 : f32
    %136 = vector.broadcast %cst_44 : f32 to vector<8x128xf32>
    %137 = arith.addf %136, %135 : vector<8x128xf32>
    %138 = arith.divf %136, %137 : vector<8x128xf32>
    %139 = vector.extract_strided_slice %97 {offsets = [0, 256], sizes = [8, 128], strides = [1, 1]} : vector<8x512xf32> to vector<8x128xf32>
    %140 = math.tanh %139 : vector<8x128xf32>
    %141 = vector.extract_strided_slice %97 {offsets = [0, 384], sizes = [8, 128], strides = [1, 1]} : vector<8x512xf32> to vector<8x128xf32>
    %142 = arith.negf %141 : vector<8x128xf32>
    %143 = math.exp %142 : vector<8x128xf32>
    %cst_45 = arith.constant 1.000000e+00 : f32
    %144 = vector.broadcast %cst_45 : f32 to vector<8x128xf32>
    %145 = arith.addf %144, %143 : vector<8x128xf32>
    %146 = arith.divf %144, %145 : vector<8x128xf32>
    %147 = arith.mulf %138, %86 : vector<8x128xf32>
    %148 = arith.mulf %132, %140 : vector<8x128xf32>
    %149 = arith.addf %147, %148 : vector<8x128xf32>
    %150 = math.tanh %149 : vector<8x128xf32>
    %151 = arith.mulf %146, %150 : vector<8x128xf32>
    %152 = arith.truncf %151 : vector<8x128xf32> to vector<8x128xbf16>
    %c0_46 = arith.constant 0 : index
    %c0_47 = arith.constant 0 : index
    %153 = vector.load %arg5[%c0_46, %c0_47] : memref<128x512xbf16, #tpu.memory_space<vmem>>, vector<128x512xbf16>
    %cst_48 = arith.constant dense<0.000000e+00> : vector<8x512xf32>
    %154 = tpu.matmul %152, %153, %cst_48 {dimension_numbers = #tpu.dot_dimension_numbers<[1], [0], [0], [1], [0, 0, 1, 1], [], []>} : vector<8x128xbf16>, vector<128x512xbf16>, vector<8x512xf32> -> vector<8x512xf32>
    %c8_49 = arith.constant 8 : index
    %c0_50 = arith.constant 0 : index
    %155 = vector.load %arg11[%c8_49, %c0_50] : memref<64x128xf32, #tpu.memory_space<vmem>>, vector<8x128xf32>
    tpu.vector_store %arg11[%c8_49, %c0_50], %151 {strides = array<i32>} : memref<64x128xf32, #tpu.memory_space<vmem>>, vector<8x128xf32>,
    %156 = arith.truncf %126 : vector<8x128xf32> to vector<8x128xbf16>
    %c0_51 = arith.constant 0 : index
    %c0_52 = arith.constant 0 : index
    %157 = vector.load %arg4[%c0_51, %c0_52] : memref<128x512xbf16, #tpu.memory_space<vmem>>, vector<128x512xbf16>
    %cst_53 = arith.constant dense<0.000000e+00> : vector<8x512xf32>
    %158 = tpu.matmul %156, %157, %cst_53 {dimension_numbers = #tpu.dot_dimension_numbers<[1], [0], [0], [1], [0, 0, 1, 1], [], []>} : vector<8x128xbf16>, vector<128x512xbf16>, vector<8x512xf32> -> vector<8x512xf32>
    %159 = arith.addf %158, %154 : vector<8x512xf32>
    %160 = arith.addf %159, %9 : vector<8x512xf32>
    %c24 = arith.constant 24 : index
    %c0_54 = arith.constant 0 : index
    %161 = vector.load %arg10[%c24, %c0_54] : memref<64x512xf32, #tpu.memory_space<vmem>>, vector<8x512xf32>
    %c0_55 = arith.constant 0 : index
    %c0_56 = arith.constant 0 : index
    %162 = vector.load %arg2[%c0_55, %c0_56] : memref<128x512xbf16, #tpu.memory_space<vmem>>, vector<128x512xbf16>
    %cst_57 = arith.constant dense<0.000000e+00> : vector<8x512xf32>
    %163 = tpu.matmul %156, %162, %cst_57 {dimension_numbers = #tpu.dot_dimension_numbers<[1], [0], [0], [1], [0, 0, 1, 1], [], []>} : vector<8x128xbf16>, vector<128x512xbf16>, vector<8x512xf32> -> vector<8x512xf32>
    %164 = arith.addf %161, %163 : vector<8x512xf32>
    %165 = vector.extract_strided_slice %164 {offsets = [0, 0], sizes = [8, 128], strides = [1, 1]} : vector<8x512xf32> to vector<8x128xf32>
    %166 = arith.negf %165 : vector<8x128xf32>
    %167 = math.exp %166 : vector<8x128xf32>
    %cst_58 = arith.constant 1.000000e+00 : f32
    %168 = vector.broadcast %cst_58 : f32 to vector<8x128xf32>
    %169 = arith.addf %168, %167 : vector<8x128xf32>
    %170 = arith.divf %168, %169 : vector<8x128xf32>
    %171 = vector.extract_strided_slice %164 {offsets = [0, 128], sizes = [8, 128], strides = [1, 1]} : vector<8x512xf32> to vector<8x128xf32>
    %172 = arith.negf %171 : vector<8x128xf32>
    %173 = math.exp %172 : vector<8x128xf32>
    %cst_59 = arith.constant 1.000000e+00 : f32
    %174 = vector.broadcast %cst_59 : f32 to vector<8x128xf32>
    %175 = arith.addf %174, %173 : vector<8x128xf32>
    %176 = arith.divf %174, %175 : vector<8x128xf32>
    %177 = vector.extract_strided_slice %164 {offsets = [0, 256], sizes = [8, 128], strides = [1, 1]} : vector<8x512xf32> to vector<8x128xf32>
    %178 = math.tanh %177 : vector<8x128xf32>
    %179 = vector.extract_strided_slice %164 {offsets = [0, 384], sizes = [8, 128], strides = [1, 1]} : vector<8x512xf32> to vector<8x128xf32>
    %180 = arith.negf %179 : vector<8x128xf32>
    %181 = math.exp %180 : vector<8x128xf32>
    %cst_60 = arith.constant 1.000000e+00 : f32
    %182 = vector.broadcast %cst_60 : f32 to vector<8x128xf32>
    %183 = arith.addf %182, %181 : vector<8x128xf32>
    %184 = arith.divf %182, %183 : vector<8x128xf32>
    %185 = arith.mulf %176, %124 : vector<8x128xf32>
    %186 = arith.mulf %170, %178 : vector<8x128xf32>
    %187 = arith.addf %185, %186 : vector<8x128xf32>
    %188 = math.tanh %187 : vector<8x128xf32>
    %189 = arith.mulf %184, %188 : vector<8x128xf32>
    %190 = vector.extract_strided_slice %160 {offsets = [0, 0], sizes = [8, 128], strides = [1, 1]} : vector<8x512xf32> to vector<8x128xf32>
    %191 = arith.negf %190 : vector<8x128xf32>
    %192 = math.exp %191 : vector<8x128xf32>
    %cst_61 = arith.constant 1.000000e+00 : f32
    %193 = vector.broadcast %cst_61 : f32 to vector<8x128xf32>
    %194 = arith.addf %193, %192 : vector<8x128xf32>
    %195 = arith.divf %193, %194 : vector<8x128xf32>
    %196 = vector.extract_strided_slice %160 {offsets = [0, 128], sizes = [8, 128], strides = [1, 1]} : vector<8x512xf32> to vector<8x128xf32>
    %197 = arith.negf %196 : vector<8x128xf32>
    %198 = math.exp %197 : vector<8x128xf32>
    %cst_62 = arith.constant 1.000000e+00 : f32
    %199 = vector.broadcast %cst_62 : f32 to vector<8x128xf32>
    %200 = arith.addf %199, %198 : vector<8x128xf32>
    %201 = arith.divf %199, %200 : vector<8x128xf32>
    %202 = vector.extract_strided_slice %160 {offsets = [0, 256], sizes = [8, 128], strides = [1, 1]} : vector<8x512xf32> to vector<8x128xf32>
    %203 = math.tanh %202 : vector<8x128xf32>
    %204 = vector.extract_strided_slice %160 {offsets = [0, 384], sizes = [8, 128], strides = [1, 1]} : vector<8x512xf32> to vector<8x128xf32>
    %205 = arith.negf %204 : vector<8x128xf32>
    %206 = math.exp %205 : vector<8x128xf32>
    %cst_63 = arith.constant 1.000000e+00 : f32
    %207 = vector.broadcast %cst_63 : f32 to vector<8x128xf32>
    %208 = arith.addf %207, %206 : vector<8x128xf32>
    %209 = arith.divf %207, %208 : vector<8x128xf32>
    %210 = arith.mulf %201, %149 : vector<8x128xf32>
    %211 = arith.mulf %195, %203 : vector<8x128xf32>
    %212 = arith.addf %210, %211 : vector<8x128xf32>
    %213 = math.tanh %212 : vector<8x128xf32>
    %214 = arith.mulf %209, %213 : vector<8x128xf32>
    %215 = arith.truncf %214 : vector<8x128xf32> to vector<8x128xbf16>
    %c0_64 = arith.constant 0 : index
    %c0_65 = arith.constant 0 : index
    %216 = vector.load %arg5[%c0_64, %c0_65] : memref<128x512xbf16, #tpu.memory_space<vmem>>, vector<128x512xbf16>
    %cst_66 = arith.constant dense<0.000000e+00> : vector<8x512xf32>
    %217 = tpu.matmul %215, %216, %cst_66 {dimension_numbers = #tpu.dot_dimension_numbers<[1], [0], [0], [1], [0, 0, 1, 1], [], []>} : vector<8x128xbf16>, vector<128x512xbf16>, vector<8x512xf32> -> vector<8x512xf32>
    %c16_67 = arith.constant 16 : index
    %c0_68 = arith.constant 0 : index
    %218 = vector.load %arg11[%c16_67, %c0_68] : memref<64x128xf32, #tpu.memory_space<vmem>>, vector<8x128xf32>
    tpu.vector_store %arg11[%c16_67, %c0_68], %214 {strides = array<i32>} : memref<64x128xf32, #tpu.memory_space<vmem>>, vector<8x128xf32>,
    %219 = arith.truncf %189 : vector<8x128xf32> to vector<8x128xbf16>
    %c0_69 = arith.constant 0 : index
    %c0_70 = arith.constant 0 : index
    %220 = vector.load %arg4[%c0_69, %c0_70] : memref<128x512xbf16, #tpu.memory_space<vmem>>, vector<128x512xbf16>
    %cst_71 = arith.constant dense<0.000000e+00> : vector<8x512xf32>
    %221 = tpu.matmul %219, %220, %cst_71 {dimension_numbers = #tpu.dot_dimension_numbers<[1], [0], [0], [1], [0, 0, 1, 1], [], []>} : vector<8x128xbf16>, vector<128x512xbf16>, vector<8x512xf32> -> vector<8x512xf32>
    %222 = arith.addf %221, %217 : vector<8x512xf32>
    %223 = arith.addf %222, %9 : vector<8x512xf32>
    %c32 = arith.constant 32 : index
    %c0_72 = arith.constant 0 : index
    %224 = vector.load %arg10[%c32, %c0_72] : memref<64x512xf32, #tpu.memory_space<vmem>>, vector<8x512xf32>
    %c0_73 = arith.constant 0 : index
    %c0_74 = arith.constant 0 : index
    %225 = vector.load %arg2[%c0_73, %c0_74] : memref<128x512xbf16, #tpu.memory_space<vmem>>, vector<128x512xbf16>
    %cst_75 = arith.constant dense<0.000000e+00> : vector<8x512xf32>
    %226 = tpu.matmul %219, %225, %cst_75 {dimension_numbers = #tpu.dot_dimension_numbers<[1], [0], [0], [1], [0, 0, 1, 1], [], []>} : vector<8x128xbf16>, vector<128x512xbf16>, vector<8x512xf32> -> vector<8x512xf32>
    %227 = arith.addf %224, %226 : vector<8x512xf32>
    %228 = vector.extract_strided_slice %227 {offsets = [0, 0], sizes = [8, 128], strides = [1, 1]} : vector<8x512xf32> to vector<8x128xf32>
    %229 = arith.negf %228 : vector<8x128xf32>
    %230 = math.exp %229 : vector<8x128xf32>
    %cst_76 = arith.constant 1.000000e+00 : f32
    %231 = vector.broadcast %cst_76 : f32 to vector<8x128xf32>
    %232 = arith.addf %231, %230 : vector<8x128xf32>
    %233 = arith.divf %231, %232 : vector<8x128xf32>
    %234 = vector.extract_strided_slice %227 {offsets = [0, 128], sizes = [8, 128], strides = [1, 1]} : vector<8x512xf32> to vector<8x128xf32>
    %235 = arith.negf %234 : vector<8x128xf32>
    %236 = math.exp %235 : vector<8x128xf32>
    %cst_77 = arith.constant 1.000000e+00 : f32
    %237 = vector.broadcast %cst_77 : f32 to vector<8x128xf32>
    %238 = arith.addf %237, %236 : vector<8x128xf32>
    %239 = arith.divf %237, %238 : vector<8x128xf32>
    %240 = vector.extract_strided_slice %227 {offsets = [0, 256], sizes = [8, 128], strides = [1, 1]} : vector<8x512xf32> to vector<8x128xf32>
    %241 = math.tanh %240 : vector<8x128xf32>
    %242 = vector.extract_strided_slice %227 {offsets = [0, 384], sizes = [8, 128], strides = [1, 1]} : vector<8x512xf32> to vector<8x128xf32>
    %243 = arith.negf %242 : vector<8x128xf32>
    %244 = math.exp %243 : vector<8x128xf32>
    %cst_78 = arith.constant 1.000000e+00 : f32
    %245 = vector.broadcast %cst_78 : f32 to vector<8x128xf32>
    %246 = arith.addf %245, %244 : vector<8x128xf32>
    %247 = arith.divf %245, %246 : vector<8x128xf32>
    %248 = arith.mulf %239, %187 : vector<8x128xf32>
    %249 = arith.mulf %233, %241 : vector<8x128xf32>
    %250 = arith.addf %248, %249 : vector<8x128xf32>
    %251 = math.tanh %250 : vector<8x128xf32>
    %252 = arith.mulf %247, %251 : vector<8x128xf32>
    %253 = vector.extract_strided_slice %223 {offsets = [0, 0], sizes = [8, 128], strides = [1, 1]} : vector<8x512xf32> to vector<8x128xf32>
    %254 = arith.negf %253 : vector<8x128xf32>
    %255 = math.exp %254 : vector<8x128xf32>
    %cst_79 = arith.constant 1.000000e+00 : f32
    %256 = vector.broadcast %cst_79 : f32 to vector<8x128xf32>
    %257 = arith.addf %256, %255 : vector<8x128xf32>
    %258 = arith.divf %256, %257 : vector<8x128xf32>
    %259 = vector.extract_strided_slice %223 {offsets = [0, 128], sizes = [8, 128], strides = [1, 1]} : vector<8x512xf32> to vector<8x128xf32>
    %260 = arith.negf %259 : vector<8x128xf32>
    %261 = math.exp %260 : vector<8x128xf32>
    %cst_80 = arith.constant 1.000000e+00 : f32
    %262 = vector.broadcast %cst_80 : f32 to vector<8x128xf32>
    %263 = arith.addf %262, %261 : vector<8x128xf32>
    %264 = arith.divf %262, %263 : vector<8x128xf32>
    %265 = vector.extract_strided_slice %223 {offsets = [0, 256], sizes = [8, 128], strides = [1, 1]} : vector<8x512xf32> to vector<8x128xf32>
    %266 = math.tanh %265 : vector<8x128xf32>
    %267 = vector.extract_strided_slice %223 {offsets = [0, 384], sizes = [8, 128], strides = [1, 1]} : vector<8x512xf32> to vector<8x128xf32>
    %268 = arith.negf %267 : vector<8x128xf32>
    %269 = math.exp %268 : vector<8x128xf32>
    %cst_81 = arith.constant 1.000000e+00 : f32
    %270 = vector.broadcast %cst_81 : f32 to vector<8x128xf32>
    %271 = arith.addf %270, %269 : vector<8x128xf32>
    %272 = arith.divf %270, %271 : vector<8x128xf32>
    %273 = arith.mulf %264, %212 : vector<8x128xf32>
    %274 = arith.mulf %258, %266 : vector<8x128xf32>
    %275 = arith.addf %273, %274 : vector<8x128xf32>
    %276 = math.tanh %275 : vector<8x128xf32>
    %277 = arith.mulf %272, %276 : vector<8x128xf32>
    %278 = arith.truncf %277 : vector<8x128xf32> to vector<8x128xbf16>
    %c0_82 = arith.constant 0 : index
    %c0_83 = arith.constant 0 : index
    %279 = vector.load %arg5[%c0_82, %c0_83] : memref<128x512xbf16, #tpu.memory_space<vmem>>, vector<128x512xbf16>
    %cst_84 = arith.constant dense<0.000000e+00> : vector<8x512xf32>
    %280 = tpu.matmul %278, %279, %cst_84 {dimension_numbers = #tpu.dot_dimension_numbers<[1], [0], [0], [1], [0, 0, 1, 1], [], []>} : vector<8x128xbf16>, vector<128x512xbf16>, vector<8x512xf32> -> vector<8x512xf32>
    %c24_85 = arith.constant 24 : index
    %c0_86 = arith.constant 0 : index
    %281 = vector.load %arg11[%c24_85, %c0_86] : memref<64x128xf32, #tpu.memory_space<vmem>>, vector<8x128xf32>
    tpu.vector_store %arg11[%c24_85, %c0_86], %277 {strides = array<i32>} : memref<64x128xf32, #tpu.memory_space<vmem>>, vector<8x128xf32>,
    %282 = arith.truncf %252 : vector<8x128xf32> to vector<8x128xbf16>
    %c0_87 = arith.constant 0 : index
    %c0_88 = arith.constant 0 : index
    %283 = vector.load %arg4[%c0_87, %c0_88] : memref<128x512xbf16, #tpu.memory_space<vmem>>, vector<128x512xbf16>
    %cst_89 = arith.constant dense<0.000000e+00> : vector<8x512xf32>
    %284 = tpu.matmul %282, %283, %cst_89 {dimension_numbers = #tpu.dot_dimension_numbers<[1], [0], [0], [1], [0, 0, 1, 1], [], []>} : vector<8x128xbf16>, vector<128x512xbf16>, vector<8x512xf32> -> vector<8x512xf32>
    %285 = arith.addf %284, %280 : vector<8x512xf32>
    %286 = arith.addf %285, %9 : vector<8x512xf32>
    %c40 = arith.constant 40 : index
    %c0_90 = arith.constant 0 : index
    %287 = vector.load %arg10[%c40, %c0_90] : memref<64x512xf32, #tpu.memory_space<vmem>>, vector<8x512xf32>
    %c0_91 = arith.constant 0 : index
    %c0_92 = arith.constant 0 : index
    %288 = vector.load %arg2[%c0_91, %c0_92] : memref<128x512xbf16, #tpu.memory_space<vmem>>, vector<128x512xbf16>
    %cst_93 = arith.constant dense<0.000000e+00> : vector<8x512xf32>
    %289 = tpu.matmul %282, %288, %cst_93 {dimension_numbers = #tpu.dot_dimension_numbers<[1], [0], [0], [1], [0, 0, 1, 1], [], []>} : vector<8x128xbf16>, vector<128x512xbf16>, vector<8x512xf32> -> vector<8x512xf32>
    %290 = arith.addf %287, %289 : vector<8x512xf32>
    %291 = vector.extract_strided_slice %290 {offsets = [0, 0], sizes = [8, 128], strides = [1, 1]} : vector<8x512xf32> to vector<8x128xf32>
    %292 = arith.negf %291 : vector<8x128xf32>
    %293 = math.exp %292 : vector<8x128xf32>
    %cst_94 = arith.constant 1.000000e+00 : f32
    %294 = vector.broadcast %cst_94 : f32 to vector<8x128xf32>
    %295 = arith.addf %294, %293 : vector<8x128xf32>
    %296 = arith.divf %294, %295 : vector<8x128xf32>
    %297 = vector.extract_strided_slice %290 {offsets = [0, 128], sizes = [8, 128], strides = [1, 1]} : vector<8x512xf32> to vector<8x128xf32>
    %298 = arith.negf %297 : vector<8x128xf32>
    %299 = math.exp %298 : vector<8x128xf32>
    %cst_95 = arith.constant 1.000000e+00 : f32
    %300 = vector.broadcast %cst_95 : f32 to vector<8x128xf32>
    %301 = arith.addf %300, %299 : vector<8x128xf32>
    %302 = arith.divf %300, %301 : vector<8x128xf32>
    %303 = vector.extract_strided_slice %290 {offsets = [0, 256], sizes = [8, 128], strides = [1, 1]} : vector<8x512xf32> to vector<8x128xf32>
    %304 = math.tanh %303 : vector<8x128xf32>
    %305 = vector.extract_strided_slice %290 {offsets = [0, 384], sizes = [8, 128], strides = [1, 1]} : vector<8x512xf32> to vector<8x128xf32>
    %306 = arith.negf %305 : vector<8x128xf32>
    %307 = math.exp %306 : vector<8x128xf32>
    %cst_96 = arith.constant 1.000000e+00 : f32
    %308 = vector.broadcast %cst_96 : f32 to vector<8x128xf32>
    %309 = arith.addf %308, %307 : vector<8x128xf32>
    %310 = arith.divf %308, %309 : vector<8x128xf32>
    %311 = arith.mulf %302, %250 : vector<8x128xf32>
    %312 = arith.mulf %296, %304 : vector<8x128xf32>
    %313 = arith.addf %311, %312 : vector<8x128xf32>
    %314 = math.tanh %313 : vector<8x128xf32>
    %315 = arith.mulf %310, %314 : vector<8x128xf32>
    %316 = vector.extract_strided_slice %286 {offsets = [0, 0], sizes = [8, 128], strides = [1, 1]} : vector<8x512xf32> to vector<8x128xf32>
    %317 = arith.negf %316 : vector<8x128xf32>
    %318 = math.exp %317 : vector<8x128xf32>
    %cst_97 = arith.constant 1.000000e+00 : f32
    %319 = vector.broadcast %cst_97 : f32 to vector<8x128xf32>
    %320 = arith.addf %319, %318 : vector<8x128xf32>
    %321 = arith.divf %319, %320 : vector<8x128xf32>
    %322 = vector.extract_strided_slice %286 {offsets = [0, 128], sizes = [8, 128], strides = [1, 1]} : vector<8x512xf32> to vector<8x128xf32>
    %323 = arith.negf %322 : vector<8x128xf32>
    %324 = math.exp %323 : vector<8x128xf32>
    %cst_98 = arith.constant 1.000000e+00 : f32
    %325 = vector.broadcast %cst_98 : f32 to vector<8x128xf32>
    %326 = arith.addf %325, %324 : vector<8x128xf32>
    %327 = arith.divf %325, %326 : vector<8x128xf32>
    %328 = vector.extract_strided_slice %286 {offsets = [0, 256], sizes = [8, 128], strides = [1, 1]} : vector<8x512xf32> to vector<8x128xf32>
    %329 = math.tanh %328 : vector<8x128xf32>
    %330 = vector.extract_strided_slice %286 {offsets = [0, 384], sizes = [8, 128], strides = [1, 1]} : vector<8x512xf32> to vector<8x128xf32>
    %331 = arith.negf %330 : vector<8x128xf32>
    %332 = math.exp %331 : vector<8x128xf32>
    %cst_99 = arith.constant 1.000000e+00 : f32
    %333 = vector.broadcast %cst_99 : f32 to vector<8x128xf32>
    %334 = arith.addf %333, %332 : vector<8x128xf32>
    %335 = arith.divf %333, %334 : vector<8x128xf32>
    %336 = arith.mulf %327, %275 : vector<8x128xf32>
    %337 = arith.mulf %321, %329 : vector<8x128xf32>
    %338 = arith.addf %336, %337 : vector<8x128xf32>
    %339 = math.tanh %338 : vector<8x128xf32>
    %340 = arith.mulf %335, %339 : vector<8x128xf32>
    %341 = arith.truncf %340 : vector<8x128xf32> to vector<8x128xbf16>
    %c0_100 = arith.constant 0 : index
    %c0_101 = arith.constant 0 : index
    %342 = vector.load %arg5[%c0_100, %c0_101] : memref<128x512xbf16, #tpu.memory_space<vmem>>, vector<128x512xbf16>
    %cst_102 = arith.constant dense<0.000000e+00> : vector<8x512xf32>
    %343 = tpu.matmul %341, %342, %cst_102 {dimension_numbers = #tpu.dot_dimension_numbers<[1], [0], [0], [1], [0, 0, 1, 1], [], []>} : vector<8x128xbf16>, vector<128x512xbf16>, vector<8x512xf32> -> vector<8x512xf32>
    %c32_103 = arith.constant 32 : index
    %c0_104 = arith.constant 0 : index
    %344 = vector.load %arg11[%c32_103, %c0_104] : memref<64x128xf32, #tpu.memory_space<vmem>>, vector<8x128xf32>
    tpu.vector_store %arg11[%c32_103, %c0_104], %340 {strides = array<i32>} : memref<64x128xf32, #tpu.memory_space<vmem>>, vector<8x128xf32>,
    %345 = arith.truncf %315 : vector<8x128xf32> to vector<8x128xbf16>
    %c0_105 = arith.constant 0 : index
    %c0_106 = arith.constant 0 : index
    %346 = vector.load %arg4[%c0_105, %c0_106] : memref<128x512xbf16, #tpu.memory_space<vmem>>, vector<128x512xbf16>
    %cst_107 = arith.constant dense<0.000000e+00> : vector<8x512xf32>
    %347 = tpu.matmul %345, %346, %cst_107 {dimension_numbers = #tpu.dot_dimension_numbers<[1], [0], [0], [1], [0, 0, 1, 1], [], []>} : vector<8x128xbf16>, vector<128x512xbf16>, vector<8x512xf32> -> vector<8x512xf32>
    %348 = arith.addf %347, %343 : vector<8x512xf32>
    %349 = arith.addf %348, %9 : vector<8x512xf32>
    %c48 = arith.constant 48 : index
    %c0_108 = arith.constant 0 : index
    %350 = vector.load %arg10[%c48, %c0_108] : memref<64x512xf32, #tpu.memory_space<vmem>>, vector<8x512xf32>
    %c0_109 = arith.constant 0 : index
    %c0_110 = arith.constant 0 : index
    %351 = vector.load %arg2[%c0_109, %c0_110] : memref<128x512xbf16, #tpu.memory_space<vmem>>, vector<128x512xbf16>
    %cst_111 = arith.constant dense<0.000000e+00> : vector<8x512xf32>
    %352 = tpu.matmul %345, %351, %cst_111 {dimension_numbers = #tpu.dot_dimension_numbers<[1], [0], [0], [1], [0, 0, 1, 1], [], []>} : vector<8x128xbf16>, vector<128x512xbf16>, vector<8x512xf32> -> vector<8x512xf32>
    %353 = arith.addf %350, %352 : vector<8x512xf32>
    %354 = vector.extract_strided_slice %353 {offsets = [0, 0], sizes = [8, 128], strides = [1, 1]} : vector<8x512xf32> to vector<8x128xf32>
    %355 = arith.negf %354 : vector<8x128xf32>
    %356 = math.exp %355 : vector<8x128xf32>
    %cst_112 = arith.constant 1.000000e+00 : f32
    %357 = vector.broadcast %cst_112 : f32 to vector<8x128xf32>
    %358 = arith.addf %357, %356 : vector<8x128xf32>
    %359 = arith.divf %357, %358 : vector<8x128xf32>
    %360 = vector.extract_strided_slice %353 {offsets = [0, 128], sizes = [8, 128], strides = [1, 1]} : vector<8x512xf32> to vector<8x128xf32>
    %361 = arith.negf %360 : vector<8x128xf32>
    %362 = math.exp %361 : vector<8x128xf32>
    %cst_113 = arith.constant 1.000000e+00 : f32
    %363 = vector.broadcast %cst_113 : f32 to vector<8x128xf32>
    %364 = arith.addf %363, %362 : vector<8x128xf32>
    %365 = arith.divf %363, %364 : vector<8x128xf32>
    %366 = vector.extract_strided_slice %353 {offsets = [0, 256], sizes = [8, 128], strides = [1, 1]} : vector<8x512xf32> to vector<8x128xf32>
    %367 = math.tanh %366 : vector<8x128xf32>
    %368 = vector.extract_strided_slice %353 {offsets = [0, 384], sizes = [8, 128], strides = [1, 1]} : vector<8x512xf32> to vector<8x128xf32>
    %369 = arith.negf %368 : vector<8x128xf32>
    %370 = math.exp %369 : vector<8x128xf32>
    %cst_114 = arith.constant 1.000000e+00 : f32
    %371 = vector.broadcast %cst_114 : f32 to vector<8x128xf32>
    %372 = arith.addf %371, %370 : vector<8x128xf32>
    %373 = arith.divf %371, %372 : vector<8x128xf32>
    %374 = arith.mulf %365, %313 : vector<8x128xf32>
    %375 = arith.mulf %359, %367 : vector<8x128xf32>
    %376 = arith.addf %374, %375 : vector<8x128xf32>
    %377 = math.tanh %376 : vector<8x128xf32>
    %378 = arith.mulf %373, %377 : vector<8x128xf32>
    %379 = vector.extract_strided_slice %349 {offsets = [0, 0], sizes = [8, 128], strides = [1, 1]} : vector<8x512xf32> to vector<8x128xf32>
    %380 = arith.negf %379 : vector<8x128xf32>
    %381 = math.exp %380 : vector<8x128xf32>
    %cst_115 = arith.constant 1.000000e+00 : f32
    %382 = vector.broadcast %cst_115 : f32 to vector<8x128xf32>
    %383 = arith.addf %382, %381 : vector<8x128xf32>
    %384 = arith.divf %382, %383 : vector<8x128xf32>
    %385 = vector.extract_strided_slice %349 {offsets = [0, 128], sizes = [8, 128], strides = [1, 1]} : vector<8x512xf32> to vector<8x128xf32>
    %386 = arith.negf %385 : vector<8x128xf32>
    %387 = math.exp %386 : vector<8x128xf32>
    %cst_116 = arith.constant 1.000000e+00 : f32
    %388 = vector.broadcast %cst_116 : f32 to vector<8x128xf32>
    %389 = arith.addf %388, %387 : vector<8x128xf32>
    %390 = arith.divf %388, %389 : vector<8x128xf32>
    %391 = vector.extract_strided_slice %349 {offsets = [0, 256], sizes = [8, 128], strides = [1, 1]} : vector<8x512xf32> to vector<8x128xf32>
    %392 = math.tanh %391 : vector<8x128xf32>
    %393 = vector.extract_strided_slice %349 {offsets = [0, 384], sizes = [8, 128], strides = [1, 1]} : vector<8x512xf32> to vector<8x128xf32>
    %394 = arith.negf %393 : vector<8x128xf32>
    %395 = math.exp %394 : vector<8x128xf32>
    %cst_117 = arith.constant 1.000000e+00 : f32
    %396 = vector.broadcast %cst_117 : f32 to vector<8x128xf32>
    %397 = arith.addf %396, %395 : vector<8x128xf32>
    %398 = arith.divf %396, %397 : vector<8x128xf32>
    %399 = arith.mulf %390, %338 : vector<8x128xf32>
    %400 = arith.mulf %384, %392 : vector<8x128xf32>
    %401 = arith.addf %399, %400 : vector<8x128xf32>
    %402 = math.tanh %401 : vector<8x128xf32>
    %403 = arith.mulf %398, %402 : vector<8x128xf32>
    %404 = arith.truncf %403 : vector<8x128xf32> to vector<8x128xbf16>
    %c0_118 = arith.constant 0 : index
    %c0_119 = arith.constant 0 : index
    %405 = vector.load %arg5[%c0_118, %c0_119] : memref<128x512xbf16, #tpu.memory_space<vmem>>, vector<128x512xbf16>
    %cst_120 = arith.constant dense<0.000000e+00> : vector<8x512xf32>
    %406 = tpu.matmul %404, %405, %cst_120 {dimension_numbers = #tpu.dot_dimension_numbers<[1], [0], [0], [1], [0, 0, 1, 1], [], []>} : vector<8x128xbf16>, vector<128x512xbf16>, vector<8x512xf32> -> vector<8x512xf32>
    %c40_121 = arith.constant 40 : index
    %c0_122 = arith.constant 0 : index
    %407 = vector.load %arg11[%c40_121, %c0_122] : memref<64x128xf32, #tpu.memory_space<vmem>>, vector<8x128xf32>
    tpu.vector_store %arg11[%c40_121, %c0_122], %403 {strides = array<i32>} : memref<64x128xf32, #tpu.memory_space<vmem>>, vector<8x128xf32>,
    %408 = arith.truncf %378 : vector<8x128xf32> to vector<8x128xbf16>
    %c0_123 = arith.constant 0 : index
    %c0_124 = arith.constant 0 : index
    %409 = vector.load %arg4[%c0_123, %c0_124] : memref<128x512xbf16, #tpu.memory_space<vmem>>, vector<128x512xbf16>
    %cst_125 = arith.constant dense<0.000000e+00> : vector<8x512xf32>
    %410 = tpu.matmul %408, %409, %cst_125 {dimension_numbers = #tpu.dot_dimension_numbers<[1], [0], [0], [1], [0, 0, 1, 1], [], []>} : vector<8x128xbf16>, vector<128x512xbf16>, vector<8x512xf32> -> vector<8x512xf32>
    %411 = arith.addf %410, %406 : vector<8x512xf32>
    %412 = arith.addf %411, %9 : vector<8x512xf32>
    %c56 = arith.constant 56 : index
    %c0_126 = arith.constant 0 : index
    %413 = vector.load %arg10[%c56, %c0_126] : memref<64x512xf32, #tpu.memory_space<vmem>>, vector<8x512xf32>
    %c0_127 = arith.constant 0 : index
    %c0_128 = arith.constant 0 : index
    %414 = vector.load %arg2[%c0_127, %c0_128] : memref<128x512xbf16, #tpu.memory_space<vmem>>, vector<128x512xbf16>
    %cst_129 = arith.constant dense<0.000000e+00> : vector<8x512xf32>
    %415 = tpu.matmul %408, %414, %cst_129 {dimension_numbers = #tpu.dot_dimension_numbers<[1], [0], [0], [1], [0, 0, 1, 1], [], []>} : vector<8x128xbf16>, vector<128x512xbf16>, vector<8x512xf32> -> vector<8x512xf32>
    %416 = arith.addf %413, %415 : vector<8x512xf32>
    %417 = vector.extract_strided_slice %416 {offsets = [0, 0], sizes = [8, 128], strides = [1, 1]} : vector<8x512xf32> to vector<8x128xf32>
    %418 = arith.negf %417 : vector<8x128xf32>
    %419 = math.exp %418 : vector<8x128xf32>
    %cst_130 = arith.constant 1.000000e+00 : f32
    %420 = vector.broadcast %cst_130 : f32 to vector<8x128xf32>
    %421 = arith.addf %420, %419 : vector<8x128xf32>
    %422 = arith.divf %420, %421 : vector<8x128xf32>
    %423 = vector.extract_strided_slice %416 {offsets = [0, 128], sizes = [8, 128], strides = [1, 1]} : vector<8x512xf32> to vector<8x128xf32>
    %424 = arith.negf %423 : vector<8x128xf32>
    %425 = math.exp %424 : vector<8x128xf32>
    %cst_131 = arith.constant 1.000000e+00 : f32
    %426 = vector.broadcast %cst_131 : f32 to vector<8x128xf32>
    %427 = arith.addf %426, %425 : vector<8x128xf32>
    %428 = arith.divf %426, %427 : vector<8x128xf32>
    %429 = vector.extract_strided_slice %416 {offsets = [0, 256], sizes = [8, 128], strides = [1, 1]} : vector<8x512xf32> to vector<8x128xf32>
    %430 = math.tanh %429 : vector<8x128xf32>
    %431 = vector.extract_strided_slice %416 {offsets = [0, 384], sizes = [8, 128], strides = [1, 1]} : vector<8x512xf32> to vector<8x128xf32>
    %432 = arith.negf %431 : vector<8x128xf32>
    %433 = math.exp %432 : vector<8x128xf32>
    %cst_132 = arith.constant 1.000000e+00 : f32
    %434 = vector.broadcast %cst_132 : f32 to vector<8x128xf32>
    %435 = arith.addf %434, %433 : vector<8x128xf32>
    %436 = arith.divf %434, %435 : vector<8x128xf32>
    %437 = arith.mulf %428, %376 : vector<8x128xf32>
    %438 = arith.mulf %422, %430 : vector<8x128xf32>
    %439 = arith.addf %437, %438 : vector<8x128xf32>
    %440 = math.tanh %439 : vector<8x128xf32>
    %441 = arith.mulf %436, %440 : vector<8x128xf32>
    %442 = vector.extract_strided_slice %412 {offsets = [0, 0], sizes = [8, 128], strides = [1, 1]} : vector<8x512xf32> to vector<8x128xf32>
    %443 = arith.negf %442 : vector<8x128xf32>
    %444 = math.exp %443 : vector<8x128xf32>
    %cst_133 = arith.constant 1.000000e+00 : f32
    %445 = vector.broadcast %cst_133 : f32 to vector<8x128xf32>
    %446 = arith.addf %445, %444 : vector<8x128xf32>
    %447 = arith.divf %445, %446 : vector<8x128xf32>
    %448 = vector.extract_strided_slice %412 {offsets = [0, 128], sizes = [8, 128], strides = [1, 1]} : vector<8x512xf32> to vector<8x128xf32>
    %449 = arith.negf %448 : vector<8x128xf32>
    %450 = math.exp %449 : vector<8x128xf32>
    %cst_134 = arith.constant 1.000000e+00 : f32
    %451 = vector.broadcast %cst_134 : f32 to vector<8x128xf32>
    %452 = arith.addf %451, %450 : vector<8x128xf32>
    %453 = arith.divf %451, %452 : vector<8x128xf32>
    %454 = vector.extract_strided_slice %412 {offsets = [0, 256], sizes = [8, 128], strides = [1, 1]} : vector<8x512xf32> to vector<8x128xf32>
    %455 = math.tanh %454 : vector<8x128xf32>
    %456 = vector.extract_strided_slice %412 {offsets = [0, 384], sizes = [8, 128], strides = [1, 1]} : vector<8x512xf32> to vector<8x128xf32>
    %457 = arith.negf %456 : vector<8x128xf32>
    %458 = math.exp %457 : vector<8x128xf32>
    %cst_135 = arith.constant 1.000000e+00 : f32
    %459 = vector.broadcast %cst_135 : f32 to vector<8x128xf32>
    %460 = arith.addf %459, %458 : vector<8x128xf32>
    %461 = arith.divf %459, %460 : vector<8x128xf32>
    %462 = arith.mulf %453, %401 : vector<8x128xf32>
    %463 = arith.mulf %447, %455 : vector<8x128xf32>
    %464 = arith.addf %462, %463 : vector<8x128xf32>
    %465 = math.tanh %464 : vector<8x128xf32>
    %466 = arith.mulf %461, %465 : vector<8x128xf32>
    %467 = arith.truncf %466 : vector<8x128xf32> to vector<8x128xbf16>
    %c0_136 = arith.constant 0 : index
    %c0_137 = arith.constant 0 : index
    %468 = vector.load %arg5[%c0_136, %c0_137] : memref<128x512xbf16, #tpu.memory_space<vmem>>, vector<128x512xbf16>
    %cst_138 = arith.constant dense<0.000000e+00> : vector<8x512xf32>
    %469 = tpu.matmul %467, %468, %cst_138 {dimension_numbers = #tpu.dot_dimension_numbers<[1], [0], [0], [1], [0, 0, 1, 1], [], []>} : vector<8x128xbf16>, vector<128x512xbf16>, vector<8x512xf32> -> vector<8x512xf32>
    %c48_139 = arith.constant 48 : index
    %c0_140 = arith.constant 0 : index
    %470 = vector.load %arg11[%c48_139, %c0_140] : memref<64x128xf32, #tpu.memory_space<vmem>>, vector<8x128xf32>
    tpu.vector_store %arg11[%c48_139, %c0_140], %466 {strides = array<i32>} : memref<64x128xf32, #tpu.memory_space<vmem>>, vector<8x128xf32>,
    %471 = arith.truncf %441 : vector<8x128xf32> to vector<8x128xbf16>
    %c0_141 = arith.constant 0 : index
    %c0_142 = arith.constant 0 : index
    %472 = vector.load %arg4[%c0_141, %c0_142] : memref<128x512xbf16, #tpu.memory_space<vmem>>, vector<128x512xbf16>
    %cst_143 = arith.constant dense<0.000000e+00> : vector<8x512xf32>
    %473 = tpu.matmul %471, %472, %cst_143 {dimension_numbers = #tpu.dot_dimension_numbers<[1], [0], [0], [1], [0, 0, 1, 1], [], []>} : vector<8x128xbf16>, vector<128x512xbf16>, vector<8x512xf32> -> vector<8x512xf32>
    %474 = arith.addf %473, %469 : vector<8x512xf32>
    %475 = arith.addf %474, %9 : vector<8x512xf32>
    %476 = vector.extract_strided_slice %475 {offsets = [0, 0], sizes = [8, 128], strides = [1, 1]} : vector<8x512xf32> to vector<8x128xf32>
    %477 = arith.negf %476 : vector<8x128xf32>
    %478 = math.exp %477 : vector<8x128xf32>
    %cst_144 = arith.constant 1.000000e+00 : f32
    %479 = vector.broadcast %cst_144 : f32 to vector<8x128xf32>
    %480 = arith.addf %479, %478 : vector<8x128xf32>
    %481 = arith.divf %479, %480 : vector<8x128xf32>
    %482 = vector.extract_strided_slice %475 {offsets = [0, 128], sizes = [8, 128], strides = [1, 1]} : vector<8x512xf32> to vector<8x128xf32>
    %483 = arith.negf %482 : vector<8x128xf32>
    %484 = math.exp %483 : vector<8x128xf32>
    %cst_145 = arith.constant 1.000000e+00 : f32
    %485 = vector.broadcast %cst_145 : f32 to vector<8x128xf32>
    %486 = arith.addf %485, %484 : vector<8x128xf32>
    %487 = arith.divf %485, %486 : vector<8x128xf32>
    %488 = vector.extract_strided_slice %475 {offsets = [0, 256], sizes = [8, 128], strides = [1, 1]} : vector<8x512xf32> to vector<8x128xf32>
    %489 = math.tanh %488 : vector<8x128xf32>
    %490 = vector.extract_strided_slice %475 {offsets = [0, 384], sizes = [8, 128], strides = [1, 1]} : vector<8x512xf32> to vector<8x128xf32>
    %491 = arith.negf %490 : vector<8x128xf32>
    %492 = math.exp %491 : vector<8x128xf32>
    %cst_146 = arith.constant 1.000000e+00 : f32
    %493 = vector.broadcast %cst_146 : f32 to vector<8x128xf32>
    %494 = arith.addf %493, %492 : vector<8x128xf32>
    %495 = arith.divf %493, %494 : vector<8x128xf32>
    %496 = arith.mulf %487, %464 : vector<8x128xf32>
    %497 = arith.mulf %481, %489 : vector<8x128xf32>
    %498 = arith.addf %496, %497 : vector<8x128xf32>
    %499 = math.tanh %498 : vector<8x128xf32>
    %500 = arith.mulf %495, %499 : vector<8x128xf32>
    %c56_147 = arith.constant 56 : index
    %c0_148 = arith.constant 0 : index
    %501 = vector.load %arg11[%c56_147, %c0_148] : memref<64x128xf32, #tpu.memory_space<vmem>>, vector<8x128xf32>
    tpu.vector_store %arg11[%c56_147, %c0_148], %500 {strides = array<i32>} : memref<64x128xf32, #tpu.memory_space<vmem>>, vector<8x128xf32>,
    %c0_149 = arith.constant 0 : index
    %c0_150 = arith.constant 0 : index
    %502 = vector.load %arg11[%c0_149, %c0_150] : memref<64x128xf32, #tpu.memory_space<vmem>>, vector<64x128xf32>
    %c0_151 = arith.constant 0 : index
    %c0_152 = arith.constant 0 : index
    %503 = vector.load %arg7[%c0_151, %c0_152] : memref<1x128xf32, #tpu.memory_space<vmem>>, vector<1x128xf32>
    %504 = vector.broadcast %503 : vector<1x128xf32> to vector<64x128xf32>
    %505 = arith.mulf %502, %504 : vector<64x128xf32>
    %cst_153 = arith.constant dense<0.000000e+00> : vector<64xf32>
    %506 = vector.multi_reduction <add>, %505, %cst_153 [1] : vector<64x128xf32> to vector<64xf32>
    %507 = vector.shape_cast %506 : vector<64xf32> to vector<64x1xf32>
    %c0_154 = arith.constant 0 : index
    %c0_155 = arith.constant 0 : index
    %508 = vector.load %arg8[%c0_154, %c0_155] : memref<1x1xf32, #tpu.memory_space<vmem>>, vector<1x1xf32>
    %509 = vector.broadcast %508 : vector<1x1xf32> to vector<64x1xf32>
    %510 = arith.addf %507, %509 : vector<64x1xf32>
    %c0_156 = arith.constant 0 : index
    %c0_157 = arith.constant 0 : index
    %511 = vector.load %arg9[%c0_156, %c0_157] : memref<64x1xf32, #tpu.memory_space<vmem>>, vector<64x1xf32>
    tpu.vector_store %arg9[%c0_156, %c0_157], %510 {strides = array<i32>} : memref<64x1xf32, #tpu.memory_space<vmem>>, vector<64x1xf32>,
    return
  }
}

</mosaic_0001>

<bundles_post_ra>
// kernel: tpu_custom_call.1
= control target key start
LH: loop header
LB: loop body
LE: loop exit
PB: predicated region body
PF: predicated region fallthrough
CT: control target
= control target key end

     0   :  { %s10450_s0 = inlined_call_operand.vmem [shape: bf16[64,16], index: 0, kind: input, shape index: {}]   ;;  %s10451_s1 = inlined_call_operand.vmem [shape: bf16[16,512], index: 1, kind: input, shape index: {}]   ;;  %s10452_s2 = inlined_call_operand.hbm [shape: bf16[128,512], index: 2, kind: input, shape index: {}]   ;;  %s10453_s3 = inlined_call_operand.vmem [shape: f32[1,512], index: 3, kind: input, shape index: {}]   ;;  %s10454_s4 = inlined_call_operand.hbm [shape: bf16[128,512], index: 4, kind: input, shape index: {}]   ;;  %s10455_s5 = inlined_call_operand.hbm [shape: bf16[128,512], index: 5, kind: input, shape index: {}]   ;;  %s10456_s6 = inlined_call_operand.vmem [shape: f32[1,512], index: 6, kind: input, shape index: {}]   ;;  %s10457_s7 = inlined_call_operand.vmem [shape: f32[1,128], index: 7, kind: input, shape index: {}]   ;;  %s10458_s8 = inlined_call_operand.<no memory space> [shape: f32[1,1], index: 8, kind: input, shape index: {}]   ;;  %s10459_s9 = inlined_call_operand.vmem [shape: f32[64,1], index: 9, kind: output, shape index: {}]  }
   0x1   :  { %v14_v0 = vstv %s10458_s8 }
   0x2   :  { %15 = vst [vmem:[#allocation4] sm:$0x1] %v14_v0 }
   0x3   :  { %16 = vsyncpa [#allocation6], 0 }
   0x4   :  { %17 = vsyncpa [#allocation8], 0  ;;  %s8633_s11 = smov [#allocation7]   ;;  %s8634_s13 = smov [#allocation5]  }
   0x5   :  { %s41_s12 = sshll.u32 %s8633_s11, 4  ;;  %s27_s14 = sshll.u32 %s8634_s13, 4  ;;  %s42_s12 = int_to_ptr.vmem [resolvable:$true] %s41_s12  ;;  %s8692_s14 = int_to_ptr.vmem [resolvable:$true] %s27_s14 }
   0x6   :  { %s8563_s17 = scalar_lea.hbm %s10454_s4, 4096 }
   0x7   :  { %p8564_p0 = scmp.ne.s32.totalorder %s10454_s4, %s8563_s17  ;;  %p8567_p1 = scmp.lt.u32.totalorder %s8563_s17, %s10454_s4 }
   0x9   :  { %p8569_p2 = pnand %p8567_p1, %p8564_p0 }
   0xb   :  { %8572 = shalt.err (!%p8569_p2)
}
   0xc   :  { %s8573_s21 = scalar_lea.vmem %s42_s12, 4096  ;;  %p8578_p4 = scmp.lt.s32.totalorder %s42_s12, %s42_s12 }
   0xd   :  { %p8574_p3 = scmp.ne.s32.totalorder %s42_s12, %s8573_s21  ;;  %p8579_p5 = scmp.lt.s32.totalorder %s8573_s21, %s8573_s21 }
   0xf   :  { %p8580_p6 = por %p8579_p5, %p8578_p4 }
  0x11   :  { %p8581_p7 = pnand %p8580_p6, %p8574_p3 }
  0x13   :  { %8584 = shalt.err (!%p8581_p7)
}
  0x14   :  { %s8635_s22 = smov 256   ;;  %s8636_s23 = smov 16  }
  0x15   :  { %47 = dma.hbm_to_vmem [thread:$0]  %s10454_s4, 4096, %s42_s12, [#allocation8], %s8635_s22, %s8635_s22, %s8636_s23  }
  0x16   :  { %s8585_s28 = scalar_lea.hbm %s10452_s2, 4096 }
  0x17   :  { %p8586_p8 = scmp.ne.s32.totalorder %s10452_s2, %s8585_s28  ;;  %p8589_p9 = scmp.lt.u32.totalorder %s8585_s28, %s10452_s2 }
  0x19   :  { %p8591_p10 = pnand %p8589_p9, %p8586_p8 }
  0x1b   :  { %8594 = shalt.err (!%p8591_p10)
}
  0x1c   :  { %s8595_s13 = scalar_lea.vmem %s8692_s14, 4096  ;;  %p8600_p12 = scmp.lt.s32.totalorder %s8692_s14, %s8692_s14 }
  0x1d   :  { %p8596_p11 = scmp.ne.s32.totalorder %s8692_s14, %s8595_s13  ;;  %p8601_p13 = scmp.lt.s32.totalorder %s8595_s13, %s8595_s13 }
  0x1f   :  { %p8602_p0 = por %p8601_p13, %p8600_p12 }
  0x21   :  { %p8603_p1 = pnand %p8602_p0, %p8596_p11 }
  0x23   :  { %8606 = shalt.err (!%p8603_p1)
}
  0x24   :  { %33 = dma.hbm_to_vmem [thread:$0]  %s10452_s2, 4096, %s8692_s14, [#allocation6], %s8635_s22, %s8635_s22, %s8636_s23  }
  0x25   :  { %s8637_s15 = smov [#allocation9]   ;;  %s8607_s19 = scalar_lea.hbm %s10455_s5, 4096 }
  0x26   :  { %s53_s16 = sshll.u32 %s8637_s15, 4  ;;  %p8608_p2 = scmp.ne.s32.totalorder %s10455_s5, %s8607_s19  ;;  %s54_s16 = int_to_ptr.vmem [resolvable:$true] %s53_s16 }
  0x27   :  { %p8611_p3 = scmp.lt.u32.totalorder %s8607_s19, %s10455_s5 }
  0x29   :  { %p8613_p4 = pnand %p8611_p3, %p8608_p2 }
  0x2b   :  { %8616 = shalt.err (!%p8613_p4)
}
  0x2c   :  { %s8617_s25 = scalar_lea.vmem %s54_s16, 4096  ;;  %p8622_p6 = scmp.lt.s32.totalorder %s54_s16, %s54_s16 }
  0x2d   :  { %p8618_p5 = scmp.ne.s32.totalorder %s54_s16, %s8617_s25  ;;  %p8623_p7 = scmp.lt.s32.totalorder %s8617_s25, %s8617_s25 }
  0x2f   :  { %p8624_p8 = por %p8623_p7, %p8622_p6 }
  0x31   :  { %p8625_p9 = pnand %p8624_p8, %p8618_p5 }
  0x33   :  { %8628 = shalt.err (!%p8625_p9)
}
  0x34   :  { %59 = dma.hbm_to_vmem [thread:$0]  %s10455_s5, 4096, %s54_s16, [#allocation8], %s8635_s22, %s8635_s22, %s8636_s23  }
  0x35   :  { %8629 = dma.done.wait [#allocation6], 4096  }
  0x36   :  { %8630 = vsyncadd [#allocation6], 4294963200 }
  0x37   :  { %8631 = dma.done.wait [#allocation8], 8192  }
  0x38   :  { %8632 = vsyncadd [#allocation8], 4294959104  ;;  %v10463_v1 = vmov 0   ;;  %v7721_v2 = vld [vmem:[%s10451_s1 + $0x4] ss:$16 sps:$4 sm:$0xff]   ;;  %vm150_vm0 = vcmask 130048   ;;  %v90_v44 = vlaneseq }
  0x39   :  { %195 = vmatprep.mubr.bf16.mxu0 %v10463_v1  ;;  %268 = vmatprep.mubr.bf16.mxu1 %v10463_v1  ;;  %v7723_v3 = vld [vmem:[%s10451_s1] ss:$16 sps:$4 sm:$0xff]   ;;  %v7725_v5 = vld [vmem:[%s10451_s1 + $0xc] ss:$16 sps:$4 sm:$0xff]   ;;  %v7727_v6 = vld [vmem:[%s10451_s1 + $0x8] ss:$16 sps:$4 sm:$0xff]  }
  0x3a   :  { %163 = vmatprep.subr.bf16.mxu0 %v7721_v2  ;;  %v7724_v4 = vld [vmem:[%s10450_s0] sm:$0xff]   ;;  %236 = vmatprep.subr.bf16.mxu1 %v7725_v5  ;;  %v8771_v10 = vld [vmem:[#allocation7 + $0x8] ss:$16 sps:$4 sm:$0xff]   ;;  %v7753_v24 = vld [vmem:[%s10450_s0 + $0x10] sm:$0xff]   ;;  %v8888_v45 = vshrl.u32 %v90_v44, 7  ;;  %vm6931_vm1 = vcmask 7168  }
  0x3b   :  { %164 = vmatpush1.bf16.msra.mxu0 %v7723_v3  ;;  %237 = vmatpush1.bf16.msra.mxu1 %v7727_v6  ;;  %v8765_v7 = vld [vmem:[#allocation7 + $0x4] ss:$16 sps:$4 sm:$0xff]   ;;  %v8767_v8 = vld [vmem:[#allocation7 + $0xc] ss:$16 sps:$4 sm:$0xff]   ;;  %v8769_v9 = vld [vmem:[#allocation7] ss:$16 sps:$4 sm:$0xff]  }
  0x3c   :  { %575 = vmatprep.subr.bf16.mxu0 %v8765_v7  ;;  %616 = vmatprep.subr.bf16.mxu1 %v8767_v8  ;;  %v8777_v11 = vld [vmem:[#allocation7 + $0x24] ss:$16 sps:$4 sm:$0xff]   ;;  %v8779_v12 = vld [vmem:[#allocation7 + $0x2c] ss:$16 sps:$4 sm:$0xff]   ;;  %v8781_v13 = vld [vmem:[#allocation7 + $0x20] ss:$16 sps:$4 sm:$0xff]  }
  0x3d   :  { %v8783_v14 = vld [vmem:[#allocation7 + $0x28] ss:$16 sps:$4 sm:$0xff]   ;;  %v8793_v16 = vld [vmem:[#allocation7 + $0x44] ss:$16 sps:$4 sm:$0xff]   ;;  %v8795_v17 = vld [vmem:[#allocation7 + $0x4c] ss:$16 sps:$4 sm:$0xff]  }
  0x3e   :  { %6954 = vmatmul.mubr.msk.bf16.vlgmr.msra.gmra.mrb[0].mxu0 %vm150_vm0, %v7724_v4  ;;  %6958 = vmatmul.mubr.msk.bf16.vlgmr.msra.gmra.mrb[0].mxu1 %vm150_vm0, %v7724_v4  ;;  %v7740_v15 = vld [vmem:[%s10450_s0 + $0x8] sm:$0xff]   ;;  %v8798_v18 = vld [vmem:[#allocation7 + $0x40] ss:$16 sps:$4 sm:$0xff]   ;;  %v7766_v33 = vld [vmem:[%s10450_s0 + $0x18] sm:$0xff]   ;;  %v10462_v46 = vsub.s32 0, %v8888_v45  ;;  %v10461_v49 = vsub.s32 3, %v8888_v45 }
  0x3f   :  { %205 = vmatprep.mubr.bf16.mxu0 %v10463_v1  ;;  %278 = vmatprep.mubr.bf16.mxu1 %v10463_v1  ;;  %v8800_v19 = vld [vmem:[#allocation7 + $0x48] ss:$16 sps:$4 sm:$0xff]   ;;  %v8808_v20 = vld [vmem:[#allocation7 + $0x64] ss:$16 sps:$4 sm:$0xff]   ;;  %v8810_v21 = vld [vmem:[#allocation7 + $0x6c] ss:$16 sps:$4 sm:$0xff]  }
  0x40   :  { %576 = vmatpush1.bf16.msra.mxu0 %v8769_v9  ;;  %617 = vmatpush1.bf16.msra.mxu1 %v8771_v10  ;;  %v8812_v22 = vld [vmem:[#allocation7 + $0x60] ss:$16 sps:$4 sm:$0xff]   ;;  %v8814_v23 = vld [vmem:[#allocation7 + $0x68] ss:$16 sps:$4 sm:$0xff]   ;;  %v8824_v25 = vld [vmem:[#allocation7 + $0x84] ss:$16 sps:$4 sm:$0xff]  }
  0x41   :  { %577 = vmatprep.subr.bf16.mxu0 %v8777_v11  ;;  %618 = vmatprep.subr.bf16.mxu1 %v8779_v12  ;;  %v8826_v26 = vld [vmem:[#allocation7 + $0x8c] ss:$16 sps:$4 sm:$0xff]   ;;  %v8829_v27 = vld [vmem:[#allocation7 + $0x80] ss:$16 sps:$4 sm:$0xff]   ;;  %v8831_v28 = vld [vmem:[#allocation7 + $0x88] ss:$16 sps:$4 sm:$0xff]  }
  0x42   :  { %v8839_v29 = vld [vmem:[#allocation7 + $0xa0] ss:$16 sps:$4 sm:$0xff]   ;;  %v8841_v30 = vld [vmem:[#allocation7 + $0xa4] ss:$16 sps:$4 sm:$0xff]   ;;  %v8843_v31 = vld [vmem:[#allocation7 + $0xa8] ss:$16 sps:$4 sm:$0xff]  }
  0x43   :  { %v8845_v32 = vld [vmem:[#allocation7 + $0xac] ss:$16 sps:$4 sm:$0xff]   ;;  %v8851_v34 = vld [vmem:[#allocation7 + $0xc4] ss:$16 sps:$4 sm:$0xff]   ;;  %v8857_v36 = vld [vmem:[#allocation7 + $0xc0] ss:$16 sps:$4 sm:$0xff]  }
  0x44   :  { %578 = vmatpush1.bf16.msra.mxu0 %v8781_v13  ;;  %619 = vmatpush1.bf16.msra.mxu1 %v8783_v14  ;;  %v8853_v35 = vld [vmem:[#allocation7 + $0xcc] ss:$16 sps:$4 sm:$0xff]   ;;  %v8861_v37 = vld [vmem:[#allocation7 + $0xc8] ss:$16 sps:$4 sm:$0xff]   ;;  %v8863_v38 = vld [vmem:[#allocation7 + $0xe4] ss:$16 sps:$4 sm:$0xff]  }
  0x45   :  { %579 = vmatprep.subr.bf16.mxu0 %v8793_v16  ;;  %620 = vmatprep.subr.bf16.mxu1 %v8795_v17  ;;  %v8867_v39 = vld [vmem:[#allocation7 + $0xe0] ss:$16 sps:$4 sm:$0xff]   ;;  %v8869_v40 = vld [vmem:[#allocation7 + $0xec] ss:$16 sps:$4 sm:$0xff]   ;;  %v8872_v41 = vld [vmem:[#allocation7 + $0xe8] ss:$16 sps:$4 sm:$0xff]  }
  0x46   :  { %6955 = vmatmul.mubr.msk.bf16.gmra.mrb[4].mxu0 %vm150_vm0, %v7740_v15  ;;  %6959 = vmatmul.mubr.msk.bf16.gmra.mrb[4].mxu1 %vm150_vm0, %v7740_v15  ;;  %v8875_v42 = vld [vmem:[#allocation5 + $0x4] ss:$16 sps:$4 sm:$0xff]   ;;  %v8879_v43 = vld [vmem:[#allocation5 + $0xc] ss:$16 sps:$4 sm:$0xff]   ;;  %v10460_v59 = vsub.s32 2, %v8888_v45 }
  0x47   :  { %215 = vmatprep.mubr.bf16.mxu0 %v10463_v1  ;;  %288 = vmatprep.mubr.bf16.mxu1 %v10463_v1  ;;  %v8894_v47 = vld [vmem:[%s10453_s3] sm:$0xf] }
  0x48   :  { %580 = vmatpush1.bf16.msra.mxu0 %v8798_v18  ;;  %621 = vmatpush1.bf16.msra.mxu1 %v8800_v19  ;;  %v8899_v48 = vrot.slane %v8894_v47, %v10462_v46  ;;  %v8906_v53 = vrot.slane %v8894_v47, %v10461_v49  ;;  %v8921_v0 = vrot.slane %v8894_v47, %v10460_v59  ;;  %v8975_v59 = vld [vmem:[#allocation5 + $0x8c] ss:$16 sps:$4 sm:$0xff]   ;;  %v8979_v49 = vld [vmem:[#allocation5 + $0x80] ss:$16 sps:$4 sm:$0xff]   ;;  %v8981_v46 = vld [vmem:[#allocation5 + $0x88] ss:$16 sps:$4 sm:$0xff]  }
  0x49   :  { %581 = vmatprep.subr.bf16.mxu0 %v8808_v20  ;;  %622 = vmatprep.subr.bf16.mxu1 %v8810_v21  ;;  %10683 = vst [vmem:[#allocation28_spill] sm:$0xff] %v8975_v59  ;;  %10684 = vst [vmem:[#allocation29_spill] sm:$0xff] %v8979_v49 }
  0x4a   :  { %10667 = vst [vmem:[#allocation12_spill] sm:$0xff] %v8899_v48  ;;  %10668 = vst [vmem:[#allocation13_spill] sm:$0xff] %v8921_v0 }
  0x4b   :  { %10685 = vst [vmem:[#allocation30_spill] sm:$0xff] %v8981_v46 }
  0x4c   :  { %582 = vmatpush1.bf16.msra.mxu0 %v8812_v22  ;;  %623 = vmatpush1.bf16.msra.mxu1 %v8814_v23 }
  0x4d   :  { %583 = vmatprep.subr.bf16.mxu0 %v8824_v25  ;;  %624 = vmatprep.subr.bf16.mxu1 %v8826_v26 }
  0x4e   :  { %6956 = vmatmul.mubr.msk.bf16.gmra.mrb[8].mxu0 %vm150_vm0, %v7753_v24  ;;  %6960 = vmatmul.mubr.msk.bf16.gmra.mrb[8].mxu1 %vm150_vm0, %v7753_v24 }
  0x4f   :  { %225 = vmatprep.mubr.bf16.mxu0 %v10463_v1  ;;  %298 = vmatprep.mubr.bf16.mxu1 %v10463_v1 }
  0x50   :  { %584 = vmatpush1.bf16.msra.mxu0 %v8829_v27  ;;  %625 = vmatpush1.bf16.msra.mxu1 %v8831_v28 }
  0x51   :  { %585 = vmatprep.subr.bf16.mxu0 %v8841_v30  ;;  %626 = vmatprep.subr.bf16.mxu1 %v8845_v32 }
  0x54   :  { %586 = vmatpush1.bf16.msra.mxu0 %v8839_v29  ;;  %627 = vmatpush1.bf16.msra.mxu1 %v8843_v31 }
  0x55   :  { %587 = vmatprep.subr.bf16.mxu0 %v8851_v34  ;;  %628 = vmatprep.subr.bf16.mxu1 %v8853_v35 }
  0x56   :  { %6957 = vmatmul.mubr.msk.bf16.gmra.mrb[12].mxu0 %vm150_vm0, %v7766_v33  ;;  %6961 = vmatmul.mubr.msk.bf16.gmra.mrb[12].mxu1 %vm150_vm0, %v7766_v33 }
  0x57   :  { %607 = vmatprep.mubr.bf16.mxu0 %v10463_v1  ;;  %648 = vmatprep.mubr.bf16.mxu1 %v10463_v1 }
  0x58   :  { %588 = vmatpush1.bf16.msra.mxu0 %v8857_v36  ;;  %629 = vmatpush1.bf16.msra.mxu1 %v8861_v37 }
  0x59   :  { %589 = vmatprep.subr.bf16.mxu0 %v8863_v38  ;;  %630 = vmatprep.subr.bf16.mxu1 %v8869_v40 }
  0x5c   :  { %590 = vmatpush1.bf16.msra.mxu0 %v8867_v39  ;;  %631 = vmatpush1.bf16.msra.mxu1 %v8872_v41 }
  0x5d   :  { %853 = vmatprep.subr.bf16.mxu0 %v8875_v42  ;;  %894 = vmatprep.subr.bf16.mxu1 %v8879_v43 }
 0x111   :  { %v197_v50 = vpop.f32.mrb[0].mxu0  ;;  %v270_v57 = vpop.f32.mrb[0].mxu1 }
 0x112   :  { %v198_v51 = vadd.f32 %v197_v50, %v8899_v48  ;;  %v199_v52 = vpop.f32.mrb[1].mxu0  ;;  %v272_v58 = vpop.f32.mrb[1].mxu1  ;;  %v271_v2 = vadd.f32 %v270_v57, %v8921_v0 }
 0x113   :  { %v8908_v54 = vpop.f32.mrb[2].mxu0  ;;  %v273_v60 = vadd.f32 %v272_v58, %v8906_v53  ;;  %v8914_v61 = vpop.f32.mrb[2].mxu1  ;;  %v8927_v52 = vld [vmem:[#allocation5] ss:$16 sps:$4 sm:$0xff]   ;;  %v8933_v58 = vld [vmem:[#allocation5 + $0x24] ss:$16 sps:$4 sm:$0xff]  }
 0x114   :  { %v6962_v55 = vmul.f32 -1.442695, %v198_v51  ;;  %v8910_v56 = vpop.f32.mrb[3].mxu0  ;;  %v8916_v62 = vpop.f32.mrb[3].mxu1  ;;  %10670 = vst [vmem:[#allocation15_spill] sm:$0xff] %v8933_v58 }
 0x115   :  { %v6963_v63 = vmul.f32 -1.442695, %v273_v60  ;;  %v8935_v60 = vld [vmem:[#allocation5 + $0x2c] ss:$16 sps:$4 sm:$0xff]  }
 0x116   :  { %8307 = vpow2.f32 %v6962_v55  ;;  %v8929_v55 = vld [vmem:[#allocation5 + $0x8] ss:$16 sps:$4 sm:$0xff]   ;;  %10671 = vst [vmem:[#allocation16_spill] sm:$0xff] %v8935_v60 }
 0x117   :  { %8309 = vpow2.f32 %v6963_v63  ;;  %10669 = vst [vmem:[#allocation14_spill] sm:$0xff] %v8929_v55  ;;  %v8941_v63 = vld [vmem:[#allocation5 + $0x20] ss:$16 sps:$4 sm:$0xff]  }
 0x118   :  { %8311 = vtanh.f32 %v271_v2  ;;  %10672 = vst [vmem:[#allocation17_spill] sm:$0xff] %v8941_v63  ;;  %v8943_v2 = vld [vmem:[#allocation5 + $0x28] ss:$16 sps:$4 sm:$0xff]  }
 0x119   :  { %10673 = vst [vmem:[#allocation18_spill] sm:$0xff] %v8943_v2 }
 0x120   :  { %v8308_v3 = vpop.eup %8307 }
 0x121   :  { %v369_v4 = vadd.f32 1.0, %v8308_v3  ;;  %v8310_v5 = vpop.eup %8309  ;;  %v8947_v3 = vld [vmem:[#allocation5 + $0x44] ss:$16 sps:$4 sm:$0xff]  }
 0x122   :  { %v376_v6 = vadd.f32 1.0, %v8310_v5  ;;  %v8312_v15 = vpop.eup %8311  ;;  %10674 = vst [vmem:[#allocation19_spill] sm:$0xff] %v8947_v3  ;;  %v8955_v5 = vld [vmem:[#allocation5 + $0x40] ss:$16 sps:$4 sm:$0xff]  }
 0x123   :  { %8313 = vrcp.f32 %v369_v4  ;;  %v8949_v4 = vld [vmem:[#allocation5 + $0x4c] ss:$16 sps:$4 sm:$0xff]   ;;  %10676 = vst [vmem:[#allocation21_spill] sm:$0xff] %v8955_v5 }
 0x124   :  { %8315 = vrcp.f32 %v376_v6  ;;  %10675 = vst [vmem:[#allocation20_spill] sm:$0xff] %v8949_v4  ;;  %v8957_v6 = vld [vmem:[#allocation5 + $0x48] ss:$16 sps:$4 sm:$0xff]  }
 0x125   :  { %10677 = vst [vmem:[#allocation22_spill] sm:$0xff] %v8957_v6 }
 0x12d   :  { %v8314_v24 = vpop.eup %8313 }
 0x12e   :  { %v8924_v33 = vmul.f32 %v8314_v24, %v8312_v15  ;;  %v8316_v44 = vpop.eup %8315  ;;  %v8961_v15 = vld [vmem:[#allocation5 + $0x64] ss:$16 sps:$4 sm:$0xff]   ;;  %v8963_v24 = vld [vmem:[#allocation5 + $0x6c] ss:$16 sps:$4 sm:$0xff]  }
 0x12f   :  { %10678 = vst [vmem:[#allocation23_spill] sm:$0xff] %v8961_v15  ;;  %10679 = vst [vmem:[#allocation24_spill] sm:$0xff] %v8963_v24 }
 0x130   :  { %8317 = vtanh.f32 %v8924_v33 }
 0x13a   :  { %v8318_v50 = vpop.eup %8317 }
 0x13b   :  { %v381_v51 = vmul.f32 %v8318_v50, %v8316_v44  ;;  %v8967_v44 = vld [vmem:[#allocation5 + $0x60] ss:$16 sps:$4 sm:$0xff]   ;;  %v8969_v50 = vld [vmem:[#allocation5 + $0x68] ss:$16 sps:$4 sm:$0xff]  }
 0x13c   :  { %10680 = vst [vmem:[#allocation25_spill] sm:$0xff] %v8967_v44  ;;  %10681 = vst [vmem:[#allocation26_spill] sm:$0xff] %v8969_v50 }
 0x13d   :  { %v8931_v57 = vpack.c.bf16 %v381_v51, %v381_v51  ;;  %v8973_v51 = vld [vmem:[#allocation5 + $0x84] ss:$16 sps:$4 sm:$0xff]  }
 0x13e   :  { %10682 = vst [vmem:[#allocation27_spill] sm:$0xff] %v8973_v51 }
 0x13f   :  { %608 = vmatmul.mubr.bf16.vlgmr.msra.gmra.mrb[16].mxu0 %v8931_v57  ;;  %649 = vmatmul.mubr.bf16.vlgmr.msra.gmra.mrb[16].mxu1 %v8931_v57 }
 0x140   :  { %854 = vmatpush1.bf16.msra.mxu0 %v8927_v52  ;;  %895 = vmatpush1.bf16.msra.mxu1 %v8929_v55 }
 0x141   :  { %855 = vmatprep.subr.bf16.mxu0 %v8933_v58  ;;  %896 = vmatprep.subr.bf16.mxu1 %v8935_v60  ;;  %v10757_v60 = vsub.s32 3, %v8888_v45 }
 0x142   :  { %885 = vmatprep.mubr.bf16.mxu0 %v10463_v1  ;;  %926 = vmatprep.mubr.bf16.mxu1 %v10463_v1  ;;  %v8985_v1 = vld [vmem:[#allocation5 + $0xa4] ss:$16 sps:$4 sm:$0xff]  }
 0x143   :  { %10686 = vst [vmem:[#allocation31_spill] sm:$0xff] %v8985_v1 }
 0x144   :  { %856 = vmatpush1.bf16.msra.mxu0 %v8941_v63  ;;  %897 = vmatpush1.bf16.msra.mxu1 %v8943_v2 }
 0x145   :  { %857 = vmatprep.subr.bf16.mxu0 %v8947_v3  ;;  %898 = vmatprep.subr.bf16.mxu1 %v8949_v4 }
 0x148   :  { %858 = vmatpush1.bf16.msra.mxu0 %v8955_v5  ;;  %899 = vmatpush1.bf16.msra.mxu1 %v8957_v6 }
 0x149   :  { %859 = vmatprep.subr.bf16.mxu0 %v8961_v15  ;;  %900 = vmatprep.subr.bf16.mxu1 %v8963_v24  ;;  %v8987_v15 = vld [vmem:[#allocation5 + $0xac] ss:$16 sps:$4 sm:$0xff]   ;;  %v8991_v24 = vld [vmem:[#allocation5 + $0xa0] ss:$16 sps:$4 sm:$0xff]  }
 0x14a   :  { %10687 = vst [vmem:[#allocation32_spill] sm:$0xff] %v8987_v15  ;;  %10688 = vst [vmem:[#allocation33_spill] sm:$0xff] %v8991_v24 }
 0x14c   :  { %860 = vmatpush1.bf16.msra.mxu0 %v8967_v44  ;;  %901 = vmatpush1.bf16.msra.mxu1 %v8969_v50  ;;  %v8993_v44 = vld [vmem:[#allocation5 + $0xa8] ss:$16 sps:$4 sm:$0xff]   ;;  %v8997_v50 = vld [vmem:[#allocation5 + $0xc4] ss:$16 sps:$4 sm:$0xff]  }
 0x14d   :  { %861 = vmatprep.subr.bf16.mxu0 %v8973_v51  ;;  %902 = vmatprep.subr.bf16.mxu1 %v8975_v59  ;;  %10689 = vst [vmem:[#allocation34_spill] sm:$0xff] %v8993_v44  ;;  %10690 = vst [vmem:[#allocation35_spill] sm:$0xff] %v8997_v50  ;;  %v8999_v51 = vld [vmem:[#allocation5 + $0xcc] ss:$16 sps:$4 sm:$0xff]   ;;  %v9003_v59 = vld [vmem:[#allocation5 + $0xc0] ss:$16 sps:$4 sm:$0xff]  }
 0x14e   :  { %10691 = vst [vmem:[#allocation36_spill] sm:$0xff] %v8999_v51  ;;  %10692 = vst [vmem:[#allocation37_spill] sm:$0xff] %v9003_v59 }
 0x150   :  { %862 = vmatpush1.bf16.msra.mxu0 %v8979_v49  ;;  %903 = vmatpush1.bf16.msra.mxu1 %v8981_v46  ;;  %v9005_v49 = vld [vmem:[#allocation5 + $0xc8] ss:$16 sps:$4 sm:$0xff]   ;;  %v9009_v46 = vld [vmem:[#allocation5 + $0xe4] ss:$16 sps:$4 sm:$0xff]  }
 0x151   :  { %863 = vmatprep.subr.bf16.mxu0 %v8985_v1  ;;  %904 = vmatprep.subr.bf16.mxu1 %v8987_v15  ;;  %10693 = vst [vmem:[#allocation38_spill] sm:$0xff] %v9005_v49  ;;  %10694 = vst [vmem:[#allocation39_spill] sm:$0xff] %v9009_v46  ;;  %v9011_v1 = vld [vmem:[#allocation5 + $0xec] ss:$16 sps:$4 sm:$0xff]   ;;  %v9015_v15 = vld [vmem:[#allocation5 + $0xe0] ss:$16 sps:$4 sm:$0xff]  }
 0x152   :  { %10695 = vst [vmem:[#allocation40_spill] sm:$0xff] %v9011_v1  ;;  %10696 = vst [vmem:[#allocation41_spill] sm:$0xff] %v9015_v15 }
 0x154   :  { %864 = vmatpush1.bf16.msra.mxu0 %v8991_v24  ;;  %905 = vmatpush1.bf16.msra.mxu1 %v8993_v44  ;;  %v9017_v24 = vld [vmem:[#allocation5 + $0xe8] ss:$16 sps:$4 sm:$0xff]  }
 0x155   :  { %865 = vmatprep.subr.bf16.mxu0 %v8997_v50  ;;  %906 = vmatprep.subr.bf16.mxu1 %v8999_v51  ;;  %10697 = vst [vmem:[#allocation42_spill] sm:$0xff] %v9017_v24  ;;  %v10698_v51 = vmov 0  }
 0x158   :  { %866 = vmatpush1.bf16.msra.mxu0 %v9003_v59  ;;  %907 = vmatpush1.bf16.msra.mxu1 %v9005_v49  ;;  %v9027_v49 = vpop.f32.mrb[4].mxu0  ;;  %v9029_v59 = vpop.f32.mrb[4].mxu1 }
 0x159   :  { %867 = vmatprep.subr.bf16.mxu0 %v9009_v46  ;;  %908 = vmatprep.subr.bf16.mxu1 %v9011_v1  ;;  %10699 = vst [vmem:[#allocation43_spill] sm:$0xff] %v9027_v49  ;;  %10700 = vst [vmem:[#allocation44_spill] sm:$0xff] %v9029_v59  ;;  %v9031_v50 = vpop.f32.mrb[5].mxu0  ;;  %v9033_v46 = vpop.f32.mrb[5].mxu1 }
 0x15a   :  { %10701 = vst [vmem:[#allocation45_spill] sm:$0xff] %v9031_v50  ;;  %10702 = vst [vmem:[#allocation46_spill] sm:$0xff] %v9033_v46  ;;  %v9035_v1 = vpop.f32.mrb[6].mxu0 }
 0x15b   :  { %10703 = vst [vmem:[#allocation47_spill] sm:$0xff] %v9035_v1 }
 0x15c   :  { %868 = vmatpush1.bf16.msra.mxu0 %v9015_v15  ;;  %909 = vmatpush1.bf16.msra.mxu1 %v9017_v24  ;;  %v9037_v15 = vpop.f32.mrb[6].mxu1  ;;  %v9039_v24 = vpop.f32.mrb[7].mxu0 }
 0x15d   :  { %10704 = vst [vmem:[#allocation48_spill] sm:$0xff] %v9037_v15  ;;  %10705 = vst [vmem:[#allocation49_spill] sm:$0xff] %v9039_v24  ;;  %v9041_v44 = vpop.f32.mrb[7].mxu1 }
 0x15e   :  { %10706 = vst [vmem:[#allocation50_spill] sm:$0xff] %v9041_v44  ;;  %v9045_v6 = vpop.f32.mrb[8].mxu1 }
 0x15f   :  { %886 = vmatmul.mubr.bf16.vlgmr.msra.gmra.mrb[20].mxu0 %v8931_v57  ;;  %927 = vmatmul.mubr.bf16.vlgmr.msra.gmra.mrb[20].mxu1 %v8931_v57  ;;  %v9043_v57 = vpop.f32.mrb[8].mxu0  ;;  %10708 = vst [vmem:[#allocation52_spill] sm:$0xff] %v9045_v6  ;;  %v9049_v49 = vpop.f32.mrb[9].mxu1 }
 0x160   :  { %1212 = vmatprep.mubr.bf16.mxu0 %v10698_v51  ;;  %1253 = vmatprep.mubr.bf16.mxu1 %v10698_v51  ;;  %10707 = vst [vmem:[#allocation51_spill] sm:$0xff] %v9043_v57  ;;  %v9047_v5 = vpop.f32.mrb[9].mxu0  ;;  %10710 = vst [vmem:[#allocation54_spill] sm:$0xff] %v9049_v49  ;;  %v9053_v50 = vpop.f32.mrb[10].mxu1 }
 0x161   :  { %10709 = vst [vmem:[#allocation53_spill] sm:$0xff] %v9047_v5  ;;  %v9051_v59 = vpop.f32.mrb[10].mxu0  ;;  %10712 = vst [vmem:[#allocation56_spill] sm:$0xff] %v9053_v50  ;;  %v9057_v1 = vpop.f32.mrb[11].mxu1  ;;  %v9075_v50 = vld [vmem:[#allocation9 + $0x4] ss:$16 sps:$4 sm:$0xff]  }
 0x162   :  { %10711 = vst [vmem:[#allocation55_spill] sm:$0xff] %v9051_v59  ;;  %v9055_v46 = vpop.f32.mrb[11].mxu0  ;;  %10714 = vst [vmem:[#allocation58_spill] sm:$0xff] %v9057_v1  ;;  %v9065_v57 = vpop.f32.mrb[12].mxu1  ;;  %v9079_v1 = vld [vmem:[#allocation9] ss:$16 sps:$4 sm:$0xff]   ;;  %1180 = vmatprep.subr.bf16.mxu0 %v9075_v50 }
 0x163   :  { %10713 = vst [vmem:[#allocation57_spill] sm:$0xff] %v9055_v46  ;;  %v9059_v15 = vpop.f32.mrb[12].mxu0  ;;  %10718 = vst [vmem:[#allocation62_spill] sm:$0xff] %v9065_v57  ;;  %v9069_v5 = vpop.f32.mrb[13].mxu1  ;;  %v9077_v46 = vld [vmem:[#allocation9 + $0xc] ss:$16 sps:$4 sm:$0xff]   ;;  %1181 = vmatpush1.bf16.msra.mxu0 %v9079_v1 }
 0x164   :  { %10715 = vst [vmem:[#allocation59_spill] sm:$0xff] %v9059_v15  ;;  %v9061_v24 = vpop.f32.mrb[13].mxu0  ;;  %10720 = vst [vmem:[#allocation64_spill] sm:$0xff] %v9069_v5  ;;  %v9071_v49 = vpop.f32.mrb[14].mxu1  ;;  %v9081_v15 = vld [vmem:[#allocation9 + $0x8] ss:$16 sps:$4 sm:$0xff]   ;;  %1221 = vmatprep.subr.bf16.mxu1 %v9077_v46 }
 0x165   :  { %10716 = vst [vmem:[#allocation60_spill] sm:$0xff] %v9061_v24  ;;  %v9063_v44 = vpop.f32.mrb[14].mxu0  ;;  %10721 = vst [vmem:[#allocation65_spill] sm:$0xff] %v9071_v49  ;;  %v9073_v59 = vpop.f32.mrb[15].mxu1  ;;  %1222 = vmatpush1.bf16.msra.mxu1 %v9081_v15  ;;  %v9089_v49 = vld [vmem:[#allocation9 + $0x2c] ss:$16 sps:$4 sm:$0xff]  }
 0x166   :  { %10717 = vst [vmem:[#allocation61_spill] sm:$0xff] %v9063_v44  ;;  %v9067_v6 = vpop.f32.mrb[15].mxu0  ;;  %10722 = vst [vmem:[#allocation66_spill] sm:$0xff] %v9073_v59  ;;  %v9091_v59 = vld [vmem:[#allocation9 + $0x20] ss:$16 sps:$4 sm:$0xff]   ;;  %1223 = vmatprep.subr.bf16.mxu1 %v9089_v49 }
 0x167   :  { %10719 = vst [vmem:[#allocation63_spill] sm:$0xff] %v9067_v6  ;;  %10723 = vst [vmem:[#allocation67_spill] sm:$0xff] %v9075_v50  ;;  %v9087_v6 = vld [vmem:[#allocation9 + $0x24] ss:$16 sps:$4 sm:$0xff]   ;;  %v9093_v44 = vld [vmem:[#allocation9 + $0x28] ss:$16 sps:$4 sm:$0xff]  }
 0x168   :  { %10724 = vst [vmem:[#allocation68_spill] sm:$0xff] %v9077_v46  ;;  %10725 = vst [vmem:[#allocation69_spill] sm:$0xff] %v9079_v1  ;;  %1182 = vmatprep.subr.bf16.mxu0 %v9087_v6  ;;  %v9099_v5 = vld [vmem:[#allocation9 + $0x44] ss:$16 sps:$4 sm:$0xff]   ;;  %v9101_v57 = vld [vmem:[#allocation9 + $0x4c] ss:$16 sps:$4 sm:$0xff]  }
 0x169   :  { %10726 = vst [vmem:[#allocation70_spill] sm:$0xff] %v9081_v15  ;;  %10727 = vst [vmem:[#allocation71_spill] sm:$0xff] %v9087_v6  ;;  %1183 = vmatpush1.bf16.msra.mxu0 %v9091_v59  ;;  %1224 = vmatpush1.bf16.msra.mxu1 %v9093_v44  ;;  %v9103_v24 = vld [vmem:[#allocation9 + $0x40] ss:$16 sps:$4 sm:$0xff]   ;;  %v9105_v15 = vld [vmem:[#allocation9 + $0x48] ss:$16 sps:$4 sm:$0xff]  }
 0x16a   :  { %10728 = vst [vmem:[#allocation72_spill] sm:$0xff] %v9089_v49  ;;  %10729 = vst [vmem:[#allocation73_spill] sm:$0xff] %v9091_v59  ;;  %1184 = vmatprep.subr.bf16.mxu0 %v9099_v5  ;;  %1225 = vmatprep.subr.bf16.mxu1 %v9101_v57  ;;  %v9111_v49 = vld [vmem:[#allocation9 + $0x64] ss:$16 sps:$4 sm:$0xff]   ;;  %v9113_v59 = vld [vmem:[#allocation9 + $0x6c] ss:$16 sps:$4 sm:$0xff]  }
 0x16b   :  { %10730 = vst [vmem:[#allocation74_spill] sm:$0xff] %v9093_v44  ;;  %10731 = vst [vmem:[#allocation75_spill] sm:$0xff] %v9099_v5  ;;  %v9115_v44 = vld [vmem:[#allocation9 + $0x60] ss:$16 sps:$4 sm:$0xff]   ;;  %v9117_v6 = vld [vmem:[#allocation9 + $0x68] ss:$16 sps:$4 sm:$0xff]  }
 0x16c   :  { %10732 = vst [vmem:[#allocation76_spill] sm:$0xff] %v9101_v57  ;;  %10733 = vst [vmem:[#allocation77_spill] sm:$0xff] %v9103_v24  ;;  %v9123_v57 = vld [vmem:[#allocation9 + $0x84] ss:$16 sps:$4 sm:$0xff]   ;;  %v9129_v5 = vld [vmem:[#allocation9 + $0x88] ss:$16 sps:$4 sm:$0xff]  }
 0x16d   :  { %10734 = vst [vmem:[#allocation78_spill] sm:$0xff] %v9105_v15  ;;  %1185 = vmatpush1.bf16.msra.mxu0 %v9103_v24  ;;  %1226 = vmatpush1.bf16.msra.mxu1 %v9105_v15  ;;  %10735 = vst [vmem:[#allocation79_spill] sm:$0xff] %v9111_v49  ;;  %v9125_v24 = vld [vmem:[#allocation9 + $0x8c] ss:$16 sps:$4 sm:$0xff]   ;;  %v9127_v15 = vld [vmem:[#allocation9 + $0x80] ss:$16 sps:$4 sm:$0xff]  }
 0x16e   :  { %10736 = vst [vmem:[#allocation80_spill] sm:$0xff] %v9113_v59  ;;  %10737 = vst [vmem:[#allocation81_spill] sm:$0xff] %v9115_v44  ;;  %1186 = vmatprep.subr.bf16.mxu0 %v9111_v49  ;;  %1227 = vmatprep.subr.bf16.mxu1 %v9113_v59  ;;  %v9135_v59 = vld [vmem:[#allocation9 + $0xa4] ss:$16 sps:$4 sm:$0xff]   ;;  %v9141_v49 = vld [vmem:[#allocation9 + $0xa8] ss:$16 sps:$4 sm:$0xff]  }
 0x16f   :  { %10738 = vst [vmem:[#allocation82_spill] sm:$0xff] %v9117_v6  ;;  %10739 = vst [vmem:[#allocation83_spill] sm:$0xff] %v9123_v57 }
 0x170   :  { %10740 = vst [vmem:[#allocation84_spill] sm:$0xff] %v9125_v24  ;;  %10741 = vst [vmem:[#allocation85_spill] sm:$0xff] %v9127_v15 }
 0x171   :  { %1187 = vmatpush1.bf16.msra.mxu0 %v9115_v44  ;;  %1228 = vmatpush1.bf16.msra.mxu1 %v9117_v6  ;;  %10742 = vst [vmem:[#allocation86_spill] sm:$0xff] %v9129_v5  ;;  %10743 = vst [vmem:[#allocation87_spill] sm:$0xff] %v9135_v59  ;;  %v9137_v44 = vld [vmem:[#allocation9 + $0xac] ss:$16 sps:$4 sm:$0xff]   ;;  %v9139_v6 = vld [vmem:[#allocation9 + $0xa0] ss:$16 sps:$4 sm:$0xff]  }
 0x172   :  { %1188 = vmatprep.subr.bf16.mxu0 %v9123_v57  ;;  %1229 = vmatprep.subr.bf16.mxu1 %v9125_v24  ;;  %10744 = vst [vmem:[#allocation88_spill] sm:$0xff] %v9137_v44  ;;  %10745 = vst [vmem:[#allocation89_spill] sm:$0xff] %v9139_v6  ;;  %v9147_v24 = vld [vmem:[#allocation9 + $0xc4] ss:$16 sps:$4 sm:$0xff]   ;;  %v9153_v57 = vld [vmem:[#allocation9 + $0xc8] ss:$16 sps:$4 sm:$0xff]  }
 0x173   :  { %10746 = vst [vmem:[#allocation90_spill] sm:$0xff] %v9141_v49  ;;  %10747 = vst [vmem:[#allocation91_spill] sm:$0xff] %v9147_v24 }
 0x174   :  { %10750 = vst [vmem:[#allocation94_spill] sm:$0xff] %v9153_v57 }
 0x175   :  { %1189 = vmatpush1.bf16.msra.mxu0 %v9127_v15  ;;  %1230 = vmatpush1.bf16.msra.mxu1 %v9129_v5  ;;  %v9149_v15 = vld [vmem:[#allocation9 + $0xcc] ss:$16 sps:$4 sm:$0xff]   ;;  %v9151_v5 = vld [vmem:[#allocation9 + $0xc0] ss:$16 sps:$4 sm:$0xff]  }
 0x176   :  { %1190 = vmatprep.subr.bf16.mxu0 %v9135_v59  ;;  %1231 = vmatprep.subr.bf16.mxu1 %v9137_v44  ;;  %10748 = vst [vmem:[#allocation92_spill] sm:$0xff] %v9149_v15  ;;  %10749 = vst [vmem:[#allocation93_spill] sm:$0xff] %v9151_v5  ;;  %v9159_v44 = vld [vmem:[#allocation9 + $0xe4] ss:$16 sps:$4 sm:$0xff]   ;;  %v9165_v59 = vld [vmem:[#allocation9 + $0xe8] ss:$16 sps:$4 sm:$0xff]  }
 0x177   :  { %10751 = vst [vmem:[#allocation95_spill] sm:$0xff] %v9159_v44  ;;  %10754 = vst [vmem:[#allocation98_spill] sm:$0xff] %v9165_v59 }
 0x179   :  { %1191 = vmatpush1.bf16.msra.mxu0 %v9139_v6  ;;  %1232 = vmatpush1.bf16.msra.mxu1 %v9141_v49  ;;  %v9161_v6 = vld [vmem:[#allocation9 + $0xec] ss:$16 sps:$4 sm:$0xff]   ;;  %v9163_v49 = vld [vmem:[#allocation9 + $0xe0] ss:$16 sps:$4 sm:$0xff]  }
 0x17a   :  { %1192 = vmatprep.subr.bf16.mxu0 %v9147_v24  ;;  %1233 = vmatprep.subr.bf16.mxu1 %v9149_v15  ;;  %10752 = vst [vmem:[#allocation96_spill] sm:$0xff] %v9161_v6  ;;  %10753 = vst [vmem:[#allocation97_spill] sm:$0xff] %v9163_v49  ;;  %v10755_v15 = vsub.s32 0, %v8888_v45 }
 0x17d   :  { %1193 = vmatpush1.bf16.msra.mxu0 %v9151_v5  ;;  %1234 = vmatpush1.bf16.msra.mxu1 %v9153_v57  ;;  %v341_v57 = vld [vmem:[%s10456_s6] sm:$0xf]  ;;  %v96_v5 = vsub.s32 1, %v8888_v45 }
 0x17e   :  { %1194 = vmatprep.subr.bf16.mxu0 %v9159_v44  ;;  %1235 = vmatprep.subr.bf16.mxu1 %v9161_v6  ;;  %v9179_v24 = vrot.slane %v341_v57, %v10755_v15  ;;  %v9187_v15 = vrot.slane %v341_v57, %v10757_v60 }
 0x17f   :  { %v9181_v44 = vrot.slane %v341_v57, %v96_v5 }
 0x180   :  { %10756 = vst [vmem:[#allocation99_spill] sm:$0xff] %v9179_v24 }
 0x181   :  { %1195 = vmatpush1.bf16.msra.mxu0 %v9163_v49  ;;  %1236 = vmatpush1.bf16.msra.mxu1 %v9165_v59 }
 0x182   :  { %1456 = vmatprep.subr.bf16.mxu0 %v8765_v7  ;;  %1497 = vmatprep.subr.bf16.mxu1 %v8767_v8 }
 0x212   :  { %v609_v6 = vpop.f32.mrb[16].mxu0  ;;  %v650_v49 = vpop.f32.mrb[16].mxu1 }
 0x213   :  { %v610_v59 = vadd.f32 %v609_v6, %v9179_v24  ;;  %v611_v1 = vpop.f32.mrb[17].mxu0  ;;  %v652_v7 = vpop.f32.mrb[17].mxu1  ;;  %v10758_v6 = vsub.s32 2, %v8888_v45 }
 0x214   :  { %v612_v8 = vadd.f32 %v611_v1, %v9181_v44  ;;  %v613_v46 = vpop.f32.mrb[18].mxu0  ;;  %v654_v50 = vpop.f32.mrb[18].mxu1  ;;  %v653_v58 = vadd.f32 %v652_v7, %v9187_v15 }
 0x215   :  { %v7031_v4 = vmul.f32 -1.442695, %v610_v59  ;;  %v614_v3 = vpop.f32.mrb[19].mxu0  ;;  %v655_v2 = vpop.f32.mrb[19].mxu1  ;;  %v9192_v24 = vrot.slane %v341_v57, %v10758_v6  ;;  %v9196_v50 = vrot.slane %v8894_v47, %v96_v5  ;;  %v277_v6 = vadd.f32 %v8916_v62, %v8906_v53 }
 0x216   :  { %v7032_v63 = vmul.f32 -1.442695, %v612_v8  ;;  %v7033_v55 = vmul.f32 -1.442695, %v653_v58 }
 0x217   :  { %8319 = vpow2.f32 %v7031_v4  ;;  %v651_v1 = vadd.f32 %v650_v49, %v9192_v24  ;;  %10759 = vst [vmem:[#allocation100_spill] sm:$0xff] %v9196_v50  ;;  %v202_v49 = vadd.f32 %v8908_v54, %v8899_v48  ;;  %v204_v8 = vadd.f32 %v8910_v56, %v9196_v50 }
 0x218   :  { %8321 = vpow2.f32 %v7032_v63 }
 0x219   :  { %8323 = vpow2.f32 %v7033_v55  ;;  %v275_v55 = vadd.f32 %v8914_v61, %v8921_v0 }
 0x21a   :  { %8325 = vtanh.f32 %v651_v1 }
 0x221   :  { %v8320_v46 = vpop.eup %8319 }
 0x222   :  { %v8322_v59 = vpop.eup %8321  ;;  %v966_v3 = vadd.f32 1.0, %v8320_v46 }
 0x223   :  { %v972_v2 = vadd.f32 1.0, %v8322_v59  ;;  %v8324_v60 = vpop.eup %8323 }
 0x224   :  { %8327 = vrcp.f32 %v966_v3  ;;  %v8326_v4 = vpop.eup %8325  ;;  %v979_v7 = vadd.f32 1.0, %v8324_v60 }
 0x225   :  { %8329 = vrcp.f32 %v972_v2 }
 0x226   :  { %8331 = vrcp.f32 %v979_v7  ;;  %v9212_v7 = vld [vmem:[%s10457_s7] ss:$0 sm:$0xff] }
 0x22e   :  { %v8328_v63 = vpop.eup %8327 }
 0x22f   :  { %v8330_v45 = vpop.eup %8329  ;;  %v983_v57 = vmul.f32 %v8328_v63, %v8326_v4 }
 0x230   :  { %v982_v58 = vmul.f32 0.0, %v8330_v45  ;;  %v8332_v62 = vpop.eup %8331 }
 0x232   :  { %v9206_v1 = vadd.f32 %v983_v57, %v982_v58  ;;  %v887_v47 = vpop.f32.mrb[20].mxu0  ;;  %v928_v5 = vpop.f32.mrb[20].mxu1 }
 0x233   :  { %v935_v46 = vadd.f32 %v887_v47, %v202_v49  ;;  %v937_v59 = vadd.f32 %v928_v5, %v275_v55  ;;  %v889_v3 = vpop.f32.mrb[21].mxu0  ;;  %v930_v2 = vpop.f32.mrb[21].mxu1 }
 0x234   :  { %8333 = vtanh.f32 %v9206_v1  ;;  %v936_v54 = vadd.f32 %v889_v3, %v204_v8  ;;  %v938_v60 = vadd.f32 %v930_v2, %v277_v6  ;;  %v891_v61 = vpop.f32.mrb[22].mxu0  ;;  %v932_v4 = vpop.f32.mrb[22].mxu1  ;;  %v10784_v3 = vld [vmem:[#allocation38_spill] sm:$0xff]  ;;  %v10785_v2 = vld [vmem:[#allocation39_spill] sm:$0xff] }
 0x235   :  { %v7028_v63 = vmul.f32 -1.442695, %v935_v46  ;;  %v892_v56 = vpop.f32.mrb[23].mxu0  ;;  %v933_v45 = vpop.f32.mrb[23].mxu1  ;;  %v10788_v61 = vld [vmem:[#allocation42_spill] sm:$0xff]  ;;  %v10789_v4 = vld [vmem:[#allocation67_spill] sm:$0xff] }
 0x236   :  { %v7029_v0 = vmul.f32 -1.442695, %v936_v54  ;;  %v7030_v58 = vmul.f32 -1.442695, %v938_v60  ;;  %v10786_v54 = vld [vmem:[#allocation40_spill] sm:$0xff]  ;;  %v10787_v60 = vld [vmem:[#allocation41_spill] sm:$0xff] }
 0x237   :  { %8335 = vpow2.f32 %v7028_v63  ;;  %v10790_v63 = vld [vmem:[#allocation68_spill] sm:$0xff]  ;;  %v10791_v56 = vld [vmem:[#allocation69_spill] sm:$0xff]  ;;  %v10792_v45 = vld [vmem:[#allocation70_spill] sm:$0xff] }
 0x238   :  { %8337 = vpow2.f32 %v7029_v0 }
 0x239   :  { %8339 = vpow2.f32 %v7030_v58  ;;  %v10795_v58 = vld [vmem:[#allocation73_spill] sm:$0xff] }
 0x23a   :  { %8341 = vtanh.f32 %v937_v59  ;;  %v10783_v59 = vld [vmem:[#allocation37_spill] sm:$0xff] }
 0x23e   :  { %v8334_v57 = vpop.eup %8333 }
 0x23f   :  { %v986_v49 = vmul.f32 %v8334_v57, %v8332_v62  ;;  %v10793_v62 = vld [vmem:[#allocation71_spill] sm:$0xff]  ;;  %v10794_v57 = vld [vmem:[#allocation72_spill] sm:$0xff] }
 0x241   :  { %v8336_v55 = vpop.eup %8335  ;;  %v6892_v8 = vmul.f32 %v9212_v7, %v986_v49  ;;  %v987_v6 = vpack.c.bf16 %v986_v49, %v986_v49  ;;  %v10796_v49 = vld [vmem:[#allocation74_spill] sm:$0xff] }
 0x242   :  { %v8338_v47 = vpop.eup %8337  ;;  %v942_v5 = vadd.f32 1.0, %v8336_v55  ;;  %v10797_v55 = vld [vmem:[#allocation75_spill] sm:$0xff] }
 0x243   :  { %v948_v46 = vadd.f32 1.0, %v8338_v47  ;;  %6900 = vadd.xlane.f32.xlu0 %v6892_v8  ;;  %1213 = vmatmul.mubr.bf16.vlgmr.msra.gmra.mrb[24].mxu0 %v987_v6  ;;  %v10798_v8 = vld [vmem:[#allocation76_spill] sm:$0xff]  ;;  %v10800_v47 = vld [vmem:[#allocation78_spill] sm:$0xff] }
 0x244   :  { %8343 = vrcp.f32 %v942_v5  ;;  %1254 = vmatmul.mubr.bf16.vlgmr.msra.gmra.mrb[24].mxu1 %v987_v6  ;;  %1457 = vmatpush1.bf16.msra.mxu0 %v8769_v9  ;;  %v8340_v9 = vpop.eup %8339  ;;  %v10799_v6 = vld [vmem:[#allocation77_spill] sm:$0xff]  ;;  %v10801_v5 = vld [vmem:[#allocation79_spill] sm:$0xff] }
 0x245   :  { %8345 = vrcp.f32 %v948_v46  ;;  %1498 = vmatpush1.bf16.msra.mxu1 %v8771_v10  ;;  %1458 = vmatprep.subr.bf16.mxu0 %v8777_v11  ;;  %v8342_v10 = vpop.eup %8341  ;;  %v10802_v46 = vld [vmem:[#allocation80_spill] sm:$0xff] }
 0x246   :  { %1499 = vmatprep.subr.bf16.mxu1 %v8779_v12  ;;  %1488 = vmatprep.mubr.bf16.mxu0 %v10698_v51 }
 0x247   :  { %1529 = vmatprep.mubr.bf16.mxu1 %v10698_v51 }
 0x248   :  { %1459 = vmatpush1.bf16.msra.mxu0 %v8781_v13  ;;  %v955_v13 = vadd.f32 1.0, %v8340_v9  ;;  %v10803_v9 = vld [vmem:[#allocation81_spill] sm:$0xff] }
 0x249   :  { %1500 = vmatpush1.bf16.msra.mxu1 %v8783_v14  ;;  %1460 = vmatprep.subr.bf16.mxu0 %v8793_v16 }
 0x24a   :  { %1501 = vmatprep.subr.bf16.mxu1 %v8795_v17  ;;  %8347 = vrcp.f32 %v955_v13  ;;  %v10808_v13 = vld [vmem:[#allocation86_spill] sm:$0xff] }
 0x24c   :  { %1461 = vmatpush1.bf16.msra.mxu0 %v8798_v18 }
 0x24d   :  { %1502 = vmatpush1.bf16.msra.mxu1 %v8800_v19  ;;  %1462 = vmatprep.subr.bf16.mxu0 %v8808_v20 }
 0x24e   :  { %v8344_v11 = vpop.eup %8343  ;;  %1503 = vmatprep.subr.bf16.mxu1 %v8810_v21  ;;  %v10760_v21 = vld [vmem:[#allocation14_spill] sm:$0xff] }
 0x24f   :  { %v8346_v12 = vpop.eup %8345  ;;  %v959_v0 = vmul.f32 %v8344_v11, %v8342_v10  ;;  %v10804_v10 = vld [vmem:[#allocation82_spill] sm:$0xff]  ;;  %v10805_v11 = vld [vmem:[#allocation83_spill] sm:$0xff] }
 0x250   :  { %v958_v14 = vmul.f32 %v8346_v12, %v8924_v33  ;;  %1463 = vmatpush1.bf16.msra.mxu0 %v8812_v22  ;;  %v10761_v22 = vld [vmem:[#allocation15_spill] sm:$0xff]  ;;  %v10806_v12 = vld [vmem:[#allocation84_spill] sm:$0xff] }
 0x251   :  { %1504 = vmatpush1.bf16.msra.mxu1 %v8814_v23  ;;  %1464 = vmatprep.subr.bf16.mxu0 %v8824_v25  ;;  %v10762_v23 = vld [vmem:[#allocation16_spill] sm:$0xff]  ;;  %v10763_v25 = vld [vmem:[#allocation17_spill] sm:$0xff]  ;;  %v10781_v33 = vld [vmem:[#allocation35_spill] sm:$0xff] }
 0x252   :  { %v9233_v16 = vadd.f32 %v959_v0, %v958_v14  ;;  %1505 = vmatprep.subr.bf16.mxu1 %v8826_v26  ;;  %v10764_v26 = vld [vmem:[#allocation18_spill] sm:$0xff]  ;;  %v10807_v0 = vld [vmem:[#allocation85_spill] sm:$0xff]  ;;  %v10809_v14 = vld [vmem:[#allocation87_spill] sm:$0xff] }
 0x254   :  { %1465 = vmatpush1.bf16.msra.mxu0 %v8829_v27  ;;  %8349 = vtanh.f32 %v9233_v16  ;;  %v8348_v17 = vpop.eup %8347  ;;  %v10765_v27 = vld [vmem:[#allocation19_spill] sm:$0xff] }
 0x255   :  { %1506 = vmatpush1.bf16.msra.mxu1 %v8831_v28  ;;  %1466 = vmatprep.subr.bf16.mxu0 %v8841_v30  ;;  %v10766_v28 = vld [vmem:[#allocation20_spill] sm:$0xff]  ;;  %v10768_v30 = vld [vmem:[#allocation22_spill] sm:$0xff] }
 0x256   :  { %1507 = vmatprep.subr.bf16.mxu1 %v8845_v32  ;;  %v10770_v32 = vld [vmem:[#allocation24_spill] sm:$0xff] }
 0x258   :  { %1467 = vmatpush1.bf16.msra.mxu0 %v8839_v29  ;;  %v10767_v29 = vld [vmem:[#allocation21_spill] sm:$0xff] }
 0x259   :  { %1508 = vmatpush1.bf16.msra.mxu1 %v8843_v31  ;;  %1468 = vmatprep.subr.bf16.mxu0 %v8851_v34  ;;  %v10769_v31 = vld [vmem:[#allocation23_spill] sm:$0xff]  ;;  %v10771_v34 = vld [vmem:[#allocation25_spill] sm:$0xff] }
 0x25a   :  { %1509 = vmatprep.subr.bf16.mxu1 %v8853_v35  ;;  %v10772_v35 = vld [vmem:[#allocation26_spill] sm:$0xff] }
 0x25c   :  { %1469 = vmatpush1.bf16.msra.mxu0 %v8857_v36  ;;  %v10773_v36 = vld [vmem:[#allocation27_spill] sm:$0xff] }
 0x25d   :  { %1510 = vmatpush1.bf16.msra.mxu1 %v8861_v37  ;;  %1470 = vmatprep.subr.bf16.mxu0 %v8863_v38  ;;  %v10774_v37 = vld [vmem:[#allocation28_spill] sm:$0xff]  ;;  %v10775_v38 = vld [vmem:[#allocation29_spill] sm:$0xff] }
 0x25e   :  { %v8350_v18 = vpop.eup %8349  ;;  %1511 = vmatprep.subr.bf16.mxu1 %v8869_v40  ;;  %v10777_v40 = vld [vmem:[#allocation31_spill] sm:$0xff] }
 0x25f   :  { %v962_v19 = vmul.f32 %v8350_v18, %v8348_v17  ;;  %v10810_v17 = vld [vmem:[#allocation88_spill] sm:$0xff]  ;;  %v10811_v18 = vld [vmem:[#allocation89_spill] sm:$0xff] }
 0x260   :  { %1471 = vmatpush1.bf16.msra.mxu0 %v8867_v39  ;;  %v10776_v39 = vld [vmem:[#allocation30_spill] sm:$0xff] }
 0x261   :  { %1512 = vmatpush1.bf16.msra.mxu1 %v8872_v41  ;;  %v1263_v20 = vpack.c.bf16 %v962_v19, %v962_v19  ;;  %1738 = vmatprep.subr.bf16.mxu0 %v8875_v42  ;;  %v10778_v41 = vld [vmem:[#allocation32_spill] sm:$0xff]  ;;  %v10779_v42 = vld [vmem:[#allocation33_spill] sm:$0xff]  ;;  %v10812_v19 = vld [vmem:[#allocation90_spill] sm:$0xff] }
 0x262   :  { %1779 = vmatprep.subr.bf16.mxu1 %v8879_v43  ;;  %v10780_v43 = vld [vmem:[#allocation34_spill] sm:$0xff] }
 0x263   :  { %1489 = vmatmul.mubr.bf16.vlgmr.msra.gmra.mrb[28].mxu0 %v1263_v20 }
 0x264   :  { %1530 = vmatmul.mubr.bf16.vlgmr.msra.gmra.mrb[28].mxu1 %v1263_v20  ;;  %1739 = vmatpush1.bf16.msra.mxu0 %v8927_v52  ;;  %v10782_v52 = vld [vmem:[#allocation36_spill] sm:$0xff] }
 0x265   :  { %1780 = vmatpush1.bf16.msra.mxu1 %v10760_v21  ;;  %1740 = vmatprep.subr.bf16.mxu0 %v10761_v22  ;;  %v10814_v21 = vld [vmem:[#allocation92_spill] sm:$0xff]  ;;  %v10815_v22 = vld [vmem:[#allocation93_spill] sm:$0xff] }
 0x266   :  { %1781 = vmatprep.subr.bf16.mxu1 %v10762_v23  ;;  %1770 = vmatprep.mubr.bf16.mxu0 %v10698_v51  ;;  %v10816_v23 = vld [vmem:[#allocation94_spill] sm:$0xff] }
 0x267   :  { %1811 = vmatprep.mubr.bf16.mxu1 %v10698_v51 }
 0x268   :  { %1741 = vmatpush1.bf16.msra.mxu0 %v10763_v25  ;;  %v10817_v25 = vld [vmem:[#allocation95_spill] sm:$0xff] }
 0x269   :  { %1782 = vmatpush1.bf16.msra.mxu1 %v10764_v26  ;;  %1742 = vmatprep.subr.bf16.mxu0 %v10765_v27  ;;  %v10818_v26 = vld [vmem:[#allocation96_spill] sm:$0xff]  ;;  %v10819_v27 = vld [vmem:[#allocation97_spill] sm:$0xff] }
 0x26a   :  { %1783 = vmatprep.subr.bf16.mxu1 %v10766_v28  ;;  %v10820_v28 = vld [vmem:[#allocation98_spill] sm:$0xff] }
 0x26c   :  { %1743 = vmatpush1.bf16.msra.mxu0 %v10767_v29  ;;  %v9319_v29 = vld [vmem:[#allocation4] ss:$0 sm:$0xff] }
 0x26d   :  { %1784 = vmatpush1.bf16.msra.mxu1 %v10768_v30  ;;  %1744 = vmatprep.subr.bf16.mxu0 %v10769_v31 }
 0x26e   :  { %1785 = vmatprep.subr.bf16.mxu1 %v10770_v32  ;;  %v9326_v32 = vld [vmem:[#allocation7 + $0x4] ss:$16 sps:$4 sm:$0xff]  }
 0x270   :  { %1745 = vmatpush1.bf16.msra.mxu0 %v10771_v34  ;;  %v9328_v34 = vld [vmem:[#allocation7 + $0xc] ss:$16 sps:$4 sm:$0xff]  }
 0x271   :  { %1786 = vmatpush1.bf16.msra.mxu1 %v10772_v35  ;;  %1746 = vmatprep.subr.bf16.mxu0 %v10773_v36 }
 0x272   :  { %1787 = vmatprep.subr.bf16.mxu1 %v10774_v37 }
 0x274   :  { %1747 = vmatpush1.bf16.msra.mxu0 %v10775_v38 }
 0x275   :  { %1788 = vmatpush1.bf16.msra.mxu1 %v10776_v39  ;;  %1748 = vmatprep.subr.bf16.mxu0 %v10777_v40 }
 0x276   :  { %1789 = vmatprep.subr.bf16.mxu1 %v10778_v41 }
 0x278   :  { %1749 = vmatpush1.bf16.msra.mxu0 %v10779_v42 }
 0x279   :  { %1790 = vmatpush1.bf16.msra.mxu1 %v10780_v43  ;;  %1750 = vmatprep.subr.bf16.mxu0 %v10781_v33 }
 0x27a   :  { %1791 = vmatprep.subr.bf16.mxu1 %v10782_v52 }
 0x27c   :  { %1751 = vmatpush1.bf16.msra.mxu0 %v10783_v59 }
 0x27d   :  { %1792 = vmatpush1.bf16.msra.mxu1 %v10784_v3  ;;  %1752 = vmatprep.subr.bf16.mxu0 %v10785_v2 }
 0x27e   :  { %1793 = vmatprep.subr.bf16.mxu1 %v10786_v54 }
 0x280   :  { %1753 = vmatpush1.bf16.msra.mxu0 %v10787_v60 }
 0x281   :  { %1794 = vmatpush1.bf16.msra.mxu1 %v10788_v61  ;;  %2065 = vmatprep.subr.bf16.mxu0 %v10789_v4  ;;  %v10821_v61 = vld [vmem:[#allocation99_spill] sm:$0xff] }
 0x282   :  { %2106 = vmatprep.subr.bf16.mxu1 %v10790_v63 }
 0x283   :  { %1771 = vmatmul.mubr.bf16.vlgmr.msra.gmra.mrb[32].mxu0 %v1263_v20 }
 0x284   :  { %1812 = vmatmul.mubr.bf16.vlgmr.msra.gmra.mrb[32].mxu1 %v1263_v20  ;;  %2066 = vmatpush1.bf16.msra.mxu0 %v10791_v56  ;;  %v10813_v20 = vld [vmem:[#allocation91_spill] sm:$0xff] }
 0x285   :  { %2107 = vmatpush1.bf16.msra.mxu1 %v10792_v45  ;;  %2067 = vmatprep.subr.bf16.mxu0 %v10793_v62 }
 0x286   :  { %2108 = vmatprep.subr.bf16.mxu1 %v10794_v57  ;;  %2097 = vmatprep.mubr.bf16.mxu0 %v10698_v51 }
 0x287   :  { %2138 = vmatprep.mubr.bf16.mxu1 %v10698_v51 }
 0x288   :  { %2068 = vmatpush1.bf16.msra.mxu0 %v10795_v58 }
 0x289   :  { %2109 = vmatpush1.bf16.msra.mxu1 %v10796_v49  ;;  %2069 = vmatprep.subr.bf16.mxu0 %v10797_v55 }
 0x28a   :  { %2110 = vmatprep.subr.bf16.mxu1 %v10798_v8 }
 0x28c   :  { %2070 = vmatpush1.bf16.msra.mxu0 %v10799_v6 }
 0x28d   :  { %2111 = vmatpush1.bf16.msra.mxu1 %v10800_v47  ;;  %2071 = vmatprep.subr.bf16.mxu0 %v10801_v5 }
 0x28e   :  { %2112 = vmatprep.subr.bf16.mxu1 %v10802_v46 }
 0x290   :  { %2072 = vmatpush1.bf16.msra.mxu0 %v10803_v9 }
 0x291   :  { %2113 = vmatpush1.bf16.msra.mxu1 %v10804_v10  ;;  %2073 = vmatprep.subr.bf16.mxu0 %v10805_v11 }
 0x292   :  { %2114 = vmatprep.subr.bf16.mxu1 %v10806_v12 }
 0x294   :  { %2074 = vmatpush1.bf16.msra.mxu0 %v10807_v0  ;;  %v10822_v0 = vld [vmem:[#allocation43_spill] sm:$0xff] }
 0x295   :  { %2115 = vmatpush1.bf16.msra.mxu1 %v10808_v13  ;;  %2075 = vmatprep.subr.bf16.mxu0 %v10809_v14  ;;  %v208_v13 = vadd.f32 %v10822_v0, %v8899_v48  ;;  %v9376_v0 = vld [vmem:[#allocation7 + $0x48] ss:$16 sps:$4 sm:$0xff]  }
 0x296   :  { %2116 = vmatprep.subr.bf16.mxu1 %v10810_v17 }
 0x298   :  { %2076 = vmatpush1.bf16.msra.mxu0 %v10811_v18  ;;  %v10823_v18 = vld [vmem:[#allocation45_spill] sm:$0xff] }
 0x299   :  { %2117 = vmatpush1.bf16.msra.mxu1 %v10812_v19  ;;  %2077 = vmatprep.subr.bf16.mxu0 %v10813_v20  ;;  %v210_v19 = vadd.f32 %v10823_v18, %v9196_v50  ;;  %v10824_v20 = vld [vmem:[#allocation13_spill] sm:$0xff] }
 0x29a   :  { %2118 = vmatprep.subr.bf16.mxu1 %v10814_v21  ;;  %v10825_v21 = vld [vmem:[#allocation44_spill] sm:$0xff] }
 0x29c   :  { %2078 = vmatpush1.bf16.msra.mxu0 %v10815_v22  ;;  %v281_v22 = vadd.f32 %v10825_v21, %v10824_v20  ;;  %v9387_v21 = vld [vmem:[#allocation7 + $0x60] ss:$16 sps:$4 sm:$0xff]  }
 0x29d   :  { %2119 = vmatpush1.bf16.msra.mxu1 %v10816_v23  ;;  %2079 = vmatprep.subr.bf16.mxu0 %v10817_v25 }
 0x29e   :  { %2120 = vmatprep.subr.bf16.mxu1 %v10818_v26  ;;  %v10826_v26 = vld [vmem:[#allocation46_spill] sm:$0xff] }
 0x2a0   :  { %2080 = vmatpush1.bf16.msra.mxu0 %v10819_v27  ;;  %v283_v27 = vadd.f32 %v10826_v26, %v8906_v53  ;;  %v9404_v26 = vld [vmem:[#allocation7 + $0x88] ss:$16 sps:$4 sm:$0xff]  }
 0x2a1   :  { %2121 = vmatpush1.bf16.msra.mxu1 %v10820_v28  ;;  %2341 = vmatprep.subr.bf16.mxu0 %v9326_v32 }
 0x2a2   :  { %2382 = vmatprep.subr.bf16.mxu1 %v9328_v34 }
 0x2d0   :  { %v6901_v30 = vpop.xlane.xlu0 %6900 }
 0x2d1   :  { %v6923_v31 = vadd.f32 %v9319_v29, %v6901_v30 }
 0x2d3   :  { %6932 = vst.msk [vmem:[%s10459_s9] sm:$0xff] %vm6931_vm1, %v6923_v31 }
 0x316   :  { %v1214_v35 = vpop.f32.mrb[24].mxu0 }
 0x317   :  { %v1255_v36 = vpop.f32.mrb[24].mxu1  ;;  %v1216_v37 = vpop.f32.mrb[25].mxu0 }
 0x318   :  { %v1257_v38 = vpop.f32.mrb[25].mxu1  ;;  %v1218_v39 = vpop.f32.mrb[26].mxu0 }
 0x319   :  { %v1259_v40 = vpop.f32.mrb[26].mxu1  ;;  %v1219_v41 = vpop.f32.mrb[27].mxu0 }
 0x31a   :  { %v1260_v42 = vpop.f32.mrb[27].mxu1 }
 0x336   :  { %v1490_v43 = vpop.f32.mrb[28].mxu0 }
 0x337   :  { %v1491_v33 = vadd.f32 %v1490_v43, %v1214_v35  ;;  %v1531_v52 = vpop.f32.mrb[28].mxu1  ;;  %v1492_v59 = vpop.f32.mrb[29].mxu0 }
 0x338   :  { %v1532_v3 = vadd.f32 %v1531_v52, %v1255_v36  ;;  %v1493_v2 = vadd.f32 %v1492_v59, %v1216_v37  ;;  %v1533_v54 = vpop.f32.mrb[29].mxu1  ;;  %v1494_v60 = vpop.f32.mrb[30].mxu0 }
 0x339   :  { %v1538_v4 = vadd.f32 %v1491_v33, %v10821_v61  ;;  %v1534_v63 = vadd.f32 %v1533_v54, %v1257_v38  ;;  %v1535_v56 = vpop.f32.mrb[30].mxu1  ;;  %v1495_v45 = vpop.f32.mrb[31].mxu0 }
 0x33a   :  { %v1539_v62 = vadd.f32 %v1493_v2, %v9181_v44  ;;  %v1536_v57 = vpop.f32.mrb[31].mxu1  ;;  %v1540_v8 = vadd.f32 %v1532_v3, %v9192_v24  ;;  %v9348_v45 = vld [vmem:[#allocation7] ss:$16 sps:$4 sm:$0xff]  }
 0x33b   :  { %v7133_v58 = vmul.f32 -1.442695, %v1538_v4  ;;  %v1541_v55 = vadd.f32 %v1534_v63, %v9187_v15 }
 0x33c   :  { %v7134_v49 = vmul.f32 -1.442695, %v1539_v62  ;;  %v9350_v62 = vld [vmem:[#allocation7 + $0x8] ss:$16 sps:$4 sm:$0xff]  }
 0x33d   :  { %8351 = vpow2.f32 %v7133_v58  ;;  %v7135_v46 = vmul.f32 -1.442695, %v1541_v55  ;;  %v9355_v55 = vld [vmem:[#allocation7 + $0x2c] ss:$16 sps:$4 sm:$0xff]  }
 0x33e   :  { %8353 = vpow2.f32 %v7134_v49  ;;  %v9353_v49 = vld [vmem:[#allocation7 + $0x24] ss:$16 sps:$4 sm:$0xff]  }
 0x33f   :  { %8355 = vtanh.f32 %v1540_v8  ;;  %v9358_v8 = vld [vmem:[#allocation7 + $0x20] ss:$16 sps:$4 sm:$0xff]  }
 0x347   :  { %v8352_v6 = vpop.eup %8351 }
 0x348   :  { %v8354_v47 = vpop.eup %8353  ;;  %v1851_v5 = vadd.f32 1.0, %v8352_v6  ;;  %v9362_v6 = vld [vmem:[#allocation7 + $0x28] ss:$16 sps:$4 sm:$0xff]  }
 0x349   :  { %v1857_v9 = vadd.f32 1.0, %v8354_v47  ;;  %v8356_v10 = vpop.eup %8355  ;;  %v9364_v47 = vld [vmem:[#allocation7 + $0x44] ss:$16 sps:$4 sm:$0xff]  }
 0x34a   :  { %8357 = vrcp.f32 %v1851_v5  ;;  %v9367_v5 = vld [vmem:[#allocation7 + $0x4c] ss:$16 sps:$4 sm:$0xff]  }
 0x34b   :  { %8359 = vrcp.f32 %v1857_v9 }
 0x34c   :  { %8361 = vpow2.f32 %v7135_v46 }
 0x354   :  { %v8358_v11 = vpop.eup %8357 }
 0x355   :  { %v8360_v12 = vpop.eup %8359  ;;  %v1868_v14 = vmul.f32 %v8358_v11, %v8356_v10  ;;  %v9372_v10 = vld [vmem:[#allocation7 + $0x40] ss:$16 sps:$4 sm:$0xff]  }
 0x356   :  { %v8362_v17 = vpop.eup %8361  ;;  %v1867_v23 = vmul.f32 %v8360_v12, %v9206_v1  ;;  %v1772_v25 = vpop.f32.mrb[32].mxu0 }
 0x357   :  { %v1820_v28 = vadd.f32 %v1772_v25, %v208_v13  ;;  %v1813_v30 = vpop.f32.mrb[32].mxu1  ;;  %v1774_v31 = vpop.f32.mrb[33].mxu0  ;;  %v1864_v40 = vadd.f32 1.0, %v8362_v17  ;;  %v9378_v13 = vld [vmem:[#allocation7 + $0x64] ss:$16 sps:$4 sm:$0xff]  }
 0x358   :  { %v1822_v35 = vadd.f32 %v1813_v30, %v281_v22  ;;  %v1821_v36 = vadd.f32 %v1774_v31, %v210_v19  ;;  %v1815_v37 = vpop.f32.mrb[33].mxu1  ;;  %v1776_v38 = vpop.f32.mrb[34].mxu0  ;;  %v9345_v39 = vadd.f32 %v1868_v14, %v1867_v23  ;;  %v9382_v17 = vld [vmem:[#allocation7 + $0x6c] ss:$16 sps:$4 sm:$0xff]   ;;  %v9391_v22 = vld [vmem:[#allocation7 + $0x68] ss:$16 sps:$4 sm:$0xff]  }
 0x359   :  { %v7130_v41 = vmul.f32 -1.442695, %v1820_v28  ;;  %v1823_v42 = vadd.f32 %v1815_v37, %v283_v27  ;;  %v1817_v43 = vpop.f32.mrb[34].mxu1  ;;  %v1777_v33 = vpop.f32.mrb[35].mxu0  ;;  %v9393_v23 = vld [vmem:[#allocation7 + $0x84] ss:$16 sps:$4 sm:$0xff]  }
 0x35a   :  { %v7131_v52 = vmul.f32 -1.442695, %v1821_v36  ;;  %v1818_v1 = vpop.f32.mrb[35].mxu1  ;;  %v9400_v25 = vld [vmem:[#allocation7 + $0x80] ss:$16 sps:$4 sm:$0xff]  }
 0x35b   :  { %8363 = vpow2.f32 %v7130_v41  ;;  %v7132_v59 = vmul.f32 -1.442695, %v1823_v42  ;;  %v9406_v27 = vld [vmem:[#allocation7 + $0xa4] ss:$16 sps:$4 sm:$0xff]   ;;  %v9409_v28 = vld [vmem:[#allocation7 + $0xac] ss:$16 sps:$4 sm:$0xff]  }
 0x35c   :  { %8365 = vpow2.f32 %v7131_v52  ;;  %v9412_v30 = vld [vmem:[#allocation7 + $0xa0] ss:$16 sps:$4 sm:$0xff]   ;;  %v9416_v31 = vld [vmem:[#allocation7 + $0xa8] ss:$16 sps:$4 sm:$0xff]   ;;  %v9421_v36 = vld [vmem:[#allocation7 + $0xcc] ss:$16 sps:$4 sm:$0xff]  }
 0x35d   :  { %8367 = vrcp.f32 %v1864_v40  ;;  %v9424_v38 = vld [vmem:[#allocation7 + $0xc0] ss:$16 sps:$4 sm:$0xff]   ;;  %v9428_v40 = vld [vmem:[#allocation7 + $0xc8] ss:$16 sps:$4 sm:$0xff]   ;;  %v9430_v41 = vld [vmem:[#allocation7 + $0xe4] ss:$16 sps:$4 sm:$0xff]  }
 0x35e   :  { %8369 = vtanh.f32 %v9345_v39  ;;  %v9433_v43 = vld [vmem:[#allocation7 + $0xec] ss:$16 sps:$4 sm:$0xff]   ;;  %v9436_v52 = vld [vmem:[#allocation7 + $0xe0] ss:$16 sps:$4 sm:$0xff]   ;;  %v9440_v1 = vld [vmem:[#allocation7 + $0xe8] ss:$16 sps:$4 sm:$0xff]  }
 0x35f   :  { %8371 = vtanh.f32 %v1822_v35  ;;  %v9418_v35 = vld [vmem:[#allocation7 + $0xc4] ss:$16 sps:$4 sm:$0xff]  }
 0x360   :  { %8373 = vpow2.f32 %v7132_v59  ;;  %v9442_v59 = vld [vmem:[#allocation5 + $0x4] ss:$16 sps:$4 sm:$0xff]  }
 0x365   :  { %v8364_v3 = vpop.eup %8363 }
 0x366   :  { %v8366_v2 = vpop.eup %8365  ;;  %v1827_v54 = vadd.f32 1.0, %v8364_v3  ;;  %v9445_v3 = vld [vmem:[#allocation5 + $0xc] ss:$16 sps:$4 sm:$0xff]  }
 0x367   :  { %v8368_v60 = vpop.eup %8367  ;;  %v1833_v4 = vadd.f32 1.0, %v8366_v2  ;;  %10827 = vst [vmem:[#allocation14_spill] sm:$0xff] %v9445_v3 }
 0x368   :  { %v8370_v63 = vpop.eup %8369  ;;  %8375 = vrcp.f32 %v1827_v54  ;;  %v9450_v54 = vld [vmem:[#allocation5] ss:$16 sps:$4 sm:$0xff]  }
 0x369   :  { %8377 = vrcp.f32 %v1833_v4  ;;  %v1871_v56 = vmul.f32 %v8370_v63, %v8368_v60  ;;  %10828 = vst [vmem:[#allocation15_spill] sm:$0xff] %v9450_v54  ;;  %v9454_v60 = vld [vmem:[#allocation5 + $0x8] ss:$16 sps:$4 sm:$0xff]   ;;  %v9456_v4 = vld [vmem:[#allocation5 + $0x24] ss:$16 sps:$4 sm:$0xff]  }
 0x36a   :  { %10829 = vst [vmem:[#allocation16_spill] sm:$0xff] %v9454_v60  ;;  %10830 = vst [vmem:[#allocation17_spill] sm:$0xff] %v9456_v4  ;;  %v9459_v63 = vld [vmem:[#allocation5 + $0x2c] ss:$16 sps:$4 sm:$0xff]  }
 0x36b   :  { %v6893_v57 = vmul.f32 %v9212_v7, %v1871_v56  ;;  %v1872_v58 = vpack.c.bf16 %v1871_v56, %v1871_v56  ;;  %v8372_v7 = vpop.eup %8371  ;;  %10831 = vst [vmem:[#allocation18_spill] sm:$0xff] %v9459_v63  ;;  %v9464_v56 = vld [vmem:[#allocation5 + $0x20] ss:$16 sps:$4 sm:$0xff]  }
 0x36c   :  { %v8374_v46 = vpop.eup %8373  ;;  %10832 = vst [vmem:[#allocation19_spill] sm:$0xff] %v9464_v56 }
 0x36d   :  { %6902 = vadd.xlane.f32.xlu0 %v6893_v57  ;;  %2098 = vmatmul.mubr.bf16.vlgmr.msra.gmra.mrb[36].mxu0 %v1872_v58  ;;  %v1840_v19 = vadd.f32 1.0, %v8374_v46  ;;  %v9468_v57 = vld [vmem:[#allocation5 + $0x28] ss:$16 sps:$4 sm:$0xff]   ;;  %v9478_v46 = vld [vmem:[#allocation5 + $0x40] ss:$16 sps:$4 sm:$0xff]  }
 0x36e   :  { %2139 = vmatmul.mubr.bf16.vlgmr.msra.gmra.mrb[36].mxu1 %v1872_v58  ;;  %2342 = vmatpush1.bf16.msra.mxu0 %v9348_v45  ;;  %10833 = vst [vmem:[#allocation20_spill] sm:$0xff] %v9468_v57  ;;  %v9470_v58 = vld [vmem:[#allocation5 + $0x44] ss:$16 sps:$4 sm:$0xff]   ;;  %10836 = vst [vmem:[#allocation23_spill] sm:$0xff] %v9478_v46 }
 0x36f   :  { %2383 = vmatpush1.bf16.msra.mxu1 %v9350_v62  ;;  %2343 = vmatprep.subr.bf16.mxu0 %v9353_v49  ;;  %10834 = vst [vmem:[#allocation21_spill] sm:$0xff] %v9470_v58 }
 0x370   :  { %2384 = vmatprep.subr.bf16.mxu1 %v9355_v55  ;;  %2373 = vmatprep.mubr.bf16.mxu0 %v10698_v51 }
 0x371   :  { %2414 = vmatprep.mubr.bf16.mxu1 %v10698_v51 }
 0x372   :  { %v8376_v9 = vpop.eup %8375  ;;  %2344 = vmatpush1.bf16.msra.mxu0 %v9358_v8 }
 0x373   :  { %v8378_v11 = vpop.eup %8377  ;;  %v1844_v12 = vmul.f32 %v8376_v9, %v8372_v7  ;;  %2385 = vmatpush1.bf16.msra.mxu1 %v9362_v6  ;;  %2345 = vmatprep.subr.bf16.mxu0 %v9364_v47  ;;  %v9473_v7 = vld [vmem:[#allocation5 + $0x4c] ss:$16 sps:$4 sm:$0xff]   ;;  %v9482_v9 = vld [vmem:[#allocation5 + $0x48] ss:$16 sps:$4 sm:$0xff]  }
 0x374   :  { %v1843_v14 = vmul.f32 %v8378_v11, %v9233_v16  ;;  %2386 = vmatprep.subr.bf16.mxu1 %v9367_v5  ;;  %v9396_v16 = vld [vmem:[#allocation7 + $0x8c] ss:$16 sps:$4 sm:$0xff]   ;;  %10835 = vst [vmem:[#allocation22_spill] sm:$0xff] %v9473_v7  ;;  %10837 = vst [vmem:[#allocation24_spill] sm:$0xff] %v9482_v9  ;;  %v9484_v11 = vld [vmem:[#allocation5 + $0x64] ss:$16 sps:$4 sm:$0xff]  }
 0x375   :  { %10838 = vst [vmem:[#allocation25_spill] sm:$0xff] %v9484_v11 }
 0x376   :  { %v9384_v18 = vadd.f32 %v1844_v12, %v1843_v14  ;;  %2346 = vmatpush1.bf16.msra.mxu0 %v9372_v10  ;;  %v9487_v12 = vld [vmem:[#allocation5 + $0x6c] ss:$16 sps:$4 sm:$0xff]   ;;  %v9490_v14 = vld [vmem:[#allocation5 + $0x60] ss:$16 sps:$4 sm:$0xff]  }
 0x377   :  { %2387 = vmatpush1.bf16.msra.mxu1 %v9376_v0  ;;  %2347 = vmatprep.subr.bf16.mxu0 %v9378_v13  ;;  %10839 = vst [vmem:[#allocation26_spill] sm:$0xff] %v9487_v12  ;;  %10840 = vst [vmem:[#allocation27_spill] sm:$0xff] %v9490_v14 }
 0x378   :  { %2388 = vmatprep.subr.bf16.mxu1 %v9382_v17  ;;  %8379 = vtanh.f32 %v9384_v18 }
 0x379   :  { %8381 = vrcp.f32 %v1840_v19  ;;  %v9494_v19 = vld [vmem:[#allocation5 + $0x68] ss:$16 sps:$4 sm:$0xff]  }
 0x37a   :  { %2348 = vmatpush1.bf16.msra.mxu0 %v9387_v21  ;;  %10841 = vst [vmem:[#allocation28_spill] sm:$0xff] %v9494_v19 }
 0x37b   :  { %2389 = vmatpush1.bf16.msra.mxu1 %v9391_v22  ;;  %2349 = vmatprep.subr.bf16.mxu0 %v9393_v23 }
 0x37c   :  { %2390 = vmatprep.subr.bf16.mxu1 %v9396_v16 }
 0x37e   :  { %2350 = vmatpush1.bf16.msra.mxu0 %v9400_v25 }
 0x37f   :  { %2391 = vmatpush1.bf16.msra.mxu1 %v9404_v26  ;;  %2351 = vmatprep.subr.bf16.mxu0 %v9406_v27 }
 0x380   :  { %2392 = vmatprep.subr.bf16.mxu1 %v9409_v28 }
 0x382   :  { %v8380_v37 = vpop.eup %8379  ;;  %2352 = vmatpush1.bf16.msra.mxu0 %v9412_v30 }
 0x383   :  { %2393 = vmatpush1.bf16.msra.mxu1 %v9416_v31  ;;  %2353 = vmatprep.subr.bf16.mxu0 %v9418_v35  ;;  %v8382_v42 = vpop.eup %8381 }
 0x384   :  { %2394 = vmatprep.subr.bf16.mxu1 %v9421_v36  ;;  %v1847_v33 = vmul.f32 %v8382_v42, %v8380_v37  ;;  %v9496_v37 = vld [vmem:[#allocation5 + $0x84] ss:$16 sps:$4 sm:$0xff]   ;;  %v9499_v42 = vld [vmem:[#allocation5 + $0x8c] ss:$16 sps:$4 sm:$0xff]  }
 0x385   :  { %10842 = vst [vmem:[#allocation29_spill] sm:$0xff] %v9496_v37  ;;  %10843 = vst [vmem:[#allocation30_spill] sm:$0xff] %v9499_v42 }
 0x386   :  { %2354 = vmatpush1.bf16.msra.mxu0 %v9424_v38  ;;  %v9447_v2 = vpack.c.bf16 %v1847_v33, %v1847_v33  ;;  %v9502_v33 = vld [vmem:[#allocation5 + $0x80] ss:$16 sps:$4 sm:$0xff]  }
 0x387   :  { %2395 = vmatpush1.bf16.msra.mxu1 %v9428_v40  ;;  %2355 = vmatprep.subr.bf16.mxu0 %v9430_v41  ;;  %10844 = vst [vmem:[#allocation31_spill] sm:$0xff] %v9502_v33 }
 0x388   :  { %2396 = vmatprep.subr.bf16.mxu1 %v9433_v43 }
 0x38a   :  { %2356 = vmatpush1.bf16.msra.mxu0 %v9436_v52 }
 0x38b   :  { %2397 = vmatpush1.bf16.msra.mxu1 %v9440_v1  ;;  %2623 = vmatprep.subr.bf16.mxu0 %v9442_v59 }
 0x38c   :  { %2664 = vmatprep.subr.bf16.mxu1 %v9445_v3 }
 0x38d   :  { %2374 = vmatmul.mubr.bf16.vlgmr.msra.gmra.mrb[40].mxu0 %v9447_v2 }
 0x38e   :  { %2415 = vmatmul.mubr.bf16.vlgmr.msra.gmra.mrb[40].mxu1 %v9447_v2  ;;  %2624 = vmatpush1.bf16.msra.mxu0 %v9450_v54 }
 0x38f   :  { %2665 = vmatpush1.bf16.msra.mxu1 %v9454_v60  ;;  %2625 = vmatprep.subr.bf16.mxu0 %v9456_v4 }
 0x390   :  { %2666 = vmatprep.subr.bf16.mxu1 %v9459_v63  ;;  %2655 = vmatprep.mubr.bf16.mxu0 %v10698_v51 }
 0x391   :  { %2696 = vmatprep.mubr.bf16.mxu1 %v10698_v51 }
 0x392   :  { %2626 = vmatpush1.bf16.msra.mxu0 %v9464_v56 }
 0x393   :  { %2667 = vmatpush1.bf16.msra.mxu1 %v9468_v57  ;;  %2627 = vmatprep.subr.bf16.mxu0 %v9470_v58 }
 0x394   :  { %2668 = vmatprep.subr.bf16.mxu1 %v9473_v7 }
 0x396   :  { %2628 = vmatpush1.bf16.msra.mxu0 %v9478_v46  ;;  %v9506_v46 = vld [vmem:[#allocation5 + $0x88] ss:$16 sps:$4 sm:$0xff]  }
 0x397   :  { %2669 = vmatpush1.bf16.msra.mxu1 %v9482_v9  ;;  %2629 = vmatprep.subr.bf16.mxu0 %v9484_v11  ;;  %10845 = vst [vmem:[#allocation32_spill] sm:$0xff] %v9506_v46  ;;  %v9508_v9 = vld [vmem:[#allocation5 + $0xa4] ss:$16 sps:$4 sm:$0xff]   ;;  %v9511_v11 = vld [vmem:[#allocation5 + $0xac] ss:$16 sps:$4 sm:$0xff]  }
 0x398   :  { %2670 = vmatprep.subr.bf16.mxu1 %v9487_v12  ;;  %10846 = vst [vmem:[#allocation33_spill] sm:$0xff] %v9508_v9  ;;  %10847 = vst [vmem:[#allocation34_spill] sm:$0xff] %v9511_v11  ;;  %v9514_v12 = vld [vmem:[#allocation5 + $0xa0] ss:$16 sps:$4 sm:$0xff]  }
 0x399   :  { %10848 = vst [vmem:[#allocation35_spill] sm:$0xff] %v9514_v12 }
 0x39a   :  { %2630 = vmatpush1.bf16.msra.mxu0 %v9490_v14  ;;  %v9518_v14 = vld [vmem:[#allocation5 + $0xa8] ss:$16 sps:$4 sm:$0xff]  }
 0x39b   :  { %2671 = vmatpush1.bf16.msra.mxu1 %v9494_v19  ;;  %2631 = vmatprep.subr.bf16.mxu0 %v9496_v37  ;;  %10849 = vst [vmem:[#allocation36_spill] sm:$0xff] %v9518_v14  ;;  %v9520_v19 = vld [vmem:[#allocation5 + $0xc4] ss:$16 sps:$4 sm:$0xff]   ;;  %v9523_v37 = vld [vmem:[#allocation5 + $0xcc] ss:$16 sps:$4 sm:$0xff]  }
 0x39c   :  { %2672 = vmatprep.subr.bf16.mxu1 %v9499_v42  ;;  %10850 = vst [vmem:[#allocation37_spill] sm:$0xff] %v9520_v19  ;;  %10851 = vst [vmem:[#allocation38_spill] sm:$0xff] %v9523_v37  ;;  %v9526_v42 = vld [vmem:[#allocation5 + $0xc0] ss:$16 sps:$4 sm:$0xff]  }
 0x39d   :  { %10852 = vst [vmem:[#allocation39_spill] sm:$0xff] %v9526_v42 }
 0x39e   :  { %2632 = vmatpush1.bf16.msra.mxu0 %v9502_v33  ;;  %v9530_v33 = vld [vmem:[#allocation5 + $0xc8] ss:$16 sps:$4 sm:$0xff]  }
 0x39f   :  { %2673 = vmatpush1.bf16.msra.mxu1 %v9506_v46  ;;  %2633 = vmatprep.subr.bf16.mxu0 %v9508_v9  ;;  %10853 = vst [vmem:[#allocation40_spill] sm:$0xff] %v9530_v33  ;;  %v9532_v46 = vld [vmem:[#allocation5 + $0xe4] ss:$16 sps:$4 sm:$0xff]   ;;  %v9535_v9 = vld [vmem:[#allocation5 + $0xec] ss:$16 sps:$4 sm:$0xff]  }
 0x3a0   :  { %2674 = vmatprep.subr.bf16.mxu1 %v9511_v11  ;;  %10854 = vst [vmem:[#allocation41_spill] sm:$0xff] %v9532_v46  ;;  %10855 = vst [vmem:[#allocation42_spill] sm:$0xff] %v9535_v9  ;;  %v9538_v11 = vld [vmem:[#allocation5 + $0xe0] ss:$16 sps:$4 sm:$0xff]  }
 0x3a1   :  { %10856 = vst [vmem:[#allocation67_spill] sm:$0xff] %v9538_v11 }
 0x3a2   :  { %2634 = vmatpush1.bf16.msra.mxu0 %v9514_v12  ;;  %v9542_v12 = vld [vmem:[#allocation5 + $0xe8] ss:$16 sps:$4 sm:$0xff]  }
 0x3a3   :  { %2675 = vmatpush1.bf16.msra.mxu1 %v9518_v14  ;;  %2635 = vmatprep.subr.bf16.mxu0 %v9520_v19  ;;  %10857 = vst [vmem:[#allocation68_spill] sm:$0xff] %v9542_v12  ;;  %v9581_v19 = vld [vmem:[#allocation9 + $0x48] ss:$16 sps:$4 sm:$0xff]  }
 0x3a4   :  { %2676 = vmatprep.subr.bf16.mxu1 %v9523_v37  ;;  %v9557_v37 = vld [vmem:[#allocation9 + $0x8] ss:$16 sps:$4 sm:$0xff]   ;;  %10869 = vst [vmem:[#allocation80_spill] sm:$0xff] %v9581_v19 }
 0x3a5   :  { %10861 = vst [vmem:[#allocation72_spill] sm:$0xff] %v9557_v37 }
 0x3a6   :  { %2636 = vmatpush1.bf16.msra.mxu0 %v9526_v42  ;;  %v9551_v42 = vld [vmem:[#allocation9 + $0x4] ss:$16 sps:$4 sm:$0xff]  }
 0x3a7   :  { %2677 = vmatpush1.bf16.msra.mxu1 %v9530_v33  ;;  %2637 = vmatprep.subr.bf16.mxu0 %v9532_v46  ;;  %10858 = vst [vmem:[#allocation69_spill] sm:$0xff] %v9551_v42  ;;  %v9553_v33 = vld [vmem:[#allocation9 + $0xc] ss:$16 sps:$4 sm:$0xff]   ;;  %v9555_v46 = vld [vmem:[#allocation9] ss:$16 sps:$4 sm:$0xff]  }
 0x3a8   :  { %2678 = vmatprep.subr.bf16.mxu1 %v9535_v9  ;;  %10859 = vst [vmem:[#allocation70_spill] sm:$0xff] %v9553_v33  ;;  %10860 = vst [vmem:[#allocation71_spill] sm:$0xff] %v9555_v46  ;;  %v9569_v9 = vld [vmem:[#allocation9 + $0x28] ss:$16 sps:$4 sm:$0xff]  }
 0x3a9   :  { %10865 = vst [vmem:[#allocation76_spill] sm:$0xff] %v9569_v9 }
 0x3aa   :  { %2638 = vmatpush1.bf16.msra.mxu0 %v9538_v11  ;;  %v9567_v11 = vld [vmem:[#allocation9 + $0x20] ss:$16 sps:$4 sm:$0xff]  }
 0x3ab   :  { %2679 = vmatpush1.bf16.msra.mxu1 %v9542_v12  ;;  %2950 = vmatprep.subr.bf16.mxu0 %v9551_v42  ;;  %v9565_v12 = vld [vmem:[#allocation9 + $0x2c] ss:$16 sps:$4 sm:$0xff]   ;;  %10864 = vst [vmem:[#allocation75_spill] sm:$0xff] %v9567_v11  ;;  %v9579_v42 = vld [vmem:[#allocation9 + $0x40] ss:$16 sps:$4 sm:$0xff]  }
 0x3ac   :  { %2991 = vmatprep.subr.bf16.mxu1 %v9553_v33  ;;  %10863 = vst [vmem:[#allocation74_spill] sm:$0xff] %v9565_v12  ;;  %v9575_v33 = vld [vmem:[#allocation9 + $0x44] ss:$16 sps:$4 sm:$0xff]   ;;  %10868 = vst [vmem:[#allocation79_spill] sm:$0xff] %v9579_v42 }
 0x3ad   :  { %2656 = vmatmul.mubr.bf16.vlgmr.msra.gmra.mrb[44].mxu0 %v9447_v2  ;;  %10866 = vst [vmem:[#allocation77_spill] sm:$0xff] %v9575_v33 }
 0x3ae   :  { %2697 = vmatmul.mubr.bf16.vlgmr.msra.gmra.mrb[44].mxu1 %v9447_v2  ;;  %2982 = vmatprep.mubr.bf16.mxu0 %v10698_v51  ;;  %v9563_v2 = vld [vmem:[#allocation9 + $0x24] ss:$16 sps:$4 sm:$0xff]  }
 0x3af   :  { %3023 = vmatprep.mubr.bf16.mxu1 %v10698_v51  ;;  %2951 = vmatpush1.bf16.msra.mxu0 %v9555_v46  ;;  %10862 = vst [vmem:[#allocation73_spill] sm:$0xff] %v9563_v2  ;;  %v9577_v46 = vld [vmem:[#allocation9 + $0x4c] ss:$16 sps:$4 sm:$0xff]  }
 0x3b0   :  { %2992 = vmatpush1.bf16.msra.mxu1 %v9557_v37  ;;  %2952 = vmatprep.subr.bf16.mxu0 %v9563_v2  ;;  %10867 = vst [vmem:[#allocation78_spill] sm:$0xff] %v9577_v46 }
 0x3b1   :  { %2993 = vmatprep.subr.bf16.mxu1 %v9565_v12  ;;  %v9596_v12 = vld [vmem:[#allocation9 + $0x60] ss:$16 sps:$4 sm:$0xff]  }
 0x3b2   :  { %10872 = vst [vmem:[#allocation83_spill] sm:$0xff] %v9596_v12 }
 0x3b3   :  { %2953 = vmatpush1.bf16.msra.mxu0 %v9567_v11  ;;  %v9594_v11 = vld [vmem:[#allocation9 + $0x6c] ss:$16 sps:$4 sm:$0xff]  }
 0x3b4   :  { %2994 = vmatpush1.bf16.msra.mxu1 %v9569_v9  ;;  %2954 = vmatprep.subr.bf16.mxu0 %v9575_v33  ;;  %v9592_v9 = vld [vmem:[#allocation9 + $0x64] ss:$16 sps:$4 sm:$0xff]   ;;  %10871 = vst [vmem:[#allocation82_spill] sm:$0xff] %v9594_v11 }
 0x3b5   :  { %2995 = vmatprep.subr.bf16.mxu1 %v9577_v46  ;;  %10870 = vst [vmem:[#allocation81_spill] sm:$0xff] %v9592_v9 }
 0x3b7   :  { %2955 = vmatpush1.bf16.msra.mxu0 %v9579_v42  ;;  %v9610_v42 = vld [vmem:[#allocation9 + $0x88] ss:$16 sps:$4 sm:$0xff]  }
 0x3b8   :  { %2996 = vmatpush1.bf16.msra.mxu1 %v9581_v19  ;;  %2956 = vmatprep.subr.bf16.mxu0 %v9592_v9  ;;  %v9606_v19 = vld [vmem:[#allocation9 + $0x8c] ss:$16 sps:$4 sm:$0xff]   ;;  %10877 = vst [vmem:[#allocation88_spill] sm:$0xff] %v9610_v42  ;;  %v9622_v9 = vld [vmem:[#allocation9 + $0xa8] ss:$16 sps:$4 sm:$0xff]  }
 0x3b9   :  { %2997 = vmatprep.subr.bf16.mxu1 %v9594_v11  ;;  %10875 = vst [vmem:[#allocation86_spill] sm:$0xff] %v9606_v19  ;;  %v9616_v11 = vld [vmem:[#allocation9 + $0xa4] ss:$16 sps:$4 sm:$0xff]   ;;  %10881 = vst [vmem:[#allocation92_spill] sm:$0xff] %v9622_v9 }
 0x3ba   :  { %10878 = vst [vmem:[#allocation89_spill] sm:$0xff] %v9616_v11 }
 0x3bb   :  { %2957 = vmatpush1.bf16.msra.mxu0 %v9596_v12  ;;  %v9618_v12 = vld [vmem:[#allocation9 + $0xac] ss:$16 sps:$4 sm:$0xff]  }
 0x3bc   :  { %10879 = vst [vmem:[#allocation90_spill] sm:$0xff] %v9618_v12 }
 0x3fa   :  { %v6903_v37 = vpop.xlane.xlu0 %6902 }
 0x3fb   :  { %v6924_v14 = vadd.f32 %v9319_v29, %v6903_v37  ;;  %v9598_v29 = vld [vmem:[#allocation9 + $0x68] ss:$16 sps:$4 sm:$0xff]   ;;  %v9604_v37 = vld [vmem:[#allocation9 + $0x84] ss:$16 sps:$4 sm:$0xff]  }
 0x3fc   :  { %10873 = vst [vmem:[#allocation84_spill] sm:$0xff] %v9598_v29  ;;  %2998 = vmatpush1.bf16.msra.mxu1 %v9598_v29  ;;  %10874 = vst [vmem:[#allocation85_spill] sm:$0xff] %v9604_v37  ;;  %2958 = vmatprep.subr.bf16.mxu0 %v9604_v37  ;;  %v9620_v29 = vld [vmem:[#allocation9 + $0xa0] ss:$16 sps:$4 sm:$0xff]   ;;  %v9634_v37 = vld [vmem:[#allocation9 + $0xc8] ss:$16 sps:$4 sm:$0xff]  }
 0x3fd   :  { %6933 = vst.msk [vmem:[%s10459_s9 + $0x8] sm:$0xff] %vm6931_vm1, %v6924_v14  ;;  %v9608_v14 = vld [vmem:[#allocation9 + $0x80] ss:$16 sps:$4 sm:$0xff]   ;;  %2999 = vmatprep.subr.bf16.mxu1 %v9606_v19  ;;  %10880 = vst [vmem:[#allocation91_spill] sm:$0xff] %v9620_v29  ;;  %v9628_v19 = vld [vmem:[#allocation9 + $0xc4] ss:$16 sps:$4 sm:$0xff]  }
 0x3fe   :  { %10876 = vst [vmem:[#allocation87_spill] sm:$0xff] %v9608_v14  ;;  %2959 = vmatpush1.bf16.msra.mxu0 %v9608_v14  ;;  %10882 = vst [vmem:[#allocation93_spill] sm:$0xff] %v9628_v19  ;;  %v9630_v14 = vld [vmem:[#allocation9 + $0xcc] ss:$16 sps:$4 sm:$0xff]  }
 0x3ff   :  { %2960 = vmatprep.subr.bf16.mxu0 %v9616_v11  ;;  %10883 = vst [vmem:[#allocation94_spill] sm:$0xff] %v9630_v14  ;;  %10885 = vst [vmem:[#allocation96_spill] sm:$0xff] %v9634_v37  ;;  %v9646_v11 = vld [vmem:[#allocation9 + $0xe8] ss:$16 sps:$4 sm:$0xff]  }
 0x400   :  { %3000 = vmatpush1.bf16.msra.mxu1 %v9610_v42  ;;  %v9632_v42 = vld [vmem:[#allocation9 + $0xc0] ss:$16 sps:$4 sm:$0xff]   ;;  %10889 = vst [vmem:[#allocation43_spill] sm:$0xff] %v9646_v11 }
 0x401   :  { %3001 = vmatprep.subr.bf16.mxu1 %v9618_v12  ;;  %10884 = vst [vmem:[#allocation95_spill] sm:$0xff] %v9632_v42  ;;  %v9640_v12 = vld [vmem:[#allocation9 + $0xe4] ss:$16 sps:$4 sm:$0xff]  }
 0x402   :  { %2961 = vmatpush1.bf16.msra.mxu0 %v9620_v29  ;;  %10886 = vst [vmem:[#allocation97_spill] sm:$0xff] %v9640_v12  ;;  %v9642_v29 = vld [vmem:[#allocation9 + $0xec] ss:$16 sps:$4 sm:$0xff]  }
 0x403   :  { %2962 = vmatprep.subr.bf16.mxu0 %v9628_v19  ;;  %10887 = vst [vmem:[#allocation98_spill] sm:$0xff] %v9642_v29 }
 0x404   :  { %3002 = vmatpush1.bf16.msra.mxu1 %v9622_v9  ;;  %v9644_v9 = vld [vmem:[#allocation9 + $0xe0] ss:$16 sps:$4 sm:$0xff]  }
 0x405   :  { %3003 = vmatprep.subr.bf16.mxu1 %v9630_v14  ;;  %10888 = vst [vmem:[#allocation99_spill] sm:$0xff] %v9644_v9 }
 0x406   :  { %2963 = vmatpush1.bf16.msra.mxu0 %v9632_v42 }
 0x407   :  { %2964 = vmatprep.subr.bf16.mxu0 %v9640_v12 }
 0x408   :  { %3004 = vmatpush1.bf16.msra.mxu1 %v9634_v37 }
 0x409   :  { %3005 = vmatprep.subr.bf16.mxu1 %v9642_v29 }
 0x40a   :  { %2965 = vmatpush1.bf16.msra.mxu0 %v9644_v9 }
 0x40b   :  { %3226 = vmatprep.subr.bf16.mxu0 %v9326_v32 }
 0x40c   :  { %3006 = vmatpush1.bf16.msra.mxu1 %v9646_v11 }
 0x40d   :  { %3267 = vmatprep.subr.bf16.mxu1 %v9328_v34 }
 0x440   :  { %v2099_v37 = vpop.f32.mrb[36].mxu0 }
 0x441   :  { %v2140_v42 = vpop.f32.mrb[36].mxu1  ;;  %v2101_v14 = vpop.f32.mrb[37].mxu0 }
 0x442   :  { %v2142_v19 = vpop.f32.mrb[37].mxu1  ;;  %v2103_v46 = vpop.f32.mrb[38].mxu0 }
 0x443   :  { %v2144_v33 = vpop.f32.mrb[38].mxu1  ;;  %v2104_v2 = vpop.f32.mrb[39].mxu0 }
 0x444   :  { %v2145_v7 = vpop.f32.mrb[39].mxu1 }
 0x460   :  { %v2375_v58 = vpop.f32.mrb[40].mxu0 }
 0x461   :  { %v2376_v12 = vadd.f32 %v2375_v58, %v2099_v37  ;;  %v2416_v57 = vpop.f32.mrb[40].mxu1  ;;  %v2377_v29 = vpop.f32.mrb[41].mxu0  ;;  %v10892_v37 = vld [vmem:[#allocation48_spill] sm:$0xff] }
 0x462   :  { %v2417_v56 = vadd.f32 %v2416_v57, %v2140_v42  ;;  %v2378_v9 = vadd.f32 %v2377_v29, %v2101_v14  ;;  %v2418_v63 = vpop.f32.mrb[41].mxu1  ;;  %v2379_v11 = vpop.f32.mrb[42].mxu0  ;;  %v285_v14 = vadd.f32 %v10892_v37, %v10824_v20 }
 0x463   :  { %v2423_v32 = vadd.f32 %v2376_v12, %v10821_v61  ;;  %v2419_v4 = vadd.f32 %v2418_v63, %v2142_v19  ;;  %v2420_v34 = vpop.f32.mrb[42].mxu1  ;;  %v2380_v60 = vpop.f32.mrb[43].mxu0 }
 0x464   :  { %v2424_v54 = vadd.f32 %v2378_v9, %v9181_v44  ;;  %v2421_v3 = vpop.f32.mrb[43].mxu1  ;;  %v2425_v7 = vadd.f32 %v2417_v56, %v9192_v24 }
 0x465   :  { %v7235_v46 = vmul.f32 -1.442695, %v2423_v32  ;;  %v2426_v58 = vadd.f32 %v2419_v4, %v9187_v15  ;;  %v10891_v4 = vld [vmem:[#allocation49_spill] sm:$0xff] }
 0x466   :  { %v7236_v33 = vmul.f32 -1.442695, %v2424_v54  ;;  %v10890_v54 = vld [vmem:[#allocation47_spill] sm:$0xff]  ;;  %v214_v56 = vadd.f32 %v10891_v4, %v9196_v50 }
 0x467   :  { %8383 = vpow2.f32 %v7235_v46  ;;  %v7237_v11 = vmul.f32 -1.442695, %v2426_v58  ;;  %v212_v9 = vadd.f32 %v10890_v54, %v8899_v48  ;;  %v10893_v46 = vld [vmem:[#allocation50_spill] sm:$0xff] }
 0x468   :  { %8385 = vpow2.f32 %v7236_v33  ;;  %v287_v33 = vadd.f32 %v10893_v46, %v8906_v53 }
 0x469   :  { %8387 = vtanh.f32 %v2425_v7 }
 0x471   :  { %v8384_v57 = vpop.eup %8383 }
 0x472   :  { %v8386_v42 = vpop.eup %8385  ;;  %v2736_v2 = vadd.f32 1.0, %v8384_v57 }
 0x473   :  { %v2742_v12 = vadd.f32 1.0, %v8386_v42  ;;  %v8388_v60 = vpop.eup %8387 }
 0x474   :  { %8389 = vrcp.f32 %v2736_v2 }
 0x475   :  { %8391 = vrcp.f32 %v2742_v12 }
 0x476   :  { %8393 = vpow2.f32 %v7237_v11 }
 0x47e   :  { %v8390_v63 = vpop.eup %8389 }
 0x47f   :  { %v8392_v3 = vpop.eup %8391  ;;  %v2753_v19 = vmul.f32 %v8390_v63, %v8388_v60 }
 0x480   :  { %v8394_v29 = vpop.eup %8393  ;;  %v2657_v32 = vpop.f32.mrb[44].mxu0  ;;  %v2752_v34 = vmul.f32 %v8392_v3, %v9345_v39 }
 0x481   :  { %v2705_v58 = vadd.f32 %v2657_v32, %v212_v9  ;;  %v2698_v7 = vpop.f32.mrb[44].mxu1  ;;  %v2659_v57 = vpop.f32.mrb[45].mxu0  ;;  %v2749_v63 = vadd.f32 1.0, %v8394_v29 }
 0x482   :  { %v2707_v42 = vadd.f32 %v2698_v7, %v285_v14  ;;  %v2706_v2 = vadd.f32 %v2659_v57, %v214_v56  ;;  %v2700_v11 = vpop.f32.mrb[45].mxu1  ;;  %v2661_v12 = vpop.f32.mrb[46].mxu0  ;;  %v9667_v60 = vadd.f32 %v2753_v19, %v2752_v34  ;;  %v10919_v57 = vld [vmem:[#allocation39_spill] sm:$0xff] }
 0x483   :  { %v7232_v54 = vmul.f32 -1.442695, %v2705_v58  ;;  %v2708_v4 = vadd.f32 %v2700_v11, %v287_v33  ;;  %v2702_v50 = vpop.f32.mrb[46].mxu1  ;;  %v2662_v37 = vpop.f32.mrb[47].mxu0  ;;  %v10922_v11 = vld [vmem:[#allocation42_spill] sm:$0xff]  ;;  %v10923_v12 = vld [vmem:[#allocation67_spill] sm:$0xff] }
 0x484   :  { %v7233_v20 = vmul.f32 -1.442695, %v2706_v2  ;;  %v2703_v48 = vpop.f32.mrb[47].mxu1  ;;  %v10921_v2 = vld [vmem:[#allocation41_spill] sm:$0xff]  ;;  %v10927_v37 = vld [vmem:[#allocation71_spill] sm:$0xff] }
 0x485   :  { %8395 = vpow2.f32 %v7232_v54  ;;  %v7234_v39 = vmul.f32 -1.442695, %v2708_v4  ;;  %v9673_v48 = vld [vmem:[%s10457_s7] ss:$0 sm:$0xff]  ;;  %v10925_v54 = vld [vmem:[#allocation69_spill] sm:$0xff]  ;;  %v10926_v4 = vld [vmem:[#allocation70_spill] sm:$0xff] }
 0x486   :  { %8397 = vpow2.f32 %v7233_v20 }
 0x487   :  { %8399 = vrcp.f32 %v2749_v63  ;;  %v10924_v63 = vld [vmem:[#allocation68_spill] sm:$0xff] }
 0x488   :  { %8401 = vtanh.f32 %v9667_v60 }
 0x489   :  { %8403 = vtanh.f32 %v2707_v42  ;;  %v10920_v42 = vld [vmem:[#allocation40_spill] sm:$0xff] }
 0x48a   :  { %8405 = vpow2.f32 %v7234_v39  ;;  %v10928_v39 = vld [vmem:[#allocation72_spill] sm:$0xff] }
 0x48f   :  { %v8396_v3 = vpop.eup %8395 }
 0x490   :  { %v8398_v9 = vpop.eup %8397  ;;  %v2712_v56 = vadd.f32 1.0, %v8396_v3  ;;  %v10929_v3 = vld [vmem:[#allocation73_spill] sm:$0xff] }
 0x491   :  { %v8400_v14 = vpop.eup %8399  ;;  %v2718_v19 = vadd.f32 1.0, %v8398_v9  ;;  %v10930_v9 = vld [vmem:[#allocation74_spill] sm:$0xff] }
 0x492   :  { %v8402_v29 = vpop.eup %8401  ;;  %8407 = vrcp.f32 %v2712_v56  ;;  %v10931_v56 = vld [vmem:[#allocation75_spill] sm:$0xff] }
 0x493   :  { %8409 = vrcp.f32 %v2718_v19  ;;  %v2756_v50 = vmul.f32 %v8402_v29, %v8400_v14  ;;  %v8404_v34 = vpop.eup %8403  ;;  %v10932_v14 = vld [vmem:[#allocation76_spill] sm:$0xff]  ;;  %v10933_v19 = vld [vmem:[#allocation77_spill] sm:$0xff]  ;;  %v10934_v29 = vld [vmem:[#allocation78_spill] sm:$0xff] }
 0x494   :  { %v8406_v46 = vpop.eup %8405 }
 0x495   :  { %v6894_v20 = vmul.f32 %v9673_v48, %v2756_v50  ;;  %v2757_v32 = vpack.c.bf16 %v2756_v50, %v2756_v50  ;;  %v10935_v50 = vld [vmem:[#allocation79_spill] sm:$0xff] }
 0x497   :  { %6904 = vadd.xlane.f32.xlu1 %v6894_v20  ;;  %2983 = vmatmul.mubr.bf16.vlgmr.msra.gmra.mrb[48].mxu0 %v2757_v32  ;;  %v10936_v20 = vld [vmem:[#allocation80_spill] sm:$0xff] }
 0x498   :  { %3024 = vmatmul.mubr.bf16.vlgmr.msra.gmra.mrb[48].mxu1 %v2757_v32  ;;  %3227 = vmatpush1.bf16.msra.mxu0 %v9348_v45  ;;  %v10937_v32 = vld [vmem:[#allocation81_spill] sm:$0xff] }
 0x499   :  { %3268 = vmatpush1.bf16.msra.mxu1 %v9350_v62  ;;  %3228 = vmatprep.subr.bf16.mxu0 %v9353_v49  ;;  %v2725_v49 = vadd.f32 1.0, %v8406_v46  ;;  %v10939_v46 = vld [vmem:[#allocation83_spill] sm:$0xff] }
 0x49a   :  { %3269 = vmatprep.subr.bf16.mxu1 %v9355_v55  ;;  %3258 = vmatprep.mubr.bf16.mxu0 %v10698_v51 }
 0x49b   :  { %3299 = vmatprep.mubr.bf16.mxu1 %v10698_v51 }
 0x49c   :  { %v8408_v33 = vpop.eup %8407  ;;  %3229 = vmatpush1.bf16.msra.mxu0 %v9358_v8 }
 0x49d   :  { %v8410_v58 = vpop.eup %8409  ;;  %v2729_v7 = vmul.f32 %v8408_v33, %v8404_v34  ;;  %3270 = vmatpush1.bf16.msra.mxu1 %v9362_v6  ;;  %3230 = vmatprep.subr.bf16.mxu0 %v9364_v47  ;;  %v10938_v34 = vld [vmem:[#allocation82_spill] sm:$0xff]  ;;  %v10940_v33 = vld [vmem:[#allocation84_spill] sm:$0xff] }
 0x49e   :  { %v2728_v45 = vmul.f32 %v8410_v58, %v9384_v18  ;;  %3271 = vmatprep.subr.bf16.mxu1 %v9367_v5  ;;  %v10894_v5 = vld [vmem:[#allocation14_spill] sm:$0xff]  ;;  %v10899_v18 = vld [vmem:[#allocation19_spill] sm:$0xff]  ;;  %v10941_v58 = vld [vmem:[#allocation85_spill] sm:$0xff] }
 0x4a0   :  { %v9687_v62 = vadd.f32 %v2729_v7, %v2728_v45  ;;  %3231 = vmatpush1.bf16.msra.mxu0 %v9372_v10  ;;  %v10895_v10 = vld [vmem:[#allocation15_spill] sm:$0xff]  ;;  %v10942_v7 = vld [vmem:[#allocation86_spill] sm:$0xff] }
 0x4a1   :  { %3272 = vmatpush1.bf16.msra.mxu1 %v9376_v0  ;;  %3232 = vmatprep.subr.bf16.mxu0 %v9378_v13  ;;  %v10896_v0 = vld [vmem:[#allocation16_spill] sm:$0xff]  ;;  %v10897_v13 = vld [vmem:[#allocation17_spill] sm:$0xff]  ;;  %v10943_v45 = vld [vmem:[#allocation87_spill] sm:$0xff] }
 0x4a2   :  { %3273 = vmatprep.subr.bf16.mxu1 %v9382_v17  ;;  %8411 = vtanh.f32 %v9687_v62  ;;  %v10898_v17 = vld [vmem:[#allocation18_spill] sm:$0xff] }
 0x4a3   :  { %8413 = vrcp.f32 %v2725_v49  ;;  %v10944_v49 = vld [vmem:[#allocation88_spill] sm:$0xff] }
 0x4a4   :  { %3233 = vmatpush1.bf16.msra.mxu0 %v9387_v21  ;;  %v10900_v21 = vld [vmem:[#allocation20_spill] sm:$0xff] }
 0x4a5   :  { %3274 = vmatpush1.bf16.msra.mxu1 %v9391_v22  ;;  %3234 = vmatprep.subr.bf16.mxu0 %v9393_v23  ;;  %v10901_v22 = vld [vmem:[#allocation21_spill] sm:$0xff]  ;;  %v10902_v23 = vld [vmem:[#allocation22_spill] sm:$0xff] }
 0x4a6   :  { %3275 = vmatprep.subr.bf16.mxu1 %v9396_v16  ;;  %v10903_v16 = vld [vmem:[#allocation23_spill] sm:$0xff] }
 0x4a8   :  { %3235 = vmatpush1.bf16.msra.mxu0 %v9400_v25  ;;  %v10904_v25 = vld [vmem:[#allocation24_spill] sm:$0xff] }
 0x4a9   :  { %3276 = vmatpush1.bf16.msra.mxu1 %v9404_v26  ;;  %3236 = vmatprep.subr.bf16.mxu0 %v9406_v27  ;;  %v10905_v26 = vld [vmem:[#allocation25_spill] sm:$0xff]  ;;  %v10906_v27 = vld [vmem:[#allocation26_spill] sm:$0xff] }
 0x4aa   :  { %3277 = vmatprep.subr.bf16.mxu1 %v9409_v28  ;;  %v10907_v28 = vld [vmem:[#allocation27_spill] sm:$0xff] }
 0x4ac   :  { %v8412_v55 = vpop.eup %8411  ;;  %3237 = vmatpush1.bf16.msra.mxu0 %v9412_v30  ;;  %v10908_v30 = vld [vmem:[#allocation28_spill] sm:$0xff] }
 0x4ad   :  { %3278 = vmatpush1.bf16.msra.mxu1 %v9416_v31  ;;  %3238 = vmatprep.subr.bf16.mxu0 %v9418_v35  ;;  %v8414_v8 = vpop.eup %8413  ;;  %v10909_v31 = vld [vmem:[#allocation29_spill] sm:$0xff]  ;;  %v10910_v35 = vld [vmem:[#allocation30_spill] sm:$0xff] }
 0x4ae   :  { %3279 = vmatprep.subr.bf16.mxu1 %v9421_v36  ;;  %v2732_v6 = vmul.f32 %v8414_v8, %v8412_v55  ;;  %v10911_v36 = vld [vmem:[#allocation31_spill] sm:$0xff]  ;;  %v10945_v55 = vld [vmem:[#allocation89_spill] sm:$0xff]  ;;  %v10946_v8 = vld [vmem:[#allocation90_spill] sm:$0xff] }
 0x4b0   :  { %3239 = vmatpush1.bf16.msra.mxu0 %v9424_v38  ;;  %v3033_v47 = vpack.c.bf16 %v2732_v6, %v2732_v6  ;;  %v10912_v38 = vld [vmem:[#allocation32_spill] sm:$0xff]  ;;  %v10947_v6 = vld [vmem:[#allocation91_spill] sm:$0xff] }
 0x4b1   :  { %3280 = vmatpush1.bf16.msra.mxu1 %v9428_v40  ;;  %3240 = vmatprep.subr.bf16.mxu0 %v9430_v41  ;;  %v10913_v40 = vld [vmem:[#allocation33_spill] sm:$0xff]  ;;  %v10914_v41 = vld [vmem:[#allocation34_spill] sm:$0xff] }
 0x4b2   :  { %3281 = vmatprep.subr.bf16.mxu1 %v9433_v43  ;;  %v10915_v43 = vld [vmem:[#allocation35_spill] sm:$0xff] }
 0x4b4   :  { %3241 = vmatpush1.bf16.msra.mxu0 %v9436_v52  ;;  %v10916_v52 = vld [vmem:[#allocation36_spill] sm:$0xff] }
 0x4b5   :  { %3282 = vmatpush1.bf16.msra.mxu1 %v9440_v1  ;;  %3508 = vmatprep.subr.bf16.mxu0 %v9442_v59  ;;  %v10917_v1 = vld [vmem:[#allocation37_spill] sm:$0xff]  ;;  %v10918_v59 = vld [vmem:[#allocation38_spill] sm:$0xff] }
 0x4b6   :  { %3549 = vmatprep.subr.bf16.mxu1 %v10894_v5  ;;  %v10949_v5 = vld [vmem:[#allocation93_spill] sm:$0xff] }
 0x4b7   :  { %3259 = vmatmul.mubr.bf16.vlgmr.msra.gmra.mrb[52].mxu0 %v3033_v47 }
 0x4b8   :  { %3300 = vmatmul.mubr.bf16.vlgmr.msra.gmra.mrb[52].mxu1 %v3033_v47  ;;  %3509 = vmatpush1.bf16.msra.mxu0 %v10895_v10  ;;  %v10950_v10 = vld [vmem:[#allocation94_spill] sm:$0xff] }
 0x4b9   :  { %3550 = vmatpush1.bf16.msra.mxu1 %v10896_v0  ;;  %3510 = vmatprep.subr.bf16.mxu0 %v10897_v13  ;;  %v10951_v0 = vld [vmem:[#allocation95_spill] sm:$0xff]  ;;  %v10952_v13 = vld [vmem:[#allocation96_spill] sm:$0xff] }
 0x4ba   :  { %3551 = vmatprep.subr.bf16.mxu1 %v10898_v17  ;;  %3540 = vmatprep.mubr.bf16.mxu0 %v10698_v51  ;;  %v10953_v17 = vld [vmem:[#allocation97_spill] sm:$0xff] }
 0x4bb   :  { %3581 = vmatprep.mubr.bf16.mxu1 %v10698_v51 }
 0x4bc   :  { %3511 = vmatpush1.bf16.msra.mxu0 %v10899_v18  ;;  %v10954_v18 = vld [vmem:[#allocation98_spill] sm:$0xff] }
 0x4bd   :  { %3552 = vmatpush1.bf16.msra.mxu1 %v10900_v21  ;;  %3512 = vmatprep.subr.bf16.mxu0 %v10901_v22  ;;  %v10955_v21 = vld [vmem:[#allocation99_spill] sm:$0xff] }
 0x4be   :  { %3553 = vmatprep.subr.bf16.mxu1 %v10902_v23  ;;  %v10956_v22 = vld [vmem:[#allocation43_spill] sm:$0xff] }
 0x4c0   :  { %3513 = vmatpush1.bf16.msra.mxu0 %v10903_v16  ;;  %v9780_v16 = vld [vmem:[#allocation4] ss:$0 sm:$0xff] }
 0x4c1   :  { %3554 = vmatpush1.bf16.msra.mxu1 %v10904_v25  ;;  %3514 = vmatprep.subr.bf16.mxu0 %v10905_v26  ;;  %10957 = vst [vmem:[#allocation45_spill] sm:$0xff] %v9780_v16  ;;  %v9787_v26 = vld [vmem:[#allocation7 + $0x4] ss:$16 sps:$4 sm:$0xff]  }
 0x4c2   :  { %3555 = vmatprep.subr.bf16.mxu1 %v10906_v27  ;;  %v9789_v27 = vld [vmem:[#allocation7 + $0xc] ss:$16 sps:$4 sm:$0xff]  }
 0x4c4   :  { %3515 = vmatpush1.bf16.msra.mxu0 %v10907_v28 }
 0x4c5   :  { %3556 = vmatpush1.bf16.msra.mxu1 %v10908_v30  ;;  %3516 = vmatprep.subr.bf16.mxu0 %v10909_v31 }
 0x4c6   :  { %3557 = vmatprep.subr.bf16.mxu1 %v10910_v35 }
 0x4c8   :  { %3517 = vmatpush1.bf16.msra.mxu0 %v10911_v36 }
 0x4c9   :  { %3558 = vmatpush1.bf16.msra.mxu1 %v10912_v38  ;;  %3518 = vmatprep.subr.bf16.mxu0 %v10913_v40 }
 0x4ca   :  { %3559 = vmatprep.subr.bf16.mxu1 %v10914_v41 }
 0x4cc   :  { %3519 = vmatpush1.bf16.msra.mxu0 %v10915_v43 }
 0x4cd   :  { %3560 = vmatpush1.bf16.msra.mxu1 %v10916_v52  ;;  %3520 = vmatprep.subr.bf16.mxu0 %v10917_v1 }
 0x4ce   :  { %3561 = vmatprep.subr.bf16.mxu1 %v10918_v59 }
 0x4d0   :  { %3521 = vmatpush1.bf16.msra.mxu0 %v10919_v57 }
 0x4d1   :  { %3562 = vmatpush1.bf16.msra.mxu1 %v10920_v42  ;;  %3522 = vmatprep.subr.bf16.mxu0 %v10921_v2 }
 0x4d2   :  { %3563 = vmatprep.subr.bf16.mxu1 %v10922_v11 }
 0x4d4   :  { %3523 = vmatpush1.bf16.msra.mxu0 %v10923_v12 }
 0x4d5   :  { %3564 = vmatpush1.bf16.msra.mxu1 %v10924_v63  ;;  %3835 = vmatprep.subr.bf16.mxu0 %v10925_v54 }
 0x4d6   :  { %3876 = vmatprep.subr.bf16.mxu1 %v10926_v4 }
 0x4d7   :  { %3541 = vmatmul.mubr.bf16.vlgmr.msra.gmra.mrb[56].mxu0 %v3033_v47 }
 0x4d8   :  { %3582 = vmatmul.mubr.bf16.vlgmr.msra.gmra.mrb[56].mxu1 %v3033_v47  ;;  %3836 = vmatpush1.bf16.msra.mxu0 %v10927_v37  ;;  %v10948_v47 = vld [vmem:[#allocation92_spill] sm:$0xff] }
 0x4d9   :  { %3877 = vmatpush1.bf16.msra.mxu1 %v10928_v39  ;;  %3837 = vmatprep.subr.bf16.mxu0 %v10929_v3 }
 0x4da   :  { %3878 = vmatprep.subr.bf16.mxu1 %v10930_v9  ;;  %3867 = vmatprep.mubr.bf16.mxu0 %v10698_v51 }
 0x4db   :  { %3908 = vmatprep.mubr.bf16.mxu1 %v10698_v51 }
 0x4dc   :  { %3838 = vmatpush1.bf16.msra.mxu0 %v10931_v56 }
 0x4dd   :  { %3879 = vmatpush1.bf16.msra.mxu1 %v10932_v14  ;;  %3839 = vmatprep.subr.bf16.mxu0 %v10933_v19 }
 0x4de   :  { %3880 = vmatprep.subr.bf16.mxu1 %v10934_v29 }
 0x4e0   :  { %3840 = vmatpush1.bf16.msra.mxu0 %v10935_v50 }
 0x4e1   :  { %3881 = vmatpush1.bf16.msra.mxu1 %v10936_v20  ;;  %3841 = vmatprep.subr.bf16.mxu0 %v10937_v32 }
 0x4e2   :  { %3882 = vmatprep.subr.bf16.mxu1 %v10938_v34 }
 0x4e4   :  { %3842 = vmatpush1.bf16.msra.mxu0 %v10939_v46 }
 0x4e5   :  { %3883 = vmatpush1.bf16.msra.mxu1 %v10940_v33  ;;  %3843 = vmatprep.subr.bf16.mxu0 %v10941_v58  ;;  %v10958_v58 = vld [vmem:[#allocation12_spill] sm:$0xff] }
 0x4e6   :  { %3884 = vmatprep.subr.bf16.mxu1 %v10942_v7  ;;  %v10959_v7 = vld [vmem:[#allocation51_spill] sm:$0xff] }
 0x4e8   :  { %3844 = vmatpush1.bf16.msra.mxu0 %v10943_v45  ;;  %v218_v45 = vadd.f32 %v10959_v7, %v10958_v58 }
 0x4e9   :  { %3885 = vmatpush1.bf16.msra.mxu1 %v10944_v49  ;;  %3845 = vmatprep.subr.bf16.mxu0 %v10945_v55 }
 0x4ea   :  { %3886 = vmatprep.subr.bf16.mxu1 %v10946_v8  ;;  %v10960_v8 = vld [vmem:[#allocation100_spill] sm:$0xff] }
 0x4ec   :  { %3846 = vmatpush1.bf16.msra.mxu0 %v10947_v6  ;;  %v10961_v6 = vld [vmem:[#allocation53_spill] sm:$0xff] }
 0x4ed   :  { %3887 = vmatpush1.bf16.msra.mxu1 %v10948_v47  ;;  %3847 = vmatprep.subr.bf16.mxu0 %v10949_v5  ;;  %v220_v47 = vadd.f32 %v10961_v6, %v10960_v8  ;;  %v10962_v5 = vld [vmem:[#allocation13_spill] sm:$0xff] }
 0x4ee   :  { %3888 = vmatprep.subr.bf16.mxu1 %v10950_v10  ;;  %v10963_v10 = vld [vmem:[#allocation52_spill] sm:$0xff]  ;;  %v9843_v6 = vld [vmem:[#allocation7 + $0x6c] ss:$16 sps:$4 sm:$0xff]  }
 0x4f0   :  { %3848 = vmatpush1.bf16.msra.mxu0 %v10951_v0  ;;  %v291_v0 = vadd.f32 %v10963_v10, %v10962_v5 }
 0x4f1   :  { %3889 = vmatpush1.bf16.msra.mxu1 %v10952_v13  ;;  %3849 = vmatprep.subr.bf16.mxu0 %v10953_v17 }
 0x4f2   :  { %3890 = vmatprep.subr.bf16.mxu1 %v10954_v18  ;;  %v10964_v18 = vld [vmem:[#allocation54_spill] sm:$0xff] }
 0x4f4   :  { %3850 = vmatpush1.bf16.msra.mxu0 %v10955_v21  ;;  %v293_v21 = vadd.f32 %v10964_v18, %v8906_v53  ;;  %v9861_v18 = vld [vmem:[#allocation7 + $0x80] ss:$16 sps:$4 sm:$0xff]  }
 0x4f5   :  { %3891 = vmatpush1.bf16.msra.mxu1 %v10956_v22  ;;  %4111 = vmatprep.subr.bf16.mxu0 %v9787_v26 }
 0x4f6   :  { %4152 = vmatprep.subr.bf16.mxu1 %v9789_v27 }
 0x524   :  { %v6905_v23 = vpop.xlane.xlu1 %6904 }
 0x525   :  { %v6925_v25 = vadd.f32 %v9780_v16, %v6905_v23 }
 0x527   :  { %6934 = vst.msk [vmem:[%s10459_s9 + $0x10] sm:$0xff] %vm6931_vm1, %v6925_v25 }
 0x56a   :  { %v2984_v28 = vpop.f32.mrb[48].mxu0 }
 0x56b   :  { %v3025_v30 = vpop.f32.mrb[48].mxu1  ;;  %v2986_v31 = vpop.f32.mrb[49].mxu0 }
 0x56c   :  { %v3027_v35 = vpop.f32.mrb[49].mxu1  ;;  %v2988_v36 = vpop.f32.mrb[50].mxu0 }
 0x56d   :  { %v3029_v38 = vpop.f32.mrb[50].mxu1  ;;  %v2989_v40 = vpop.f32.mrb[51].mxu0 }
 0x56e   :  { %v3030_v41 = vpop.f32.mrb[51].mxu1 }
 0x58a   :  { %v3260_v43 = vpop.f32.mrb[52].mxu0 }
 0x58b   :  { %v3261_v52 = vadd.f32 %v3260_v43, %v2984_v28  ;;  %v3301_v1 = vpop.f32.mrb[52].mxu1  ;;  %v3262_v59 = vpop.f32.mrb[53].mxu0 }
 0x58c   :  { %v3302_v57 = vadd.f32 %v3301_v1, %v3025_v30  ;;  %v3263_v42 = vadd.f32 %v3262_v59, %v2986_v31  ;;  %v3303_v2 = vpop.f32.mrb[53].mxu1  ;;  %v3264_v11 = vpop.f32.mrb[54].mxu0 }
 0x58d   :  { %v3308_v12 = vadd.f32 %v3261_v52, %v10821_v61  ;;  %v3304_v63 = vadd.f32 %v3303_v2, %v3027_v35  ;;  %v3305_v54 = vpop.f32.mrb[54].mxu1  ;;  %v3265_v4 = vpop.f32.mrb[55].mxu0 }
 0x58e   :  { %v3309_v37 = vadd.f32 %v3263_v42, %v9181_v44  ;;  %v3306_v39 = vpop.f32.mrb[55].mxu1  ;;  %v3310_v14 = vadd.f32 %v3302_v57, %v9192_v24  ;;  %v9809_v4 = vld [vmem:[#allocation7] ss:$16 sps:$4 sm:$0xff]  }
 0x58f   :  { %v7337_v3 = vmul.f32 -1.442695, %v3308_v12  ;;  %v3311_v56 = vadd.f32 %v3304_v63, %v9187_v15 }
 0x590   :  { %v7338_v9 = vmul.f32 -1.442695, %v3309_v37  ;;  %v9811_v37 = vld [vmem:[#allocation7 + $0x8] ss:$16 sps:$4 sm:$0xff]  }
 0x591   :  { %8415 = vpow2.f32 %v7337_v3  ;;  %v7339_v20 = vmul.f32 -1.442695, %v3311_v56  ;;  %v9816_v56 = vld [vmem:[#allocation7 + $0x2c] ss:$16 sps:$4 sm:$0xff]  }
 0x592   :  { %8417 = vpow2.f32 %v7338_v9  ;;  %v9814_v9 = vld [vmem:[#allocation7 + $0x24] ss:$16 sps:$4 sm:$0xff]  }
 0x593   :  { %8419 = vtanh.f32 %v3310_v14  ;;  %v9819_v14 = vld [vmem:[#allocation7 + $0x20] ss:$16 sps:$4 sm:$0xff]  }
 0x59b   :  { %v8416_v19 = vpop.eup %8415 }
 0x59c   :  { %v8418_v29 = vpop.eup %8417  ;;  %v3621_v50 = vadd.f32 1.0, %v8416_v19  ;;  %v9823_v19 = vld [vmem:[#allocation7 + $0x28] ss:$16 sps:$4 sm:$0xff]  }
 0x59d   :  { %v3627_v32 = vadd.f32 1.0, %v8418_v29  ;;  %v8420_v34 = vpop.eup %8419  ;;  %v9825_v29 = vld [vmem:[#allocation7 + $0x44] ss:$16 sps:$4 sm:$0xff]  }
 0x59e   :  { %8421 = vrcp.f32 %v3621_v50 }
 0x59f   :  { %8423 = vrcp.f32 %v3627_v32 }
 0x5a0   :  { %8425 = vpow2.f32 %v7339_v20  ;;  %v9828_v20 = vld [vmem:[#allocation7 + $0x4c] ss:$16 sps:$4 sm:$0xff]  }
 0x5a8   :  { %v8422_v46 = vpop.eup %8421 }
 0x5a9   :  { %v8424_v33 = vpop.eup %8423  ;;  %v3638_v49 = vmul.f32 %v8422_v46, %v8420_v34  ;;  %v9833_v46 = vld [vmem:[#allocation7 + $0x40] ss:$16 sps:$4 sm:$0xff]  }
 0x5aa   :  { %v8426_v55 = vpop.eup %8425  ;;  %v3637_v13 = vmul.f32 %v8424_v33, %v9667_v60  ;;  %v3542_v17 = vpop.f32.mrb[56].mxu0 }
 0x5ab   :  { %v3590_v22 = vadd.f32 %v3542_v17, %v218_v45  ;;  %v3583_v23 = vpop.f32.mrb[56].mxu1  ;;  %v3544_v25 = vpop.f32.mrb[57].mxu0  ;;  %v3634_v38 = vadd.f32 1.0, %v8426_v55  ;;  %v9837_v45 = vld [vmem:[#allocation7 + $0x48] ss:$16 sps:$4 sm:$0xff]  }
 0x5ac   :  { %v3592_v28 = vadd.f32 %v3583_v23, %v291_v0  ;;  %v3591_v30 = vadd.f32 %v3544_v25, %v220_v47  ;;  %v3585_v31 = vpop.f32.mrb[57].mxu1  ;;  %v3546_v35 = vpop.f32.mrb[58].mxu0  ;;  %v9806_v36 = vadd.f32 %v3638_v49, %v3637_v13  ;;  %v9839_v49 = vld [vmem:[#allocation7 + $0x64] ss:$16 sps:$4 sm:$0xff]   ;;  %v9848_v0 = vld [vmem:[#allocation7 + $0x60] ss:$16 sps:$4 sm:$0xff]  }
 0x5ad   :  { %v7334_v40 = vmul.f32 -1.442695, %v3590_v22  ;;  %v3593_v41 = vadd.f32 %v3585_v31, %v293_v21  ;;  %v3587_v43 = vpop.f32.mrb[58].mxu1  ;;  %v3547_v52 = vpop.f32.mrb[59].mxu0  ;;  %v9852_v13 = vld [vmem:[#allocation7 + $0x68] ss:$16 sps:$4 sm:$0xff]  }
 0x5ae   :  { %v7335_v1 = vmul.f32 -1.442695, %v3591_v30  ;;  %v3588_v60 = vpop.f32.mrb[59].mxu1  ;;  %v9854_v17 = vld [vmem:[#allocation7 + $0x84] ss:$16 sps:$4 sm:$0xff]  }
 0x5af   :  { %8427 = vpow2.f32 %v7334_v40  ;;  %v7336_v59 = vmul.f32 -1.442695, %v3593_v41  ;;  %v9865_v21 = vld [vmem:[#allocation7 + $0x88] ss:$16 sps:$4 sm:$0xff]   ;;  %v9867_v22 = vld [vmem:[#allocation7 + $0xa4] ss:$16 sps:$4 sm:$0xff]  }
 0x5b0   :  { %8429 = vpow2.f32 %v7335_v1  ;;  %v9870_v23 = vld [vmem:[#allocation7 + $0xac] ss:$16 sps:$4 sm:$0xff]   ;;  %v9873_v25 = vld [vmem:[#allocation7 + $0xa0] ss:$16 sps:$4 sm:$0xff]   ;;  %v9879_v30 = vld [vmem:[#allocation7 + $0xc4] ss:$16 sps:$4 sm:$0xff]  }
 0x5b1   :  { %8431 = vrcp.f32 %v3634_v38  ;;  %v9882_v31 = vld [vmem:[#allocation7 + $0xcc] ss:$16 sps:$4 sm:$0xff]   ;;  %v9885_v38 = vld [vmem:[#allocation7 + $0xc0] ss:$16 sps:$4 sm:$0xff]   ;;  %v9889_v40 = vld [vmem:[#allocation7 + $0xc8] ss:$16 sps:$4 sm:$0xff]  }
 0x5b2   :  { %8433 = vtanh.f32 %v9806_v36  ;;  %v9891_v41 = vld [vmem:[#allocation7 + $0xe4] ss:$16 sps:$4 sm:$0xff]   ;;  %v9894_v52 = vld [vmem:[#allocation7 + $0xec] ss:$16 sps:$4 sm:$0xff]   ;;  %v9897_v60 = vld [vmem:[#allocation7 + $0xe0] ss:$16 sps:$4 sm:$0xff]  }
 0x5b3   :  { %8435 = vtanh.f32 %v3592_v28  ;;  %v9877_v28 = vld [vmem:[#allocation7 + $0xa8] ss:$16 sps:$4 sm:$0xff]  }
 0x5b4   :  { %8437 = vpow2.f32 %v7336_v59  ;;  %v9901_v59 = vld [vmem:[#allocation7 + $0xe8] ss:$16 sps:$4 sm:$0xff]  }
 0x5b9   :  { %v8428_v57 = vpop.eup %8427 }
 0x5ba   :  { %v8430_v42 = vpop.eup %8429  ;;  %v3597_v2 = vadd.f32 1.0, %v8428_v57  ;;  %v9903_v57 = vld [vmem:[#allocation5 + $0x4] ss:$16 sps:$4 sm:$0xff]  }
 0x5bb   :  { %v8432_v11 = vpop.eup %8431  ;;  %v3603_v12 = vadd.f32 1.0, %v8430_v42  ;;  %10965 = vst [vmem:[#allocation44_spill] sm:$0xff] %v9903_v57  ;;  %v9906_v42 = vld [vmem:[#allocation5 + $0xc] ss:$16 sps:$4 sm:$0xff]  }
 0x5bc   :  { %v8434_v63 = vpop.eup %8433  ;;  %8439 = vrcp.f32 %v3597_v2  ;;  %10966 = vst [vmem:[#allocation46_spill] sm:$0xff] %v9906_v42 }
 0x5bd   :  { %8441 = vrcp.f32 %v3603_v12  ;;  %v3641_v54 = vmul.f32 %v8434_v63, %v8432_v11  ;;  %v8436_v50 = vpop.eup %8435  ;;  %v9911_v11 = vld [vmem:[#allocation5] ss:$16 sps:$4 sm:$0xff]   ;;  %v9915_v12 = vld [vmem:[#allocation5 + $0x8] ss:$16 sps:$4 sm:$0xff]   ;;  %v9917_v63 = vld [vmem:[#allocation5 + $0x24] ss:$16 sps:$4 sm:$0xff]  }
 0x5be   :  { %v8438_v32 = vpop.eup %8437  ;;  %10967 = vst [vmem:[#allocation47_spill] sm:$0xff] %v9911_v11  ;;  %10968 = vst [vmem:[#allocation49_spill] sm:$0xff] %v9915_v12 }
 0x5bf   :  { %v6895_v39 = vmul.f32 %v9673_v48, %v3641_v54  ;;  %v3642_v3 = vpack.c.bf16 %v3641_v54, %v3641_v54  ;;  %v3610_v10 = vadd.f32 1.0, %v8438_v32  ;;  %10969 = vst [vmem:[#allocation48_spill] sm:$0xff] %v9917_v63  ;;  %v9920_v54 = vld [vmem:[#allocation5 + $0x2c] ss:$16 sps:$4 sm:$0xff]  }
 0x5c0   :  { %10970 = vst [vmem:[#allocation50_spill] sm:$0xff] %v9920_v54  ;;  %v9934_v32 = vld [vmem:[#allocation5 + $0x4c] ss:$16 sps:$4 sm:$0xff]  }
 0x5c1   :  { %6906 = vadd.xlane.f32.xlu1 %v6895_v39  ;;  %3868 = vmatmul.mubr.bf16.vlgmr.msra.gmra.mrb[60].mxu0 %v3642_v3  ;;  %v9925_v39 = vld [vmem:[#allocation5 + $0x20] ss:$16 sps:$4 sm:$0xff]   ;;  %10974 = vst [vmem:[#allocation17_spill] sm:$0xff] %v9934_v32 }
 0x5c2   :  { %3909 = vmatmul.mubr.bf16.vlgmr.msra.gmra.mrb[60].mxu1 %v3642_v3  ;;  %4112 = vmatpush1.bf16.msra.mxu0 %v9809_v4  ;;  %10971 = vst [vmem:[#allocation14_spill] sm:$0xff] %v9925_v39  ;;  %v9929_v3 = vld [vmem:[#allocation5 + $0x28] ss:$16 sps:$4 sm:$0xff]  }
 0x5c3   :  { %4153 = vmatpush1.bf16.msra.mxu1 %v9811_v37  ;;  %4113 = vmatprep.subr.bf16.mxu0 %v9814_v9  ;;  %10972 = vst [vmem:[#allocation15_spill] sm:$0xff] %v9929_v3 }
 0x5c4   :  { %4154 = vmatprep.subr.bf16.mxu1 %v9816_v56  ;;  %4143 = vmatprep.mubr.bf16.mxu0 %v10698_v51 }
 0x5c5   :  { %4184 = vmatprep.mubr.bf16.mxu1 %v10698_v51 }
 0x5c6   :  { %v8440_v34 = vpop.eup %8439  ;;  %4114 = vmatpush1.bf16.msra.mxu0 %v9819_v14 }
 0x5c7   :  { %v8442_v33 = vpop.eup %8441  ;;  %v3614_v7 = vmul.f32 %v8440_v34, %v8436_v50  ;;  %4155 = vmatpush1.bf16.msra.mxu1 %v9823_v19  ;;  %4115 = vmatprep.subr.bf16.mxu0 %v9825_v29  ;;  %v9931_v50 = vld [vmem:[#allocation5 + $0x44] ss:$16 sps:$4 sm:$0xff]   ;;  %v9939_v34 = vld [vmem:[#allocation5 + $0x40] ss:$16 sps:$4 sm:$0xff]  }
 0x5c8   :  { %v3613_v55 = vmul.f32 %v8442_v33, %v9687_v62  ;;  %4156 = vmatprep.subr.bf16.mxu1 %v9828_v20  ;;  %v9857_v62 = vld [vmem:[#allocation7 + $0x8c] ss:$16 sps:$4 sm:$0xff]   ;;  %10973 = vst [vmem:[#allocation16_spill] sm:$0xff] %v9931_v50  ;;  %10975 = vst [vmem:[#allocation18_spill] sm:$0xff] %v9939_v34  ;;  %v9943_v33 = vld [vmem:[#allocation5 + $0x48] ss:$16 sps:$4 sm:$0xff]  }
 0x5c9   :  { %10976 = vst [vmem:[#allocation19_spill] sm:$0xff] %v9943_v33 }
 0x5ca   :  { %v9845_v47 = vadd.f32 %v3614_v7, %v3613_v55  ;;  %4116 = vmatpush1.bf16.msra.mxu0 %v9833_v46  ;;  %v9945_v7 = vld [vmem:[#allocation5 + $0x64] ss:$16 sps:$4 sm:$0xff]   ;;  %v9948_v55 = vld [vmem:[#allocation5 + $0x6c] ss:$16 sps:$4 sm:$0xff]  }
 0x5cb   :  { %4157 = vmatpush1.bf16.msra.mxu1 %v9837_v45  ;;  %4117 = vmatprep.subr.bf16.mxu0 %v9839_v49  ;;  %10977 = vst [vmem:[#allocation20_spill] sm:$0xff] %v9945_v7  ;;  %10978 = vst [vmem:[#allocation21_spill] sm:$0xff] %v9948_v55 }
 0x5cc   :  { %4158 = vmatprep.subr.bf16.mxu1 %v9843_v6  ;;  %8443 = vtanh.f32 %v9845_v47 }
 0x5cd   :  { %8445 = vrcp.f32 %v3610_v10  ;;  %v9951_v10 = vld [vmem:[#allocation5 + $0x60] ss:$16 sps:$4 sm:$0xff]  }
 0x5ce   :  { %4118 = vmatpush1.bf16.msra.mxu0 %v9848_v0  ;;  %10979 = vst [vmem:[#allocation22_spill] sm:$0xff] %v9951_v10 }
 0x5cf   :  { %4159 = vmatpush1.bf16.msra.mxu1 %v9852_v13  ;;  %4119 = vmatprep.subr.bf16.mxu0 %v9854_v17 }
 0x5d0   :  { %4160 = vmatprep.subr.bf16.mxu1 %v9857_v62 }
 0x5d2   :  { %4120 = vmatpush1.bf16.msra.mxu0 %v9861_v18 }
 0x5d3   :  { %4161 = vmatpush1.bf16.msra.mxu1 %v9865_v21  ;;  %4121 = vmatprep.subr.bf16.mxu0 %v9867_v22 }
 0x5d4   :  { %4162 = vmatprep.subr.bf16.mxu1 %v9870_v23 }
 0x5d6   :  { %v8444_v35 = vpop.eup %8443  ;;  %4122 = vmatpush1.bf16.msra.mxu0 %v9873_v25 }
 0x5d7   :  { %4163 = vmatpush1.bf16.msra.mxu1 %v9877_v28  ;;  %4123 = vmatprep.subr.bf16.mxu0 %v9879_v30  ;;  %v8446_v43 = vpop.eup %8445 }
 0x5d8   :  { %4164 = vmatprep.subr.bf16.mxu1 %v9882_v31  ;;  %v3617_v1 = vmul.f32 %v8446_v43, %v8444_v35  ;;  %v9955_v35 = vld [vmem:[#allocation5 + $0x68] ss:$16 sps:$4 sm:$0xff]   ;;  %v9957_v43 = vld [vmem:[#allocation5 + $0x84] ss:$16 sps:$4 sm:$0xff]  }
 0x5d9   :  { %10980 = vst [vmem:[#allocation23_spill] sm:$0xff] %v9955_v35  ;;  %10981 = vst [vmem:[#allocation24_spill] sm:$0xff] %v9957_v43 }
 0x5da   :  { %4124 = vmatpush1.bf16.msra.mxu0 %v9885_v38  ;;  %v9908_v2 = vpack.c.bf16 %v3617_v1, %v3617_v1  ;;  %v9960_v1 = vld [vmem:[#allocation5 + $0x8c] ss:$16 sps:$4 sm:$0xff]  }
 0x5db   :  { %4165 = vmatpush1.bf16.msra.mxu1 %v9889_v40  ;;  %4125 = vmatprep.subr.bf16.mxu0 %v9891_v41  ;;  %10982 = vst [vmem:[#allocation25_spill] sm:$0xff] %v9960_v1 }
 0x5dc   :  { %4166 = vmatprep.subr.bf16.mxu1 %v9894_v52 }
 0x5de   :  { %4126 = vmatpush1.bf16.msra.mxu0 %v9897_v60 }
 0x5df   :  { %4167 = vmatpush1.bf16.msra.mxu1 %v9901_v59  ;;  %4393 = vmatprep.subr.bf16.mxu0 %v9903_v57 }
 0x5e0   :  { %4434 = vmatprep.subr.bf16.mxu1 %v9906_v42 }
 0x5e1   :  { %4144 = vmatmul.mubr.bf16.vlgmr.msra.gmra.mrb[64].mxu0 %v9908_v2 }
 0x5e2   :  { %4185 = vmatmul.mubr.bf16.vlgmr.msra.gmra.mrb[64].mxu1 %v9908_v2  ;;  %4394 = vmatpush1.bf16.msra.mxu0 %v9911_v11 }
 0x5e3   :  { %4435 = vmatpush1.bf16.msra.mxu1 %v9915_v12  ;;  %4395 = vmatprep.subr.bf16.mxu0 %v9917_v63 }
 0x5e4   :  { %4436 = vmatprep.subr.bf16.mxu1 %v9920_v54  ;;  %4425 = vmatprep.mubr.bf16.mxu0 %v10698_v51 }
 0x5e5   :  { %4466 = vmatprep.mubr.bf16.mxu1 %v10698_v51 }
 0x5e6   :  { %4396 = vmatpush1.bf16.msra.mxu0 %v9925_v39 }
 0x5e7   :  { %4437 = vmatpush1.bf16.msra.mxu1 %v9929_v3  ;;  %4397 = vmatprep.subr.bf16.mxu0 %v9931_v50 }
 0x5e8   :  { %4438 = vmatprep.subr.bf16.mxu1 %v9934_v32  ;;  %v9963_v32 = vld [vmem:[#allocation5 + $0x80] ss:$16 sps:$4 sm:$0xff]  }
 0x5e9   :  { %10983 = vst [vmem:[#allocation26_spill] sm:$0xff] %v9963_v32 }
 0x5ea   :  { %4398 = vmatpush1.bf16.msra.mxu0 %v9939_v34  ;;  %v9967_v34 = vld [vmem:[#allocation5 + $0x88] ss:$16 sps:$4 sm:$0xff]  }
 0x5eb   :  { %4439 = vmatpush1.bf16.msra.mxu1 %v9943_v33  ;;  %4399 = vmatprep.subr.bf16.mxu0 %v9945_v7  ;;  %10984 = vst [vmem:[#allocation27_spill] sm:$0xff] %v9967_v34  ;;  %v9969_v33 = vld [vmem:[#allocation5 + $0xa4] ss:$16 sps:$4 sm:$0xff]   ;;  %v9972_v7 = vld [vmem:[#allocation5 + $0xac] ss:$16 sps:$4 sm:$0xff]  }
 0x5ec   :  { %4440 = vmatprep.subr.bf16.mxu1 %v9948_v55  ;;  %10985 = vst [vmem:[#allocation28_spill] sm:$0xff] %v9969_v33  ;;  %10986 = vst [vmem:[#allocation29_spill] sm:$0xff] %v9972_v7  ;;  %v9975_v55 = vld [vmem:[#allocation5 + $0xa0] ss:$16 sps:$4 sm:$0xff]  }
 0x5ed   :  { %10987 = vst [vmem:[#allocation30_spill] sm:$0xff] %v9975_v55 }
 0x5ee   :  { %4400 = vmatpush1.bf16.msra.mxu0 %v9951_v10  ;;  %v9979_v10 = vld [vmem:[#allocation5 + $0xa8] ss:$16 sps:$4 sm:$0xff]  }
 0x5ef   :  { %4441 = vmatpush1.bf16.msra.mxu1 %v9955_v35  ;;  %4401 = vmatprep.subr.bf16.mxu0 %v9957_v43  ;;  %10988 = vst [vmem:[#allocation31_spill] sm:$0xff] %v9979_v10  ;;  %v9981_v35 = vld [vmem:[#allocation5 + $0xc4] ss:$16 sps:$4 sm:$0xff]   ;;  %v9984_v43 = vld [vmem:[#allocation5 + $0xcc] ss:$16 sps:$4 sm:$0xff]  }
 0x5f0   :  { %4442 = vmatprep.subr.bf16.mxu1 %v9960_v1  ;;  %10989 = vst [vmem:[#allocation32_spill] sm:$0xff] %v9981_v35  ;;  %10990 = vst [vmem:[#allocation33_spill] sm:$0xff] %v9984_v43  ;;  %v9987_v1 = vld [vmem:[#allocation5 + $0xc0] ss:$16 sps:$4 sm:$0xff]  }
 0x5f1   :  { %10991 = vst [vmem:[#allocation34_spill] sm:$0xff] %v9987_v1 }
 0x5f2   :  { %4402 = vmatpush1.bf16.msra.mxu0 %v9963_v32  ;;  %v9991_v32 = vld [vmem:[#allocation5 + $0xc8] ss:$16 sps:$4 sm:$0xff]  }
 0x5f3   :  { %4443 = vmatpush1.bf16.msra.mxu1 %v9967_v34  ;;  %4403 = vmatprep.subr.bf16.mxu0 %v9969_v33  ;;  %10992 = vst [vmem:[#allocation35_spill] sm:$0xff] %v9991_v32  ;;  %v9993_v34 = vld [vmem:[#allocation5 + $0xe4] ss:$16 sps:$4 sm:$0xff]   ;;  %v9996_v33 = vld [vmem:[#allocation5 + $0xec] ss:$16 sps:$4 sm:$0xff]  }
 0x5f4   :  { %4444 = vmatprep.subr.bf16.mxu1 %v9972_v7  ;;  %10993 = vst [vmem:[#allocation36_spill] sm:$0xff] %v9993_v34  ;;  %10994 = vst [vmem:[#allocation37_spill] sm:$0xff] %v9996_v33  ;;  %v9999_v7 = vld [vmem:[#allocation5 + $0xe0] ss:$16 sps:$4 sm:$0xff]  }
 0x5f5   :  { %10995 = vst [vmem:[#allocation38_spill] sm:$0xff] %v9999_v7 }
 0x5f6   :  { %4404 = vmatpush1.bf16.msra.mxu0 %v9975_v55  ;;  %v10003_v55 = vld [vmem:[#allocation5 + $0xe8] ss:$16 sps:$4 sm:$0xff]  }
 0x5f7   :  { %4445 = vmatpush1.bf16.msra.mxu1 %v9979_v10  ;;  %4405 = vmatprep.subr.bf16.mxu0 %v9981_v35  ;;  %10996 = vst [vmem:[#allocation39_spill] sm:$0xff] %v10003_v55  ;;  %v10042_v35 = vld [vmem:[#allocation9 + $0x48] ss:$16 sps:$4 sm:$0xff]  }
 0x5f8   :  { %4446 = vmatprep.subr.bf16.mxu1 %v9984_v43  ;;  %v10018_v43 = vld [vmem:[#allocation9 + $0x8] ss:$16 sps:$4 sm:$0xff]   ;;  %11008 = vst [vmem:[#allocation75_spill] sm:$0xff] %v10042_v35 }
 0x5f9   :  { %11000 = vst [vmem:[#allocation67_spill] sm:$0xff] %v10018_v43 }
 0x5fa   :  { %4406 = vmatpush1.bf16.msra.mxu0 %v9987_v1  ;;  %v10012_v1 = vld [vmem:[#allocation9 + $0x4] ss:$16 sps:$4 sm:$0xff]  }
 0x5fb   :  { %4447 = vmatpush1.bf16.msra.mxu1 %v9991_v32  ;;  %4407 = vmatprep.subr.bf16.mxu0 %v9993_v34  ;;  %10997 = vst [vmem:[#allocation40_spill] sm:$0xff] %v10012_v1  ;;  %v10014_v32 = vld [vmem:[#allocation9 + $0xc] ss:$16 sps:$4 sm:$0xff]   ;;  %v10016_v34 = vld [vmem:[#allocation9] ss:$16 sps:$4 sm:$0xff]  }
 0x5fc   :  { %4448 = vmatprep.subr.bf16.mxu1 %v9996_v33  ;;  %10998 = vst [vmem:[#allocation41_spill] sm:$0xff] %v10014_v32  ;;  %10999 = vst [vmem:[#allocation42_spill] sm:$0xff] %v10016_v34  ;;  %v10030_v33 = vld [vmem:[#allocation9 + $0x28] ss:$16 sps:$4 sm:$0xff]  }
 0x5fd   :  { %11004 = vst [vmem:[#allocation71_spill] sm:$0xff] %v10030_v33 }
 0x5fe   :  { %4408 = vmatpush1.bf16.msra.mxu0 %v9999_v7  ;;  %v10028_v7 = vld [vmem:[#allocation9 + $0x20] ss:$16 sps:$4 sm:$0xff]  }
 0x5ff   :  { %4449 = vmatpush1.bf16.msra.mxu1 %v10003_v55  ;;  %4720 = vmatprep.subr.bf16.mxu0 %v10012_v1  ;;  %v10026_v55 = vld [vmem:[#allocation9 + $0x2c] ss:$16 sps:$4 sm:$0xff]   ;;  %11003 = vst [vmem:[#allocation70_spill] sm:$0xff] %v10028_v7  ;;  %v10040_v1 = vld [vmem:[#allocation9 + $0x40] ss:$16 sps:$4 sm:$0xff]  }
 0x600   :  { %4761 = vmatprep.subr.bf16.mxu1 %v10014_v32  ;;  %11002 = vst [vmem:[#allocation69_spill] sm:$0xff] %v10026_v55  ;;  %v10036_v32 = vld [vmem:[#allocation9 + $0x44] ss:$16 sps:$4 sm:$0xff]   ;;  %11007 = vst [vmem:[#allocation74_spill] sm:$0xff] %v10040_v1 }
 0x601   :  { %4426 = vmatmul.mubr.bf16.vlgmr.msra.gmra.mrb[68].mxu0 %v9908_v2  ;;  %11005 = vst [vmem:[#allocation72_spill] sm:$0xff] %v10036_v32 }
 0x602   :  { %4467 = vmatmul.mubr.bf16.vlgmr.msra.gmra.mrb[68].mxu1 %v9908_v2  ;;  %4752 = vmatprep.mubr.bf16.mxu0 %v10698_v51  ;;  %v10024_v2 = vld [vmem:[#allocation9 + $0x24] ss:$16 sps:$4 sm:$0xff]  }
 0x603   :  { %4793 = vmatprep.mubr.bf16.mxu1 %v10698_v51  ;;  %4721 = vmatpush1.bf16.msra.mxu0 %v10016_v34  ;;  %11001 = vst [vmem:[#allocation68_spill] sm:$0xff] %v10024_v2  ;;  %v10038_v34 = vld [vmem:[#allocation9 + $0x4c] ss:$16 sps:$4 sm:$0xff]  }
 0x604   :  { %4762 = vmatpush1.bf16.msra.mxu1 %v10018_v43  ;;  %4722 = vmatprep.subr.bf16.mxu0 %v10024_v2  ;;  %11006 = vst [vmem:[#allocation73_spill] sm:$0xff] %v10038_v34 }
 0x605   :  { %4763 = vmatprep.subr.bf16.mxu1 %v10026_v55  ;;  %v10057_v55 = vld [vmem:[#allocation9 + $0x60] ss:$16 sps:$4 sm:$0xff]  }
 0x606   :  { %11011 = vst [vmem:[#allocation78_spill] sm:$0xff] %v10057_v55 }
 0x607   :  { %4723 = vmatpush1.bf16.msra.mxu0 %v10028_v7  ;;  %v10055_v7 = vld [vmem:[#allocation9 + $0x6c] ss:$16 sps:$4 sm:$0xff]  }
 0x608   :  { %4764 = vmatpush1.bf16.msra.mxu1 %v10030_v33  ;;  %4724 = vmatprep.subr.bf16.mxu0 %v10036_v32  ;;  %v10053_v33 = vld [vmem:[#allocation9 + $0x64] ss:$16 sps:$4 sm:$0xff]   ;;  %11010 = vst [vmem:[#allocation77_spill] sm:$0xff] %v10055_v7 }
 0x609   :  { %4765 = vmatprep.subr.bf16.mxu1 %v10038_v34  ;;  %11009 = vst [vmem:[#allocation76_spill] sm:$0xff] %v10053_v33 }
 0x60b   :  { %4725 = vmatpush1.bf16.msra.mxu0 %v10040_v1  ;;  %v10071_v1 = vld [vmem:[#allocation9 + $0x88] ss:$16 sps:$4 sm:$0xff]  }
 0x60c   :  { %4766 = vmatpush1.bf16.msra.mxu1 %v10042_v35  ;;  %4726 = vmatprep.subr.bf16.mxu0 %v10053_v33  ;;  %v10067_v35 = vld [vmem:[#allocation9 + $0x8c] ss:$16 sps:$4 sm:$0xff]   ;;  %11016 = vst [vmem:[#allocation83_spill] sm:$0xff] %v10071_v1  ;;  %v10083_v33 = vld [vmem:[#allocation9 + $0xa8] ss:$16 sps:$4 sm:$0xff]  }
 0x60d   :  { %4767 = vmatprep.subr.bf16.mxu1 %v10055_v7  ;;  %11014 = vst [vmem:[#allocation81_spill] sm:$0xff] %v10067_v35  ;;  %v10077_v7 = vld [vmem:[#allocation9 + $0xa4] ss:$16 sps:$4 sm:$0xff]   ;;  %11020 = vst [vmem:[#allocation87_spill] sm:$0xff] %v10083_v33 }
 0x60e   :  { %11017 = vst [vmem:[#allocation84_spill] sm:$0xff] %v10077_v7 }
 0x60f   :  { %4727 = vmatpush1.bf16.msra.mxu0 %v10057_v55  ;;  %v10079_v55 = vld [vmem:[#allocation9 + $0xac] ss:$16 sps:$4 sm:$0xff]  }
 0x610   :  { %11018 = vst [vmem:[#allocation85_spill] sm:$0xff] %v10079_v55 }
 0x64e   :  { %v6907_v43 = vpop.xlane.xlu1 %6906 }
 0x64f   :  { %v6926_v10 = vadd.f32 %v9780_v16, %v6907_v43  ;;  %v10059_v43 = vld [vmem:[#allocation9 + $0x68] ss:$16 sps:$4 sm:$0xff]   ;;  %v10065_v16 = vld [vmem:[#allocation9 + $0x84] ss:$16 sps:$4 sm:$0xff]  }
 0x650   :  { %11012 = vst [vmem:[#allocation79_spill] sm:$0xff] %v10059_v43  ;;  %4768 = vmatpush1.bf16.msra.mxu1 %v10059_v43  ;;  %11013 = vst [vmem:[#allocation80_spill] sm:$0xff] %v10065_v16  ;;  %4728 = vmatprep.subr.bf16.mxu0 %v10065_v16  ;;  %v10081_v43 = vld [vmem:[#allocation9 + $0xa0] ss:$16 sps:$4 sm:$0xff]   ;;  %v10095_v16 = vld [vmem:[#allocation9 + $0xc8] ss:$16 sps:$4 sm:$0xff]  }
 0x651   :  { %6935 = vst.msk [vmem:[%s10459_s9 + $0x18] sm:$0xff] %vm6931_vm1, %v6926_v10  ;;  %v10069_v10 = vld [vmem:[#allocation9 + $0x80] ss:$16 sps:$4 sm:$0xff]   ;;  %4769 = vmatprep.subr.bf16.mxu1 %v10067_v35  ;;  %11019 = vst [vmem:[#allocation86_spill] sm:$0xff] %v10081_v43  ;;  %v10089_v35 = vld [vmem:[#allocation9 + $0xc4] ss:$16 sps:$4 sm:$0xff]  }
 0x652   :  { %11015 = vst [vmem:[#allocation82_spill] sm:$0xff] %v10069_v10  ;;  %4729 = vmatpush1.bf16.msra.mxu0 %v10069_v10  ;;  %11021 = vst [vmem:[#allocation88_spill] sm:$0xff] %v10089_v35  ;;  %v10091_v10 = vld [vmem:[#allocation9 + $0xcc] ss:$16 sps:$4 sm:$0xff]  }
 0x653   :  { %4730 = vmatprep.subr.bf16.mxu0 %v10077_v7  ;;  %11022 = vst [vmem:[#allocation89_spill] sm:$0xff] %v10091_v10  ;;  %11024 = vst [vmem:[#allocation91_spill] sm:$0xff] %v10095_v16  ;;  %v10107_v7 = vld [vmem:[#allocation9 + $0xe8] ss:$16 sps:$4 sm:$0xff]  }
 0x654   :  { %4770 = vmatpush1.bf16.msra.mxu1 %v10071_v1  ;;  %v10093_v1 = vld [vmem:[#allocation9 + $0xc0] ss:$16 sps:$4 sm:$0xff]   ;;  %11028 = vst [vmem:[#allocation95_spill] sm:$0xff] %v10107_v7 }
 0x655   :  { %4771 = vmatprep.subr.bf16.mxu1 %v10079_v55  ;;  %11023 = vst [vmem:[#allocation90_spill] sm:$0xff] %v10093_v1  ;;  %v10101_v55 = vld [vmem:[#allocation9 + $0xe4] ss:$16 sps:$4 sm:$0xff]  }
 0x656   :  { %4731 = vmatpush1.bf16.msra.mxu0 %v10081_v43  ;;  %11025 = vst [vmem:[#allocation92_spill] sm:$0xff] %v10101_v55  ;;  %v10103_v43 = vld [vmem:[#allocation9 + $0xec] ss:$16 sps:$4 sm:$0xff]  }
 0x657   :  { %4732 = vmatprep.subr.bf16.mxu0 %v10089_v35  ;;  %11026 = vst [vmem:[#allocation93_spill] sm:$0xff] %v10103_v43 }
 0x658   :  { %4772 = vmatpush1.bf16.msra.mxu1 %v10083_v33  ;;  %v10105_v33 = vld [vmem:[#allocation9 + $0xe0] ss:$16 sps:$4 sm:$0xff]  }
 0x659   :  { %4773 = vmatprep.subr.bf16.mxu1 %v10091_v10  ;;  %11027 = vst [vmem:[#allocation94_spill] sm:$0xff] %v10105_v33 }
 0x65a   :  { %4733 = vmatpush1.bf16.msra.mxu0 %v10093_v1 }
 0x65b   :  { %4734 = vmatprep.subr.bf16.mxu0 %v10101_v55 }
 0x65c   :  { %4774 = vmatpush1.bf16.msra.mxu1 %v10095_v16 }
 0x65d   :  { %4775 = vmatprep.subr.bf16.mxu1 %v10103_v43 }
 0x65e   :  { %4735 = vmatpush1.bf16.msra.mxu0 %v10105_v33 }
 0x65f   :  { %4996 = vmatprep.subr.bf16.mxu0 %v9787_v26 }
 0x660   :  { %4776 = vmatpush1.bf16.msra.mxu1 %v10107_v7 }
 0x661   :  { %5037 = vmatprep.subr.bf16.mxu1 %v9789_v27 }
 0x694   :  { %v3869_v16 = vpop.f32.mrb[60].mxu0 }
 0x695   :  { %v3910_v1 = vpop.f32.mrb[60].mxu1  ;;  %v3871_v10 = vpop.f32.mrb[61].mxu0 }
 0x696   :  { %v3912_v35 = vpop.f32.mrb[61].mxu1  ;;  %v3873_v34 = vpop.f32.mrb[62].mxu0 }
 0x697   :  { %v3914_v32 = vpop.f32.mrb[62].mxu1  ;;  %v3874_v2 = vpop.f32.mrb[63].mxu0 }
 0x698   :  { %v3915_v50 = vpop.f32.mrb[63].mxu1 }
 0x6b4   :  { %v4145_v3 = vpop.f32.mrb[64].mxu0 }
 0x6b5   :  { %v4146_v55 = vadd.f32 %v4145_v3, %v3869_v16  ;;  %v4186_v39 = vpop.f32.mrb[64].mxu1  ;;  %v4147_v43 = vpop.f32.mrb[65].mxu0 }
 0x6b6   :  { %v4187_v54 = vadd.f32 %v4186_v39, %v3910_v1  ;;  %v4148_v33 = vadd.f32 %v4147_v43, %v3871_v10  ;;  %v4188_v63 = vpop.f32.mrb[65].mxu1  ;;  %v4149_v7 = vpop.f32.mrb[66].mxu0  ;;  %v11031_v43 = vld [vmem:[#allocation56_spill] sm:$0xff] }
 0x6b7   :  { %v4193_v26 = vadd.f32 %v4146_v55, %v10821_v61  ;;  %v4189_v12 = vadd.f32 %v4188_v63, %v3912_v35  ;;  %v4190_v27 = vpop.f32.mrb[66].mxu1  ;;  %v4150_v11 = vpop.f32.mrb[67].mxu0  ;;  %v295_v10 = vadd.f32 %v11031_v43, %v10962_v5 }
 0x6b8   :  { %v4194_v42 = vadd.f32 %v4148_v33, %v9181_v44  ;;  %v4191_v57 = vpop.f32.mrb[67].mxu1  ;;  %v4195_v3 = vadd.f32 %v4187_v54, %v9192_v24 }
 0x6b9   :  { %v7439_v34 = vmul.f32 -1.442695, %v4193_v26  ;;  %v4196_v16 = vadd.f32 %v4189_v12, %v9187_v15  ;;  %v11030_v12 = vld [vmem:[#allocation57_spill] sm:$0xff] }
 0x6ba   :  { %v7440_v32 = vmul.f32 -1.442695, %v4194_v42  ;;  %v11029_v42 = vld [vmem:[#allocation55_spill] sm:$0xff]  ;;  %v224_v54 = vadd.f32 %v11030_v12, %v10960_v8 }
 0x6bb   :  { %8447 = vpow2.f32 %v7439_v34  ;;  %v7441_v7 = vmul.f32 -1.442695, %v4196_v16  ;;  %v222_v33 = vadd.f32 %v11029_v42, %v10958_v58  ;;  %v11032_v34 = vld [vmem:[#allocation58_spill] sm:$0xff] }
 0x6bc   :  { %8449 = vpow2.f32 %v7440_v32  ;;  %v297_v32 = vadd.f32 %v11032_v34, %v8906_v53 }
 0x6bd   :  { %8451 = vtanh.f32 %v4195_v3 }
 0x6c5   :  { %v8448_v39 = vpop.eup %8447 }
 0x6c6   :  { %v8450_v50 = vpop.eup %8449  ;;  %v4506_v1 = vadd.f32 1.0, %v8448_v39 }
 0x6c7   :  { %v4512_v55 = vadd.f32 1.0, %v8450_v50  ;;  %v8452_v11 = vpop.eup %8451 }
 0x6c8   :  { %8453 = vrcp.f32 %v4506_v1 }
 0x6c9   :  { %8455 = vrcp.f32 %v4512_v55 }
 0x6ca   :  { %8457 = vpow2.f32 %v7441_v7 }
 0x6d2   :  { %v8454_v63 = vpop.eup %8453 }
 0x6d3   :  { %v8456_v57 = vpop.eup %8455  ;;  %v4523_v35 = vmul.f32 %v8454_v63, %v8452_v11 }
 0x6d4   :  { %v8458_v2 = vpop.eup %8457  ;;  %v4522_v26 = vmul.f32 %v8456_v57, %v9806_v36  ;;  %v4427_v27 = vpop.f32.mrb[68].mxu0 }
 0x6d5   :  { %v4475_v16 = vadd.f32 %v4427_v27, %v222_v33  ;;  %v4468_v3 = vpop.f32.mrb[68].mxu1  ;;  %v4429_v39 = vpop.f32.mrb[69].mxu0  ;;  %v4519_v63 = vadd.f32 1.0, %v8458_v2 }
 0x6d6   :  { %v4477_v50 = vadd.f32 %v4468_v3, %v295_v10  ;;  %v4476_v1 = vadd.f32 %v4429_v39, %v224_v54  ;;  %v4470_v7 = vpop.f32.mrb[69].mxu1  ;;  %v4431_v55 = vpop.f32.mrb[70].mxu0  ;;  %v10128_v11 = vadd.f32 %v4523_v35, %v4522_v26  ;;  %v11057_v39 = vld [vmem:[#allocation32_spill] sm:$0xff] }
 0x6d7   :  { %v7436_v42 = vmul.f32 -1.442695, %v4475_v16  ;;  %v4478_v12 = vadd.f32 %v4470_v7, %v297_v32  ;;  %v4472_v8 = vpop.f32.mrb[70].mxu1  ;;  %v4432_v43 = vpop.f32.mrb[71].mxu0  ;;  %v11060_v7 = vld [vmem:[#allocation35_spill] sm:$0xff]  ;;  %v11061_v55 = vld [vmem:[#allocation36_spill] sm:$0xff] }
 0x6d8   :  { %v7437_v5 = vmul.f32 -1.442695, %v4476_v1  ;;  %v4473_v36 = vpop.f32.mrb[71].mxu1  ;;  %v11059_v1 = vld [vmem:[#allocation34_spill] sm:$0xff]  ;;  %v11065_v43 = vld [vmem:[#allocation40_spill] sm:$0xff] }
 0x6d9   :  { %8459 = vpow2.f32 %v7436_v42  ;;  %v7438_v57 = vmul.f32 -1.442695, %v4478_v12  ;;  %v11063_v42 = vld [vmem:[#allocation38_spill] sm:$0xff]  ;;  %v11064_v12 = vld [vmem:[#allocation39_spill] sm:$0xff]  ;;  %v11066_v36 = vld [vmem:[#allocation41_spill] sm:$0xff] }
 0x6da   :  { %8461 = vpow2.f32 %v7437_v5 }
 0x6db   :  { %8463 = vrcp.f32 %v4519_v63  ;;  %v11062_v63 = vld [vmem:[#allocation37_spill] sm:$0xff] }
 0x6dc   :  { %8465 = vtanh.f32 %v10128_v11 }
 0x6dd   :  { %8467 = vtanh.f32 %v4477_v50  ;;  %v11058_v50 = vld [vmem:[#allocation33_spill] sm:$0xff] }
 0x6de   :  { %8469 = vpow2.f32 %v7438_v57  ;;  %v11067_v57 = vld [vmem:[#allocation42_spill] sm:$0xff] }
 0x6e3   :  { %v8460_v33 = vpop.eup %8459 }
 0x6e4   :  { %v8462_v10 = vpop.eup %8461  ;;  %v4482_v54 = vadd.f32 1.0, %v8460_v33  ;;  %v11068_v33 = vld [vmem:[#allocation67_spill] sm:$0xff] }
 0x6e5   :  { %v8464_v27 = vpop.eup %8463  ;;  %v4488_v35 = vadd.f32 1.0, %v8462_v10  ;;  %v11069_v10 = vld [vmem:[#allocation68_spill] sm:$0xff] }
 0x6e6   :  { %v8466_v2 = vpop.eup %8465  ;;  %8471 = vrcp.f32 %v4482_v54  ;;  %v11070_v54 = vld [vmem:[#allocation69_spill] sm:$0xff] }
 0x6e7   :  { %8473 = vrcp.f32 %v4488_v35  ;;  %v4526_v8 = vmul.f32 %v8466_v2, %v8464_v27  ;;  %v8468_v5 = vpop.eup %8467  ;;  %v11071_v27 = vld [vmem:[#allocation70_spill] sm:$0xff]  ;;  %v11072_v35 = vld [vmem:[#allocation71_spill] sm:$0xff]  ;;  %v11073_v2 = vld [vmem:[#allocation72_spill] sm:$0xff] }
 0x6e8   :  { %v8470_v32 = vpop.eup %8469 }
 0x6e9   :  { %v6896_v26 = vmul.f32 %v9673_v48, %v4526_v8  ;;  %v4527_v34 = vpack.c.bf16 %v4526_v8, %v4526_v8  ;;  %v11074_v8 = vld [vmem:[#allocation73_spill] sm:$0xff] }
 0x6eb   :  { %6908 = vadd.xlane.f32.xlu0 %v6896_v26  ;;  %4753 = vmatmul.mubr.bf16.vlgmr.msra.gmra.mrb[72].mxu0 %v4527_v34  ;;  %v11075_v26 = vld [vmem:[#allocation74_spill] sm:$0xff] }
 0x6ec   :  { %4794 = vmatmul.mubr.bf16.vlgmr.msra.gmra.mrb[72].mxu1 %v4527_v34  ;;  %4997 = vmatpush1.bf16.msra.mxu0 %v9809_v4  ;;  %v11076_v34 = vld [vmem:[#allocation75_spill] sm:$0xff] }
 0x6ed   :  { %5038 = vmatpush1.bf16.msra.mxu1 %v9811_v37  ;;  %4998 = vmatprep.subr.bf16.mxu0 %v9814_v9  ;;  %v4495_v9 = vadd.f32 1.0, %v8470_v32  ;;  %v11078_v32 = vld [vmem:[#allocation77_spill] sm:$0xff] }
 0x6ee   :  { %5039 = vmatprep.subr.bf16.mxu1 %v9816_v56  ;;  %5028 = vmatprep.mubr.bf16.mxu0 %v10698_v51 }
 0x6ef   :  { %5069 = vmatprep.mubr.bf16.mxu1 %v10698_v51 }
 0x6f0   :  { %v8472_v16 = vpop.eup %8471  ;;  %4999 = vmatpush1.bf16.msra.mxu0 %v9819_v14 }
 0x6f1   :  { %v8474_v48 = vpop.eup %8473  ;;  %v4499_v3 = vmul.f32 %v8472_v16, %v8468_v5  ;;  %5040 = vmatpush1.bf16.msra.mxu1 %v9823_v19  ;;  %5000 = vmatprep.subr.bf16.mxu0 %v9825_v29  ;;  %v11077_v5 = vld [vmem:[#allocation76_spill] sm:$0xff]  ;;  %v11079_v16 = vld [vmem:[#allocation78_spill] sm:$0xff] }
 0x6f2   :  { %v4498_v4 = vmul.f32 %v8474_v48, %v9845_v47  ;;  %5041 = vmatprep.subr.bf16.mxu1 %v9828_v20  ;;  %v11033_v20 = vld [vmem:[#allocation44_spill] sm:$0xff]  ;;  %v11038_v47 = vld [vmem:[#allocation50_spill] sm:$0xff]  ;;  %v11080_v48 = vld [vmem:[#allocation79_spill] sm:$0xff] }
 0x6f4   :  { %v10143_v37 = vadd.f32 %v4499_v3, %v4498_v4  ;;  %5001 = vmatpush1.bf16.msra.mxu0 %v9833_v46  ;;  %v11034_v46 = vld [vmem:[#allocation46_spill] sm:$0xff]  ;;  %v11081_v3 = vld [vmem:[#allocation80_spill] sm:$0xff]  ;;  %v11082_v4 = vld [vmem:[#allocation81_spill] sm:$0xff] }
 0x6f5   :  { %5042 = vmatpush1.bf16.msra.mxu1 %v9837_v45  ;;  %5002 = vmatprep.subr.bf16.mxu0 %v9839_v49  ;;  %v11035_v45 = vld [vmem:[#allocation47_spill] sm:$0xff]  ;;  %v11036_v49 = vld [vmem:[#allocation49_spill] sm:$0xff] }
 0x6f6   :  { %5043 = vmatprep.subr.bf16.mxu1 %v9843_v6  ;;  %8475 = vtanh.f32 %v10143_v37  ;;  %v11037_v6 = vld [vmem:[#allocation48_spill] sm:$0xff] }
 0x6f7   :  { %8477 = vrcp.f32 %v4495_v9  ;;  %v11083_v9 = vld [vmem:[#allocation82_spill] sm:$0xff] }
 0x6f8   :  { %5003 = vmatpush1.bf16.msra.mxu0 %v9848_v0  ;;  %v11039_v0 = vld [vmem:[#allocation14_spill] sm:$0xff] }
 0x6f9   :  { %5044 = vmatpush1.bf16.msra.mxu1 %v9852_v13  ;;  %5004 = vmatprep.subr.bf16.mxu0 %v9854_v17  ;;  %v11040_v13 = vld [vmem:[#allocation15_spill] sm:$0xff]  ;;  %v11041_v17 = vld [vmem:[#allocation16_spill] sm:$0xff] }
 0x6fa   :  { %5045 = vmatprep.subr.bf16.mxu1 %v9857_v62  ;;  %v11042_v62 = vld [vmem:[#allocation17_spill] sm:$0xff] }
 0x6fc   :  { %5005 = vmatpush1.bf16.msra.mxu0 %v9861_v18  ;;  %v11043_v18 = vld [vmem:[#allocation18_spill] sm:$0xff] }
 0x6fd   :  { %5046 = vmatpush1.bf16.msra.mxu1 %v9865_v21  ;;  %5006 = vmatprep.subr.bf16.mxu0 %v9867_v22  ;;  %v11044_v21 = vld [vmem:[#allocation19_spill] sm:$0xff]  ;;  %v11045_v22 = vld [vmem:[#allocation20_spill] sm:$0xff] }
 0x6fe   :  { %5047 = vmatprep.subr.bf16.mxu1 %v9870_v23  ;;  %v11046_v23 = vld [vmem:[#allocation21_spill] sm:$0xff] }
 0x700   :  { %v8476_v56 = vpop.eup %8475  ;;  %5007 = vmatpush1.bf16.msra.mxu0 %v9873_v25  ;;  %v11047_v25 = vld [vmem:[#allocation22_spill] sm:$0xff] }
 0x701   :  { %5048 = vmatpush1.bf16.msra.mxu1 %v9877_v28  ;;  %5008 = vmatprep.subr.bf16.mxu0 %v9879_v30  ;;  %v8478_v14 = vpop.eup %8477  ;;  %v11048_v28 = vld [vmem:[#allocation23_spill] sm:$0xff]  ;;  %v11049_v30 = vld [vmem:[#allocation24_spill] sm:$0xff] }
 0x702   :  { %5049 = vmatprep.subr.bf16.mxu1 %v9882_v31  ;;  %v4502_v19 = vmul.f32 %v8478_v14, %v8476_v56  ;;  %v11050_v31 = vld [vmem:[#allocation25_spill] sm:$0xff]  ;;  %v11084_v56 = vld [vmem:[#allocation83_spill] sm:$0xff]  ;;  %v11085_v14 = vld [vmem:[#allocation84_spill] sm:$0xff] }
 0x704   :  { %5009 = vmatpush1.bf16.msra.mxu0 %v9885_v38  ;;  %v4803_v29 = vpack.c.bf16 %v4502_v19, %v4502_v19  ;;  %v11051_v38 = vld [vmem:[#allocation26_spill] sm:$0xff]  ;;  %v11086_v19 = vld [vmem:[#allocation85_spill] sm:$0xff] }
 0x705   :  { %5050 = vmatpush1.bf16.msra.mxu1 %v9889_v40  ;;  %5010 = vmatprep.subr.bf16.mxu0 %v9891_v41  ;;  %v11052_v40 = vld [vmem:[#allocation27_spill] sm:$0xff]  ;;  %v11053_v41 = vld [vmem:[#allocation28_spill] sm:$0xff] }
 0x706   :  { %5051 = vmatprep.subr.bf16.mxu1 %v9894_v52  ;;  %v11054_v52 = vld [vmem:[#allocation29_spill] sm:$0xff] }
 0x708   :  { %5011 = vmatpush1.bf16.msra.mxu0 %v9897_v60  ;;  %v11055_v60 = vld [vmem:[#allocation30_spill] sm:$0xff] }
 0x709   :  { %5052 = vmatpush1.bf16.msra.mxu1 %v9901_v59  ;;  %5278 = vmatprep.subr.bf16.mxu0 %v11033_v20  ;;  %v11056_v59 = vld [vmem:[#allocation31_spill] sm:$0xff] }
 0x70a   :  { %5319 = vmatprep.subr.bf16.mxu1 %v11034_v46  ;;  %v11088_v20 = vld [vmem:[#allocation87_spill] sm:$0xff]  ;;  %v11089_v46 = vld [vmem:[#allocation88_spill] sm:$0xff] }
 0x70b   :  { %5029 = vmatmul.mubr.bf16.vlgmr.msra.gmra.mrb[76].mxu0 %v4803_v29 }
 0x70c   :  { %5070 = vmatmul.mubr.bf16.vlgmr.msra.gmra.mrb[76].mxu1 %v4803_v29  ;;  %5279 = vmatpush1.bf16.msra.mxu0 %v11035_v45  ;;  %v11090_v45 = vld [vmem:[#allocation89_spill] sm:$0xff] }
 0x70d   :  { %5320 = vmatpush1.bf16.msra.mxu1 %v11036_v49  ;;  %5280 = vmatprep.subr.bf16.mxu0 %v11037_v6  ;;  %v11091_v49 = vld [vmem:[#allocation90_spill] sm:$0xff]  ;;  %v11092_v6 = vld [vmem:[#allocation91_spill] sm:$0xff] }
 0x70e   :  { %5321 = vmatprep.subr.bf16.mxu1 %v11038_v47  ;;  %5310 = vmatprep.mubr.bf16.mxu0 %v10698_v51  ;;  %v11093_v47 = vld [vmem:[#allocation92_spill] sm:$0xff] }
 0x70f   :  { %5351 = vmatprep.mubr.bf16.mxu1 %v10698_v51 }
 0x710   :  { %5281 = vmatpush1.bf16.msra.mxu0 %v11039_v0  ;;  %v11094_v0 = vld [vmem:[#allocation93_spill] sm:$0xff] }
 0x711   :  { %5322 = vmatpush1.bf16.msra.mxu1 %v11040_v13  ;;  %5282 = vmatprep.subr.bf16.mxu0 %v11041_v17  ;;  %v11095_v13 = vld [vmem:[#allocation94_spill] sm:$0xff]  ;;  %v11096_v17 = vld [vmem:[#allocation95_spill] sm:$0xff] }
 0x712   :  { %5323 = vmatprep.subr.bf16.mxu1 %v11042_v62 }
 0x714   :  { %5283 = vmatpush1.bf16.msra.mxu0 %v11043_v18  ;;  %v11097_v18 = vld [vmem:[#allocation45_spill] sm:$0xff] }
 0x715   :  { %5324 = vmatpush1.bf16.msra.mxu1 %v11044_v21  ;;  %5284 = vmatprep.subr.bf16.mxu0 %v11045_v22  ;;  %v10241_v22 = vld [vmem:[#allocation7 + $0x4] ss:$16 sps:$4 sm:$0xff]  }
 0x716   :  { %5325 = vmatprep.subr.bf16.mxu1 %v11046_v23  ;;  %v10243_v23 = vld [vmem:[#allocation7 + $0xc] ss:$16 sps:$4 sm:$0xff]  }
 0x718   :  { %5285 = vmatpush1.bf16.msra.mxu0 %v11047_v25 }
 0x719   :  { %5326 = vmatpush1.bf16.msra.mxu1 %v11048_v28  ;;  %5286 = vmatprep.subr.bf16.mxu0 %v11049_v30 }
 0x71a   :  { %5327 = vmatprep.subr.bf16.mxu1 %v11050_v31 }
 0x71c   :  { %5287 = vmatpush1.bf16.msra.mxu0 %v11051_v38 }
 0x71d   :  { %5328 = vmatpush1.bf16.msra.mxu1 %v11052_v40  ;;  %5288 = vmatprep.subr.bf16.mxu0 %v11053_v41 }
 0x71e   :  { %5329 = vmatprep.subr.bf16.mxu1 %v11054_v52 }
 0x720   :  { %5289 = vmatpush1.bf16.msra.mxu0 %v11055_v60 }
 0x721   :  { %5330 = vmatpush1.bf16.msra.mxu1 %v11056_v59  ;;  %5290 = vmatprep.subr.bf16.mxu0 %v11057_v39 }
 0x722   :  { %5331 = vmatprep.subr.bf16.mxu1 %v11058_v50 }
 0x724   :  { %5291 = vmatpush1.bf16.msra.mxu0 %v11059_v1 }
 0x725   :  { %5332 = vmatpush1.bf16.msra.mxu1 %v11060_v7  ;;  %5292 = vmatprep.subr.bf16.mxu0 %v11061_v55 }
 0x726   :  { %5333 = vmatprep.subr.bf16.mxu1 %v11062_v63 }
 0x728   :  { %5293 = vmatpush1.bf16.msra.mxu0 %v11063_v42 }
 0x729   :  { %5334 = vmatpush1.bf16.msra.mxu1 %v11064_v12  ;;  %5605 = vmatprep.subr.bf16.mxu0 %v11065_v43 }
 0x72a   :  { %5646 = vmatprep.subr.bf16.mxu1 %v11066_v36 }
 0x72b   :  { %5311 = vmatmul.mubr.bf16.vlgmr.msra.gmra.mrb[80].mxu0 %v4803_v29 }
 0x72c   :  { %5352 = vmatmul.mubr.bf16.vlgmr.msra.gmra.mrb[80].mxu1 %v4803_v29  ;;  %5606 = vmatpush1.bf16.msra.mxu0 %v11067_v57  ;;  %v11087_v29 = vld [vmem:[#allocation86_spill] sm:$0xff] }
 0x72d   :  { %5647 = vmatpush1.bf16.msra.mxu1 %v11068_v33  ;;  %5607 = vmatprep.subr.bf16.mxu0 %v11069_v10 }
 0x72e   :  { %5648 = vmatprep.subr.bf16.mxu1 %v11070_v54  ;;  %5637 = vmatprep.mubr.bf16.mxu0 %v10698_v51 }
 0x72f   :  { %5678 = vmatprep.mubr.bf16.mxu1 %v10698_v51 }
 0x730   :  { %5608 = vmatpush1.bf16.msra.mxu0 %v11071_v27 }
 0x731   :  { %5649 = vmatpush1.bf16.msra.mxu1 %v11072_v35  ;;  %5609 = vmatprep.subr.bf16.mxu0 %v11073_v2 }
 0x732   :  { %5650 = vmatprep.subr.bf16.mxu1 %v11074_v8 }
 0x734   :  { %5610 = vmatpush1.bf16.msra.mxu0 %v11075_v26 }
 0x735   :  { %5651 = vmatpush1.bf16.msra.mxu1 %v11076_v34  ;;  %5611 = vmatprep.subr.bf16.mxu0 %v11077_v5 }
 0x736   :  { %5652 = vmatprep.subr.bf16.mxu1 %v11078_v32 }
 0x738   :  { %5612 = vmatpush1.bf16.msra.mxu0 %v11079_v16 }
 0x739   :  { %5653 = vmatpush1.bf16.msra.mxu1 %v11080_v48  ;;  %5613 = vmatprep.subr.bf16.mxu0 %v11081_v3  ;;  %v11098_v3 = vld [vmem:[#allocation59_spill] sm:$0xff] }
 0x73a   :  { %5654 = vmatprep.subr.bf16.mxu1 %v11082_v4  ;;  %v228_v4 = vadd.f32 %v11098_v3, %v10958_v58  ;;  %v10296_v3 = vld [vmem:[#allocation7 + $0x48] ss:$16 sps:$4 sm:$0xff]  }
 0x73c   :  { %5614 = vmatpush1.bf16.msra.mxu0 %v11083_v9 }
 0x73d   :  { %5655 = vmatpush1.bf16.msra.mxu1 %v11084_v56  ;;  %5615 = vmatprep.subr.bf16.mxu0 %v11085_v14  ;;  %v11099_v14 = vld [vmem:[#allocation100_spill] sm:$0xff] }
 0x73e   :  { %5656 = vmatprep.subr.bf16.mxu1 %v11086_v19  ;;  %v11100_v19 = vld [vmem:[#allocation60_spill] sm:$0xff] }
 0x740   :  { %5616 = vmatpush1.bf16.msra.mxu0 %v11087_v29  ;;  %v230_v29 = vadd.f32 %v11100_v19, %v11099_v14 }
 0x741   :  { %5657 = vmatpush1.bf16.msra.mxu1 %v11088_v20  ;;  %5617 = vmatprep.subr.bf16.mxu0 %v11089_v46  ;;  %v11101_v20 = vld [vmem:[#allocation13_spill] sm:$0xff]  ;;  %v11102_v46 = vld [vmem:[#allocation62_spill] sm:$0xff] }
 0x742   :  { %5658 = vmatprep.subr.bf16.mxu1 %v11090_v45  ;;  %v301_v45 = vadd.f32 %v11102_v46, %v11101_v20  ;;  %v10307_v46 = vld [vmem:[#allocation7 + $0x60] ss:$16 sps:$4 sm:$0xff]  }
 0x744   :  { %5618 = vmatpush1.bf16.msra.mxu0 %v11091_v49 }
 0x745   :  { %5659 = vmatpush1.bf16.msra.mxu1 %v11092_v6  ;;  %5619 = vmatprep.subr.bf16.mxu0 %v11093_v47  ;;  %v11103_v47 = vld [vmem:[#allocation64_spill] sm:$0xff] }
 0x746   :  { %5660 = vmatprep.subr.bf16.mxu1 %v11094_v0  ;;  %v303_v0 = vadd.f32 %v11103_v47, %v8906_v53  ;;  %v10324_v47 = vld [vmem:[#allocation7 + $0x88] ss:$16 sps:$4 sm:$0xff]  }
 0x748   :  { %5620 = vmatpush1.bf16.msra.mxu0 %v11095_v13 }
 0x749   :  { %5661 = vmatpush1.bf16.msra.mxu1 %v11096_v17  ;;  %5881 = vmatprep.subr.bf16.mxu0 %v10241_v22 }
 0x74a   :  { %5922 = vmatprep.subr.bf16.mxu1 %v10243_v23 }
 0x778   :  { %v6909_v62 = vpop.xlane.xlu0 %6908 }
 0x779   :  { %v6927_v21 = vadd.f32 %v11097_v18, %v6909_v62 }
 0x77b   :  { %6936 = vst.msk [vmem:[%s10459_s9 + $0x20] sm:$0xff] %vm6931_vm1, %v6927_v21 }
 0x7be   :  { %v4754_v25 = vpop.f32.mrb[72].mxu0 }
 0x7bf   :  { %v4795_v28 = vpop.f32.mrb[72].mxu1  ;;  %v4756_v30 = vpop.f32.mrb[73].mxu0 }
 0x7c0   :  { %v4797_v31 = vpop.f32.mrb[73].mxu1  ;;  %v4758_v38 = vpop.f32.mrb[74].mxu0 }
 0x7c1   :  { %v4799_v40 = vpop.f32.mrb[74].mxu1  ;;  %v4759_v41 = vpop.f32.mrb[75].mxu0 }
 0x7c2   :  { %v4800_v52 = vpop.f32.mrb[75].mxu1 }
 0x7de   :  { %v5030_v60 = vpop.f32.mrb[76].mxu0 }
 0x7df   :  { %v5031_v59 = vadd.f32 %v5030_v60, %v4754_v25  ;;  %v5071_v39 = vpop.f32.mrb[76].mxu1  ;;  %v5032_v50 = vpop.f32.mrb[77].mxu0 }
 0x7e0   :  { %v5072_v1 = vadd.f32 %v5071_v39, %v4795_v28  ;;  %v5033_v7 = vadd.f32 %v5032_v50, %v4756_v30  ;;  %v5073_v55 = vpop.f32.mrb[77].mxu1  ;;  %v5034_v63 = vpop.f32.mrb[78].mxu0 }
 0x7e1   :  { %v5078_v42 = vadd.f32 %v5031_v59, %v10821_v61  ;;  %v5074_v12 = vadd.f32 %v5073_v55, %v4797_v31  ;;  %v5075_v43 = vpop.f32.mrb[78].mxu1  ;;  %v5035_v36 = vpop.f32.mrb[79].mxu0 }
 0x7e2   :  { %v5079_v57 = vadd.f32 %v5033_v7, %v9181_v44  ;;  %v5076_v33 = vpop.f32.mrb[79].mxu1  ;;  %v5080_v35 = vadd.f32 %v5072_v1, %v9192_v24  ;;  %v10265_v43 = vld [vmem:[#allocation7 + $0x8] ss:$16 sps:$4 sm:$0xff]   ;;  %v10270_v36 = vld [vmem:[%s10457_s7] ss:$0 sm:$0xff] }
 0x7e3   :  { %v7541_v10 = vmul.f32 -1.442695, %v5078_v42  ;;  %v5081_v27 = vadd.f32 %v5074_v12, %v9187_v15  ;;  %v10263_v12 = vld [vmem:[#allocation7] ss:$16 sps:$4 sm:$0xff]  }
 0x7e4   :  { %v7542_v54 = vmul.f32 -1.442695, %v5079_v57 }
 0x7e5   :  { %8479 = vpow2.f32 %v7541_v10  ;;  %v7543_v34 = vmul.f32 -1.442695, %v5081_v27  ;;  %v10273_v10 = vld [vmem:[#allocation7 + $0x24] ss:$16 sps:$4 sm:$0xff]   ;;  %v10278_v27 = vld [vmem:[#allocation7 + $0x20] ss:$16 sps:$4 sm:$0xff]  }
 0x7e6   :  { %8481 = vpow2.f32 %v7542_v54  ;;  %v10275_v54 = vld [vmem:[#allocation7 + $0x2c] ss:$16 sps:$4 sm:$0xff]  }
 0x7e7   :  { %8483 = vtanh.f32 %v5080_v35  ;;  %v10282_v35 = vld [vmem:[#allocation7 + $0x28] ss:$16 sps:$4 sm:$0xff]  }
 0x7ef   :  { %v8480_v2 = vpop.eup %8479 }
 0x7f0   :  { %v8482_v8 = vpop.eup %8481  ;;  %v5391_v26 = vadd.f32 1.0, %v8480_v2  ;;  %v10284_v2 = vld [vmem:[#allocation7 + $0x44] ss:$16 sps:$4 sm:$0xff]  }
 0x7f1   :  { %v5397_v5 = vadd.f32 1.0, %v8482_v8  ;;  %v8484_v32 = vpop.eup %8483 }
 0x7f2   :  { %8485 = vrcp.f32 %v5391_v26  ;;  %v10287_v26 = vld [vmem:[#allocation7 + $0x4c] ss:$16 sps:$4 sm:$0xff]  }
 0x7f3   :  { %8487 = vrcp.f32 %v5397_v5 }
 0x7f4   :  { %8489 = vpow2.f32 %v7543_v34 }
 0x7fc   :  { %v8486_v16 = vpop.eup %8485 }
 0x7fd   :  { %v8488_v48 = vpop.eup %8487  ;;  %v5408_v9 = vmul.f32 %v8486_v16, %v8484_v32  ;;  %v10292_v32 = vld [vmem:[#allocation7 + $0x40] ss:$16 sps:$4 sm:$0xff]  }
 0x7fe   :  { %v8490_v56 = vpop.eup %8489  ;;  %v5407_v49 = vmul.f32 %v8488_v48, %v10128_v11  ;;  %v5312_v6 = vpop.f32.mrb[80].mxu0 }
 0x7ff   :  { %v5360_v13 = vadd.f32 %v5312_v6, %v228_v4  ;;  %v5353_v17 = vpop.f32.mrb[80].mxu1  ;;  %v5314_v62 = vpop.f32.mrb[81].mxu0  ;;  %v5404_v31 = vadd.f32 1.0, %v8490_v56  ;;  %v10298_v4 = vld [vmem:[#allocation7 + $0x64] ss:$16 sps:$4 sm:$0xff]  }
 0x800   :  { %v5362_v18 = vadd.f32 %v5353_v17, %v301_v45  ;;  %v5361_v21 = vadd.f32 %v5314_v62, %v230_v29  ;;  %v5355_v25 = vpop.f32.mrb[81].mxu1  ;;  %v5316_v28 = vpop.f32.mrb[82].mxu0  ;;  %v10260_v30 = vadd.f32 %v5408_v9, %v5407_v49  ;;  %v10302_v56 = vld [vmem:[#allocation7 + $0x6c] ss:$16 sps:$4 sm:$0xff]   ;;  %v10311_v45 = vld [vmem:[#allocation7 + $0x68] ss:$16 sps:$4 sm:$0xff]  }
 0x801   :  { %v7538_v38 = vmul.f32 -1.442695, %v5360_v13  ;;  %v5363_v40 = vadd.f32 %v5355_v25, %v303_v0  ;;  %v5357_v41 = vpop.f32.mrb[82].mxu1  ;;  %v5317_v52 = vpop.f32.mrb[83].mxu0  ;;  %v10313_v49 = vld [vmem:[#allocation7 + $0x84] ss:$16 sps:$4 sm:$0xff]  }
 0x802   :  { %v7539_v60 = vmul.f32 -1.442695, %v5361_v21  ;;  %v5358_v11 = vpop.f32.mrb[83].mxu1  ;;  %v10320_v6 = vld [vmem:[#allocation7 + $0x80] ss:$16 sps:$4 sm:$0xff]  }
 0x803   :  { %8491 = vpow2.f32 %v7538_v38  ;;  %v7540_v59 = vmul.f32 -1.442695, %v5363_v40  ;;  %v10326_v0 = vld [vmem:[#allocation7 + $0xa4] ss:$16 sps:$4 sm:$0xff]   ;;  %v10329_v13 = vld [vmem:[#allocation7 + $0xac] ss:$16 sps:$4 sm:$0xff]  }
 0x804   :  { %8493 = vpow2.f32 %v7539_v60  ;;  %v10332_v17 = vld [vmem:[#allocation7 + $0xa0] ss:$16 sps:$4 sm:$0xff]   ;;  %v10336_v62 = vld [vmem:[#allocation7 + $0xa8] ss:$16 sps:$4 sm:$0xff]   ;;  %v10341_v21 = vld [vmem:[#allocation7 + $0xcc] ss:$16 sps:$4 sm:$0xff]  }
 0x805   :  { %8495 = vrcp.f32 %v5404_v31  ;;  %v10344_v28 = vld [vmem:[#allocation7 + $0xc0] ss:$16 sps:$4 sm:$0xff]   ;;  %v10348_v31 = vld [vmem:[#allocation7 + $0xc8] ss:$16 sps:$4 sm:$0xff]   ;;  %v10350_v38 = vld [vmem:[#allocation7 + $0xe4] ss:$16 sps:$4 sm:$0xff]  }
 0x806   :  { %8497 = vtanh.f32 %v10260_v30  ;;  %v10353_v41 = vld [vmem:[#allocation7 + $0xec] ss:$16 sps:$4 sm:$0xff]   ;;  %v10356_v60 = vld [vmem:[#allocation7 + $0xe0] ss:$16 sps:$4 sm:$0xff]   ;;  %v10360_v11 = vld [vmem:[#allocation7 + $0xe8] ss:$16 sps:$4 sm:$0xff]  }
 0x807   :  { %8499 = vtanh.f32 %v5362_v18  ;;  %v10338_v18 = vld [vmem:[#allocation7 + $0xc4] ss:$16 sps:$4 sm:$0xff]  }
 0x808   :  { %8501 = vpow2.f32 %v7540_v59  ;;  %v8213_v59 = vld [vmem:[#allocation5 + $0x4] ss:$16 sps:$4 sm:$0xff]  }
 0x80d   :  { %v8492_v39 = vpop.eup %8491 }
 0x80e   :  { %v8494_v50 = vpop.eup %8493  ;;  %v5367_v1 = vadd.f32 1.0, %v8492_v39  ;;  %v8216_v39 = vld [vmem:[#allocation5 + $0xc] ss:$16 sps:$4 sm:$0xff]  }
 0x80f   :  { %v8496_v7 = vpop.eup %8495  ;;  %v5373_v55 = vadd.f32 1.0, %v8494_v50 }
 0x810   :  { %v8498_v63 = vpop.eup %8497  ;;  %8503 = vrcp.f32 %v5367_v1  ;;  %v8211_v1 = vld [vmem:[#allocation5] ss:$16 sps:$4 sm:$0xff]  }
 0x811   :  { %8505 = vrcp.f32 %v5373_v55  ;;  %v5411_v42 = vmul.f32 %v8498_v63, %v8496_v7  ;;  %v8500_v8 = vpop.eup %8499  ;;  %v8214_v7 = vld [vmem:[#allocation5 + $0x8] ss:$16 sps:$4 sm:$0xff]   ;;  %v8219_v55 = vld [vmem:[#allocation5 + $0x24] ss:$16 sps:$4 sm:$0xff]   ;;  %v8222_v63 = vld [vmem:[#allocation5 + $0x2c] ss:$16 sps:$4 sm:$0xff]  }
 0x812   :  { %v8502_v34 = vpop.eup %8501 }
 0x813   :  { %v6897_v57 = vmul.f32 %v10270_v36, %v5411_v42  ;;  %v5412_v33 = vpack.c.bf16 %v5411_v42, %v5411_v42  ;;  %v5380_v29 = vadd.f32 1.0, %v8502_v34  ;;  %v8217_v42 = vld [vmem:[#allocation5 + $0x20] ss:$16 sps:$4 sm:$0xff]  }
 0x814   :  { %v8223_v34 = vld [vmem:[#allocation5 + $0x40] ss:$16 sps:$4 sm:$0xff]  }
 0x815   :  { %6910 = vadd.xlane.f32.xlu1 %v6897_v57  ;;  %5638 = vmatmul.mubr.bf16.vlgmr.msra.gmra.mrb[84].mxu0 %v5412_v33  ;;  %v8220_v57 = vld [vmem:[#allocation5 + $0x28] ss:$16 sps:$4 sm:$0xff]  }
 0x816   :  { %5679 = vmatmul.mubr.bf16.vlgmr.msra.gmra.mrb[84].mxu1 %v5412_v33  ;;  %5882 = vmatpush1.bf16.msra.mxu0 %v10263_v12  ;;  %v8225_v33 = vld [vmem:[#allocation5 + $0x44] ss:$16 sps:$4 sm:$0xff]  }
 0x817   :  { %5923 = vmatpush1.bf16.msra.mxu1 %v10265_v43  ;;  %5883 = vmatprep.subr.bf16.mxu0 %v10273_v10 }
 0x818   :  { %5924 = vmatprep.subr.bf16.mxu1 %v10275_v54  ;;  %5913 = vmatprep.mubr.bf16.mxu0 %v10698_v51 }
 0x819   :  { %5954 = vmatprep.mubr.bf16.mxu1 %v10698_v51 }
 0x81a   :  { %v8504_v5 = vpop.eup %8503  ;;  %5884 = vmatpush1.bf16.msra.mxu0 %v10278_v27 }
 0x81b   :  { %v8506_v16 = vpop.eup %8505  ;;  %v5384_v48 = vmul.f32 %v8504_v5, %v8500_v8  ;;  %5925 = vmatpush1.bf16.msra.mxu1 %v10282_v35  ;;  %5885 = vmatprep.subr.bf16.mxu0 %v10284_v2  ;;  %v8228_v8 = vld [vmem:[#allocation5 + $0x4c] ss:$16 sps:$4 sm:$0xff]   ;;  %v8226_v5 = vld [vmem:[#allocation5 + $0x48] ss:$16 sps:$4 sm:$0xff]  }
 0x81c   :  { %v5383_v9 = vmul.f32 %v8506_v16, %v10143_v37  ;;  %5926 = vmatprep.subr.bf16.mxu1 %v10287_v26  ;;  %v10316_v37 = vld [vmem:[#allocation7 + $0x8c] ss:$16 sps:$4 sm:$0xff]   ;;  %v8231_v16 = vld [vmem:[#allocation5 + $0x64] ss:$16 sps:$4 sm:$0xff]  }
 0x81e   :  { %v10304_v19 = vadd.f32 %v5384_v48, %v5383_v9  ;;  %5886 = vmatpush1.bf16.msra.mxu0 %v10292_v32  ;;  %v8234_v48 = vld [vmem:[#allocation5 + $0x6c] ss:$16 sps:$4 sm:$0xff]   ;;  %v8229_v9 = vld [vmem:[#allocation5 + $0x60] ss:$16 sps:$4 sm:$0xff]  }
 0x81f   :  { %5927 = vmatpush1.bf16.msra.mxu1 %v10296_v3  ;;  %5887 = vmatprep.subr.bf16.mxu0 %v10298_v4 }
 0x820   :  { %5928 = vmatprep.subr.bf16.mxu1 %v10302_v56  ;;  %8507 = vtanh.f32 %v10304_v19 }
 0x821   :  { %8509 = vrcp.f32 %v5380_v29  ;;  %v8232_v29 = vld [vmem:[#allocation5 + $0x68] ss:$16 sps:$4 sm:$0xff]  }
 0x822   :  { %5888 = vmatpush1.bf16.msra.mxu0 %v10307_v46 }
 0x823   :  { %5929 = vmatpush1.bf16.msra.mxu1 %v10311_v45  ;;  %5889 = vmatprep.subr.bf16.mxu0 %v10313_v49 }
 0x824   :  { %5930 = vmatprep.subr.bf16.mxu1 %v10316_v37 }
 0x826   :  { %5890 = vmatpush1.bf16.msra.mxu0 %v10320_v6 }
 0x827   :  { %5931 = vmatpush1.bf16.msra.mxu1 %v10324_v47  ;;  %5891 = vmatprep.subr.bf16.mxu0 %v10326_v0 }
 0x828   :  { %5932 = vmatprep.subr.bf16.mxu1 %v10329_v13 }
 0x82a   :  { %v8508_v25 = vpop.eup %8507  ;;  %5892 = vmatpush1.bf16.msra.mxu0 %v10332_v17 }
 0x82b   :  { %5933 = vmatpush1.bf16.msra.mxu1 %v10336_v62  ;;  %5893 = vmatprep.subr.bf16.mxu0 %v10338_v18  ;;  %v8510_v40 = vpop.eup %8509 }
 0x82c   :  { %5934 = vmatprep.subr.bf16.mxu1 %v10341_v21  ;;  %v5387_v52 = vmul.f32 %v8510_v40, %v8508_v25  ;;  %v8237_v25 = vld [vmem:[#allocation5 + $0x84] ss:$16 sps:$4 sm:$0xff]   ;;  %v8240_v40 = vld [vmem:[#allocation5 + $0x8c] ss:$16 sps:$4 sm:$0xff]  }
 0x82e   :  { %5894 = vmatpush1.bf16.msra.mxu0 %v10344_v28  ;;  %v10363_v50 = vpack.c.bf16 %v5387_v52, %v5387_v52  ;;  %v8235_v52 = vld [vmem:[#allocation5 + $0x80] ss:$16 sps:$4 sm:$0xff]  }
 0x82f   :  { %5935 = vmatpush1.bf16.msra.mxu1 %v10348_v31  ;;  %5895 = vmatprep.subr.bf16.mxu0 %v10350_v38 }
 0x830   :  { %5936 = vmatprep.subr.bf16.mxu1 %v10353_v41 }
 0x832   :  { %5896 = vmatpush1.bf16.msra.mxu0 %v10356_v60 }
 0x833   :  { %5937 = vmatpush1.bf16.msra.mxu1 %v10360_v11  ;;  %6163 = vmatprep.subr.bf16.mxu0 %v8213_v59  ;;  %v8238_v59 = vld [vmem:[#allocation5 + $0x88] ss:$16 sps:$4 sm:$0xff]  }
 0x834   :  { %6204 = vmatprep.subr.bf16.mxu1 %v8216_v39  ;;  %v8243_v39 = vld [vmem:[#allocation5 + $0xa4] ss:$16 sps:$4 sm:$0xff]  }
 0x835   :  { %5914 = vmatmul.mubr.bf16.vlgmr.msra.gmra.mrb[88].mxu0 %v10363_v50 }
 0x836   :  { %5955 = vmatmul.mubr.bf16.vlgmr.msra.gmra.mrb[88].mxu1 %v10363_v50  ;;  %6164 = vmatpush1.bf16.msra.mxu0 %v8211_v1  ;;  %v8246_v1 = vld [vmem:[#allocation5 + $0xac] ss:$16 sps:$4 sm:$0xff]  }
 0x837   :  { %6205 = vmatpush1.bf16.msra.mxu1 %v8214_v7  ;;  %6165 = vmatprep.subr.bf16.mxu0 %v8219_v55  ;;  %v8241_v7 = vld [vmem:[#allocation5 + $0xa0] ss:$16 sps:$4 sm:$0xff]   ;;  %v8244_v55 = vld [vmem:[#allocation5 + $0xa8] ss:$16 sps:$4 sm:$0xff]  }
 0x838   :  { %6206 = vmatprep.subr.bf16.mxu1 %v8222_v63  ;;  %6195 = vmatprep.mubr.bf16.mxu0 %v10698_v51  ;;  %v8249_v63 = vld [vmem:[#allocation5 + $0xc4] ss:$16 sps:$4 sm:$0xff]  }
 0x839   :  { %6236 = vmatprep.mubr.bf16.mxu1 %v10698_v51 }
 0x83a   :  { %6166 = vmatpush1.bf16.msra.mxu0 %v8217_v42  ;;  %v8252_v42 = vld [vmem:[#allocation5 + $0xcc] ss:$16 sps:$4 sm:$0xff]  }
 0x83b   :  { %6207 = vmatpush1.bf16.msra.mxu1 %v8220_v57  ;;  %6167 = vmatprep.subr.bf16.mxu0 %v8225_v33  ;;  %v8247_v57 = vld [vmem:[#allocation5 + $0xc0] ss:$16 sps:$4 sm:$0xff]   ;;  %v8250_v33 = vld [vmem:[#allocation5 + $0xc8] ss:$16 sps:$4 sm:$0xff]  }
 0x83c   :  { %6208 = vmatprep.subr.bf16.mxu1 %v8228_v8  ;;  %v8255_v8 = vld [vmem:[#allocation5 + $0xe4] ss:$16 sps:$4 sm:$0xff]  }
 0x83e   :  { %6168 = vmatpush1.bf16.msra.mxu0 %v8223_v34  ;;  %v8258_v34 = vld [vmem:[#allocation5 + $0xec] ss:$16 sps:$4 sm:$0xff]  }
 0x83f   :  { %6209 = vmatpush1.bf16.msra.mxu1 %v8226_v5  ;;  %6169 = vmatprep.subr.bf16.mxu0 %v8231_v16  ;;  %v8253_v5 = vld [vmem:[#allocation5 + $0xe0] ss:$16 sps:$4 sm:$0xff]   ;;  %v8256_v16 = vld [vmem:[#allocation5 + $0xe8] ss:$16 sps:$4 sm:$0xff]  }
 0x840   :  { %6210 = vmatprep.subr.bf16.mxu1 %v8234_v48  ;;  %v8261_v48 = vld [vmem:[#allocation9 + $0x4] ss:$16 sps:$4 sm:$0xff]  }
 0x842   :  { %6170 = vmatpush1.bf16.msra.mxu0 %v8229_v9  ;;  %v8264_v9 = vld [vmem:[#allocation9 + $0xc] ss:$16 sps:$4 sm:$0xff]  }
 0x843   :  { %6211 = vmatpush1.bf16.msra.mxu1 %v8232_v29  ;;  %6171 = vmatprep.subr.bf16.mxu0 %v8237_v25  ;;  %v8259_v29 = vld [vmem:[#allocation9] ss:$16 sps:$4 sm:$0xff]   ;;  %v8262_v25 = vld [vmem:[#allocation9 + $0x8] ss:$16 sps:$4 sm:$0xff]  }
 0x844   :  { %6212 = vmatprep.subr.bf16.mxu1 %v8240_v40  ;;  %v8267_v40 = vld [vmem:[#allocation9 + $0x24] ss:$16 sps:$4 sm:$0xff]  }
 0x846   :  { %6172 = vmatpush1.bf16.msra.mxu0 %v8235_v52  ;;  %v8270_v52 = vld [vmem:[#allocation9 + $0x2c] ss:$16 sps:$4 sm:$0xff]  }
 0x847   :  { %6213 = vmatpush1.bf16.msra.mxu1 %v8238_v59  ;;  %6173 = vmatprep.subr.bf16.mxu0 %v8243_v39  ;;  %v8265_v59 = vld [vmem:[#allocation9 + $0x20] ss:$16 sps:$4 sm:$0xff]   ;;  %v8268_v39 = vld [vmem:[#allocation9 + $0x28] ss:$16 sps:$4 sm:$0xff]  }
 0x848   :  { %6214 = vmatprep.subr.bf16.mxu1 %v8246_v1  ;;  %v8276_v1 = vld [vmem:[#allocation9 + $0x4c] ss:$16 sps:$4 sm:$0xff]  }
 0x84a   :  { %6174 = vmatpush1.bf16.msra.mxu0 %v8241_v7 }
 0x84b   :  { %6215 = vmatpush1.bf16.msra.mxu1 %v8244_v55  ;;  %6175 = vmatprep.subr.bf16.mxu0 %v8249_v63  ;;  %v8271_v55 = vld [vmem:[#allocation9 + $0x40] ss:$16 sps:$4 sm:$0xff]   ;;  %v8274_v63 = vld [vmem:[#allocation9 + $0x48] ss:$16 sps:$4 sm:$0xff]  }
 0x84c   :  { %6216 = vmatprep.subr.bf16.mxu1 %v8252_v42  ;;  %v10375_v42 = vld [vmem:[#allocation4] ss:$0 sm:$0xff] }
 0x84d   :  { %11104 = vst [vmem:[#allocation96_spill] sm:$0xff] %v10375_v42 }
 0x84e   :  { %6176 = vmatpush1.bf16.msra.mxu0 %v8247_v57 }
 0x84f   :  { %6217 = vmatpush1.bf16.msra.mxu1 %v8250_v33  ;;  %6177 = vmatprep.subr.bf16.mxu0 %v8255_v8  ;;  %v8279_v33 = vld [vmem:[#allocation9 + $0x64] ss:$16 sps:$4 sm:$0xff]   ;;  %v8282_v8 = vld [vmem:[#allocation9 + $0x6c] ss:$16 sps:$4 sm:$0xff]  }
 0x850   :  { %6218 = vmatprep.subr.bf16.mxu1 %v8258_v34  ;;  %v8277_v34 = vld [vmem:[#allocation9 + $0x60] ss:$16 sps:$4 sm:$0xff]  }
 0x852   :  { %6178 = vmatpush1.bf16.msra.mxu0 %v8253_v5  ;;  %v8280_v5 = vld [vmem:[#allocation9 + $0x68] ss:$16 sps:$4 sm:$0xff]  }
 0x853   :  { %6219 = vmatpush1.bf16.msra.mxu1 %v8256_v16  ;;  %6490 = vmatprep.subr.bf16.mxu0 %v8261_v48  ;;  %v8285_v16 = vld [vmem:[#allocation9 + $0x84] ss:$16 sps:$4 sm:$0xff]   ;;  %v8288_v48 = vld [vmem:[#allocation9 + $0x8c] ss:$16 sps:$4 sm:$0xff]  }
 0x854   :  { %6531 = vmatprep.subr.bf16.mxu1 %v8264_v9  ;;  %v8283_v9 = vld [vmem:[#allocation9 + $0x80] ss:$16 sps:$4 sm:$0xff]  }
 0x855   :  { %6196 = vmatmul.mubr.bf16.vlgmr.msra.gmra.mrb[92].mxu0 %v10363_v50 }
 0x856   :  { %6237 = vmatmul.mubr.bf16.vlgmr.msra.gmra.mrb[92].mxu1 %v10363_v50  ;;  %6522 = vmatprep.mubr.bf16.mxu0 %v10698_v51  ;;  %v8273_v50 = vld [vmem:[#allocation9 + $0x44] ss:$16 sps:$4 sm:$0xff]  }
 0x857   :  { %6563 = vmatprep.mubr.bf16.mxu1 %v10698_v51  ;;  %6491 = vmatpush1.bf16.msra.mxu0 %v8259_v29  ;;  %v8286_v29 = vld [vmem:[#allocation9 + $0x88] ss:$16 sps:$4 sm:$0xff]  }
 0x858   :  { %6532 = vmatpush1.bf16.msra.mxu1 %v8262_v25  ;;  %6492 = vmatprep.subr.bf16.mxu0 %v8267_v40  ;;  %v8291_v25 = vld [vmem:[#allocation9 + $0xa4] ss:$16 sps:$4 sm:$0xff]   ;;  %v8294_v40 = vld [vmem:[#allocation9 + $0xac] ss:$16 sps:$4 sm:$0xff]  }
 0x859   :  { %6533 = vmatprep.subr.bf16.mxu1 %v8270_v52  ;;  %v8289_v52 = vld [vmem:[#allocation9 + $0xa0] ss:$16 sps:$4 sm:$0xff]  }
 0x85b   :  { %6493 = vmatpush1.bf16.msra.mxu0 %v8265_v59  ;;  %v8292_v59 = vld [vmem:[#allocation9 + $0xa8] ss:$16 sps:$4 sm:$0xff]  }
 0x85c   :  { %6534 = vmatpush1.bf16.msra.mxu1 %v8268_v39  ;;  %6494 = vmatprep.subr.bf16.mxu0 %v8273_v50  ;;  %v8297_v39 = vld [vmem:[#allocation9 + $0xc4] ss:$16 sps:$4 sm:$0xff]   ;;  %v8300_v50 = vld [vmem:[#allocation9 + $0xcc] ss:$16 sps:$4 sm:$0xff]  }
 0x85d   :  { %6535 = vmatprep.subr.bf16.mxu1 %v8276_v1  ;;  %v8295_v1 = vld [vmem:[#allocation9 + $0xc0] ss:$16 sps:$4 sm:$0xff]  }
 0x85f   :  { %6495 = vmatpush1.bf16.msra.mxu0 %v8271_v55  ;;  %v8303_v55 = vld [vmem:[#allocation9 + $0xe4] ss:$16 sps:$4 sm:$0xff]  }
 0x860   :  { %6536 = vmatpush1.bf16.msra.mxu1 %v8274_v63  ;;  %6496 = vmatprep.subr.bf16.mxu0 %v8279_v33  ;;  %v8306_v63 = vld [vmem:[#allocation9 + $0xec] ss:$16 sps:$4 sm:$0xff]   ;;  %v8304_v33 = vld [vmem:[#allocation9 + $0xe8] ss:$16 sps:$4 sm:$0xff]  }
 0x861   :  { %6537 = vmatprep.subr.bf16.mxu1 %v8282_v8 }
 0x863   :  { %6497 = vmatpush1.bf16.msra.mxu0 %v8277_v34 }
 0x864   :  { %6538 = vmatpush1.bf16.msra.mxu1 %v8280_v5  ;;  %6498 = vmatprep.subr.bf16.mxu0 %v8285_v16 }
 0x865   :  { %6539 = vmatprep.subr.bf16.mxu1 %v8288_v48 }
 0x867   :  { %6499 = vmatpush1.bf16.msra.mxu0 %v8283_v9 }
 0x868   :  { %6540 = vmatpush1.bf16.msra.mxu1 %v8286_v29  ;;  %6500 = vmatprep.subr.bf16.mxu0 %v8291_v25 }
 0x869   :  { %6541 = vmatprep.subr.bf16.mxu1 %v8294_v40 }
 0x86b   :  { %6501 = vmatpush1.bf16.msra.mxu0 %v8289_v52 }
 0x86c   :  { %6542 = vmatpush1.bf16.msra.mxu1 %v8292_v59  ;;  %6502 = vmatprep.subr.bf16.mxu0 %v8297_v39 }
 0x86d   :  { %6543 = vmatprep.subr.bf16.mxu1 %v8300_v50 }
 0x86f   :  { %6503 = vmatpush1.bf16.msra.mxu0 %v8295_v1 }
 0x870   :  { %6504 = vmatprep.subr.bf16.mxu0 %v8303_v55 }
 0x8a2   :  { %v6911_v7 = vpop.xlane.xlu1 %6910 }
 0x8a3   :  { %v6928_v57 = vadd.f32 %v10375_v42, %v6911_v7  ;;  %v8298_v7 = vld [vmem:[#allocation9 + $0xc8] ss:$16 sps:$4 sm:$0xff]  }
 0x8a4   :  { %6544 = vmatpush1.bf16.msra.mxu1 %v8298_v7 }
 0x8a5   :  { %6937 = vst.msk [vmem:[%s10459_s9 + $0x28] sm:$0xff] %vm6931_vm1, %v6928_v57  ;;  %v8301_v57 = vld [vmem:[#allocation9 + $0xe0] ss:$16 sps:$4 sm:$0xff]   ;;  %6545 = vmatprep.subr.bf16.mxu1 %v8306_v63 }
 0x8a6   :  { %6505 = vmatpush1.bf16.msra.mxu0 %v8301_v57 }
 0x8a7   :  { %6766 = vmatprep.subr.bf16.mxu0 %v10241_v22 }
 0x8a8   :  { %6546 = vmatpush1.bf16.msra.mxu1 %v8304_v33 }
 0x8a9   :  { %6807 = vmatprep.subr.bf16.mxu1 %v10243_v23 }
 0x8e8   :  { %v5639_v8 = vpop.f32.mrb[84].mxu0 }
 0x8e9   :  { %v5680_v34 = vpop.f32.mrb[84].mxu1  ;;  %v5641_v5 = vpop.f32.mrb[85].mxu0 }
 0x8ea   :  { %v5682_v16 = vpop.f32.mrb[85].mxu1  ;;  %v5643_v48 = vpop.f32.mrb[86].mxu0 }
 0x8eb   :  { %v5684_v9 = vpop.f32.mrb[86].mxu1  ;;  %v5644_v29 = vpop.f32.mrb[87].mxu0 }
 0x8ec   :  { %v5685_v25 = vpop.f32.mrb[87].mxu1 }
 0x908   :  { %v5915_v40 = vpop.f32.mrb[88].mxu0 }
 0x909   :  { %v5916_v52 = vadd.f32 %v5915_v40, %v5639_v8  ;;  %v5956_v59 = vpop.f32.mrb[88].mxu1  ;;  %v5917_v39 = vpop.f32.mrb[89].mxu0 }
 0x90a   :  { %v5957_v50 = vadd.f32 %v5956_v59, %v5680_v34  ;;  %v5918_v1 = vadd.f32 %v5917_v39, %v5641_v5  ;;  %v5958_v7 = vpop.f32.mrb[89].mxu1  ;;  %v5919_v55 = vpop.f32.mrb[90].mxu0  ;;  %v11105_v39 = vld [vmem:[#allocation61_spill] sm:$0xff] }
 0x90b   :  { %v5963_v22 = vadd.f32 %v5916_v52, %v10821_v61  ;;  %v5959_v63 = vadd.f32 %v5958_v7, %v5682_v16  ;;  %v5960_v23 = vpop.f32.mrb[90].mxu1  ;;  %v5920_v57 = vpop.f32.mrb[91].mxu0 }
 0x90c   :  { %v5964_v33 = vadd.f32 %v5918_v1, %v9181_v44  ;;  %v5961_v42 = vpop.f32.mrb[91].mxu1  ;;  %v5965_v29 = vadd.f32 %v5957_v50, %v9192_v24  ;;  %v232_v1 = vadd.f32 %v11105_v39, %v10958_v58 }
 0x90d   :  { %v7643_v48 = vmul.f32 -1.442695, %v5963_v22  ;;  %v5966_v8 = vadd.f32 %v5959_v63, %v9187_v15  ;;  %v11106_v22 = vld [vmem:[#allocation63_spill] sm:$0xff]  ;;  %v11107_v63 = vld [vmem:[#allocation65_spill] sm:$0xff] }
 0x90e   :  { %v7644_v9 = vmul.f32 -1.442695, %v5964_v33  ;;  %v234_v50 = vadd.f32 %v11106_v22, %v11099_v14  ;;  %v305_v23 = vadd.f32 %v11107_v63, %v11101_v20 }
 0x90f   :  { %8511 = vpow2.f32 %v7643_v48  ;;  %v7645_v40 = vmul.f32 -1.442695, %v5966_v8  ;;  %v11108_v48 = vld [vmem:[#allocation66_spill] sm:$0xff] }
 0x910   :  { %8513 = vpow2.f32 %v7644_v9  ;;  %v307_v9 = vadd.f32 %v11108_v48, %v8906_v53 }
 0x911   :  { %8515 = vtanh.f32 %v5965_v29 }
 0x919   :  { %v8512_v34 = vpop.eup %8511 }
 0x91a   :  { %v8514_v5 = vpop.eup %8513  ;;  %v6276_v25 = vadd.f32 1.0, %v8512_v34 }
 0x91b   :  { %v6282_v52 = vadd.f32 1.0, %v8514_v5  ;;  %v8516_v16 = vpop.eup %8515 }
 0x91c   :  { %8517 = vrcp.f32 %v6276_v25 }
 0x91d   :  { %8519 = vrcp.f32 %v6282_v52 }
 0x91e   :  { %8521 = vpow2.f32 %v7645_v40 }
 0x926   :  { %v8518_v59 = vpop.eup %8517 }
 0x927   :  { %v8520_v42 = vpop.eup %8519  ;;  %v6293_v7 = vmul.f32 %v8518_v59, %v8516_v16 }
 0x928   :  { %v8522_v55 = vpop.eup %8521  ;;  %v6292_v57 = vmul.f32 %v8520_v42, %v10260_v30  ;;  %v6197_v33 = vpop.f32.mrb[92].mxu0 }
 0x929   :  { %v6245_v8 = vadd.f32 %v6197_v33, %v232_v1  ;;  %v6238_v29 = vpop.f32.mrb[92].mxu1  ;;  %v6199_v34 = vpop.f32.mrb[93].mxu0  ;;  %v6289_v16 = vadd.f32 1.0, %v8522_v55 }
 0x92a   :  { %v6247_v5 = vadd.f32 %v6238_v29, %v305_v23  ;;  %v6246_v25 = vadd.f32 %v6199_v34, %v234_v50  ;;  %v6240_v58 = vpop.f32.mrb[93].mxu1  ;;  %v6201_v40 = vpop.f32.mrb[94].mxu0  ;;  %v10397_v52 = vadd.f32 %v6293_v7, %v6292_v57 }
 0x92b   :  { %v7640_v14 = vmul.f32 -1.442695, %v6245_v8  ;;  %v6248_v59 = vadd.f32 %v6240_v58, %v307_v9  ;;  %v6242_v39 = vpop.f32.mrb[94].mxu1  ;;  %v6202_v20 = vpop.f32.mrb[95].mxu0 }
 0x92c   :  { %v7641_v22 = vmul.f32 -1.442695, %v6246_v25  ;;  %v6243_v30 = vpop.f32.mrb[95].mxu1 }
 0x92d   :  { %8523 = vpow2.f32 %v7640_v14  ;;  %v7642_v53 = vmul.f32 -1.442695, %v6248_v59 }
 0x92e   :  { %8525 = vpow2.f32 %v7641_v22 }
 0x92f   :  { %8527 = vrcp.f32 %v6289_v16 }
 0x930   :  { %8529 = vtanh.f32 %v10397_v52 }
 0x931   :  { %8531 = vpow2.f32 %v7642_v53 }
 0x932   :  { %8533 = vtanh.f32 %v6247_v5 }
 0x937   :  { %v8524_v42 = vpop.eup %8523 }
 0x938   :  { %v8526_v1 = vpop.eup %8525  ;;  %v6252_v50 = vadd.f32 1.0, %v8524_v42 }
 0x939   :  { %v8528_v63 = vpop.eup %8527  ;;  %v6258_v7 = vadd.f32 1.0, %v8526_v1 }
 0x93a   :  { %v8530_v55 = vpop.eup %8529  ;;  %8535 = vrcp.f32 %v6252_v50 }
 0x93b   :  { %8537 = vrcp.f32 %v6258_v7  ;;  %v6296_v23 = vmul.f32 %v8530_v55, %v8528_v63  ;;  %v8532_v48 = vpop.eup %8531 }
 0x93c   :  { %v8534_v9 = vpop.eup %8533  ;;  %v6265_v5 = vadd.f32 1.0, %v8532_v48 }
 0x93d   :  { %v6898_v57 = vmul.f32 %v10270_v36, %v6296_v23  ;;  %v6297_v33 = vpack.c.bf16 %v6296_v23, %v6296_v23 }
 0x93e   :  { %8539 = vrcp.f32 %v6265_v5 }
 0x93f   :  { %6912 = vadd.xlane.f32.xlu0 %v6898_v57  ;;  %6523 = vmatmul.mubr.bf16.vlgmr.msra.gmra.mrb[96].mxu0 %v6297_v33 }
 0x940   :  { %6564 = vmatmul.mubr.bf16.vlgmr.msra.gmra.mrb[96].mxu1 %v6297_v33  ;;  %6767 = vmatpush1.bf16.msra.mxu0 %v10263_v12 }
 0x941   :  { %6808 = vmatpush1.bf16.msra.mxu1 %v10265_v43  ;;  %6768 = vmatprep.subr.bf16.mxu0 %v10273_v10 }
 0x942   :  { %6809 = vmatprep.subr.bf16.mxu1 %v10275_v54  ;;  %6798 = vmatprep.mubr.bf16.mxu0 %v10698_v51 }
 0x943   :  { %6839 = vmatprep.mubr.bf16.mxu1 %v10698_v51 }
 0x944   :  { %v8536_v8 = vpop.eup %8535  ;;  %6769 = vmatpush1.bf16.msra.mxu0 %v10278_v27 }
 0x945   :  { %v8538_v29 = vpop.eup %8537  ;;  %v6269_v34 = vmul.f32 %v8536_v8, %v8534_v9  ;;  %6810 = vmatpush1.bf16.msra.mxu1 %v10282_v35  ;;  %6770 = vmatprep.subr.bf16.mxu0 %v10284_v2  ;;  %v11109_v2 = vld [vmem:[#allocation96_spill] sm:$0xff] }
 0x946   :  { %v6268_v12 = vmul.f32 %v8538_v29, %v10304_v19  ;;  %6811 = vmatprep.subr.bf16.mxu1 %v10287_v26 }
 0x948   :  { %v6270_v43 = vadd.f32 %v6269_v34, %v6268_v12  ;;  %6771 = vmatpush1.bf16.msra.mxu0 %v10292_v32  ;;  %v8540_v51 = vpop.eup %8539 }
 0x949   :  { %6812 = vmatpush1.bf16.msra.mxu1 %v10296_v3  ;;  %6772 = vmatprep.subr.bf16.mxu0 %v10298_v4 }
 0x94a   :  { %8541 = vtanh.f32 %v6270_v43  ;;  %6813 = vmatprep.subr.bf16.mxu1 %v10302_v56 }
 0x94c   :  { %6773 = vmatpush1.bf16.msra.mxu0 %v10307_v46 }
 0x94d   :  { %6814 = vmatpush1.bf16.msra.mxu1 %v10311_v45  ;;  %6774 = vmatprep.subr.bf16.mxu0 %v10313_v49 }
 0x94e   :  { %6815 = vmatprep.subr.bf16.mxu1 %v10316_v37 }
 0x950   :  { %6775 = vmatpush1.bf16.msra.mxu0 %v10320_v6 }
 0x951   :  { %6816 = vmatpush1.bf16.msra.mxu1 %v10324_v47  ;;  %6776 = vmatprep.subr.bf16.mxu0 %v10326_v0 }
 0x952   :  { %6817 = vmatprep.subr.bf16.mxu1 %v10329_v13 }
 0x954   :  { %v8542_v10 = vpop.eup %8541  ;;  %6777 = vmatpush1.bf16.msra.mxu0 %v10332_v17 }
 0x955   :  { %6818 = vmatpush1.bf16.msra.mxu1 %v10336_v62  ;;  %6778 = vmatprep.subr.bf16.mxu0 %v10338_v18  ;;  %v6272_v54 = vmul.f32 %v8542_v10, %v8540_v51 }
 0x956   :  { %6819 = vmatprep.subr.bf16.mxu1 %v10341_v21 }
 0x957   :  { %v6573_v27 = vpack.c.bf16 %v6272_v54, %v6272_v54 }
 0x958   :  { %6779 = vmatpush1.bf16.msra.mxu0 %v10344_v28 }
 0x959   :  { %6820 = vmatpush1.bf16.msra.mxu1 %v10348_v31  ;;  %6780 = vmatprep.subr.bf16.mxu0 %v10350_v38 }
 0x95a   :  { %6821 = vmatprep.subr.bf16.mxu1 %v10353_v41 }
 0x95c   :  { %6781 = vmatpush1.bf16.msra.mxu0 %v10356_v60 }
 0x95d   :  { %6822 = vmatpush1.bf16.msra.mxu1 %v10360_v11 }
 0x95f   :  { %6799 = vmatmul.mubr.bf16.vlgmr.msra.gmra.mrb[100].mxu0 %v6573_v27 }
 0x960   :  { %6840 = vmatmul.mubr.bf16.vlgmr.msra.gmra.mrb[100].mxu1 %v6573_v27 }
 0x9cc   :  { %v6913_v35 = vpop.xlane.xlu0 %6912 }
 0x9cd   :  { %v6929_v26 = vadd.f32 %v11109_v2, %v6913_v35 }
 0x9cf   :  { %6938 = vst.msk [vmem:[%s10459_s9 + $0x30] sm:$0xff] %vm6931_vm1, %v6929_v26 }
 0xa12   :  { %v6524_v32 = vpop.f32.mrb[96].mxu0 }
 0xa13   :  { %v6565_v3 = vpop.f32.mrb[96].mxu1  ;;  %v6526_v4 = vpop.f32.mrb[97].mxu0 }
 0xa14   :  { %v6567_v56 = vpop.f32.mrb[97].mxu1  ;;  %v6528_v19 = vpop.f32.mrb[98].mxu0 }
 0xa15   :  { %v6569_v46 = vpop.f32.mrb[98].mxu1  ;;  %v6529_v45 = vpop.f32.mrb[99].mxu0 }
 0xa16   :  { %v6570_v49 = vpop.f32.mrb[99].mxu1 }
 0xa32   :  { %v6800_v37 = vpop.f32.mrb[100].mxu0 }
 0xa33   :  { %v6801_v6 = vadd.f32 %v6800_v37, %v6524_v32  ;;  %v6841_v47 = vpop.f32.mrb[100].mxu1  ;;  %v6802_v0 = vpop.f32.mrb[101].mxu0 }
 0xa34   :  { %v6842_v13 = vadd.f32 %v6841_v47, %v6565_v3  ;;  %v6803_v17 = vadd.f32 %v6802_v0, %v6526_v4  ;;  %v6843_v62 = vpop.f32.mrb[101].mxu1  ;;  %v6804_v18 = vpop.f32.mrb[102].mxu0 }
 0xa35   :  { %v6848_v21 = vadd.f32 %v6801_v6, %v10821_v61  ;;  %v6844_v28 = vadd.f32 %v6843_v62, %v6567_v56  ;;  %v6845_v31 = vpop.f32.mrb[102].mxu1  ;;  %v6805_v38 = vpop.f32.mrb[103].mxu0 }
 0xa36   :  { %v6849_v41 = vadd.f32 %v6803_v17, %v9181_v44  ;;  %v6846_v60 = vpop.f32.mrb[103].mxu1  ;;  %v6850_v16 = vadd.f32 %v6842_v13, %v9192_v24 }
 0xa37   :  { %v7710_v11 = vmul.f32 -1.442695, %v6848_v21  ;;  %v6851_v58 = vadd.f32 %v6844_v28, %v9187_v15 }
 0xa38   :  { %v7711_v25 = vmul.f32 -1.442695, %v6849_v41 }
 0xa39   :  { %8543 = vpow2.f32 %v7710_v11  ;;  %v7712_v40 = vmul.f32 -1.442695, %v6851_v58 }
 0xa3a   :  { %8545 = vpow2.f32 %v7711_v25 }
 0xa3b   :  { %8547 = vpow2.f32 %v7712_v40 }
 0xa3c   :  { %8549 = vtanh.f32 %v6850_v16 }
 0xa43   :  { %v8544_v14 = vpop.eup %8543 }
 0xa44   :  { %v8546_v59 = vpop.eup %8545  ;;  %v6855_v39 = vadd.f32 1.0, %v8544_v14 }
 0xa45   :  { %v6861_v61 = vadd.f32 1.0, %v8546_v59  ;;  %v8548_v20 = vpop.eup %8547 }
 0xa46   :  { %8551 = vrcp.f32 %v6855_v39  ;;  %v8550_v44 = vpop.eup %8549  ;;  %v6868_v42 = vadd.f32 1.0, %v8548_v20 }
 0xa47   :  { %8553 = vrcp.f32 %v6861_v61 }
 0xa48   :  { %8555 = vrcp.f32 %v6868_v42 }
 0xa50   :  { %v8552_v22 = vpop.eup %8551 }
 0xa51   :  { %v8554_v30 = vpop.eup %8553  ;;  %v6872_v53 = vmul.f32 %v8552_v22, %v8550_v44 }
 0xa52   :  { %v6871_v1 = vmul.f32 %v8554_v30, %v10397_v52  ;;  %v8556_v24 = vpop.eup %8555 }
 0xa54   :  { %v6873_v15 = vadd.f32 %v6872_v53, %v6871_v1 }
 0xa56   :  { %8557 = vtanh.f32 %v6873_v15 }
 0xa60   :  { %v8558_v50 = vpop.eup %8557 }
 0xa61   :  { %v6875_v63 = vmul.f32 %v8558_v50, %v8556_v24 }
 0xa63   :  { %v6899_v7 = vmul.f32 %v10270_v36, %v6875_v63 }
 0xa65   :  { %6914 = vadd.xlane.f32.xlu1 %v6899_v7 }
 0xaf2   :  { %v6915_v55 = vpop.xlane.xlu1 %6914 }
 0xaf3   :  { %v6930_v23 = vadd.f32 %v11109_v2, %v6915_v55 }
 0xaf5   :  { %6939 = vst.msk [vmem:[%s10459_s9 + $0x38] sm:$0xff] %vm6931_vm1, %v6930_v23 }
 0xaf6   :  { %6944 = vsyncpa [#allocation6], 1 }
 0xaf7   :  { %6945 = vsyncpa [#allocation8], 1 }

</bundles_post_ra>
